<compile_context>
chip_gen: v5e
topology: v5e:2x2
jax: 0.10.0
libtpu: 0.0.40
codegen_flags: <defaults>
</compile_context>

<pallas_src>
import functools

import jax
import jax.numpy as jnp
from jax.experimental import pallas as pl
from jax.experimental.pallas import tpu as pltpu


CLS_PAD = 128  # lane-aligned padding for the classifier head (>= max(100, 6))


# ------------------------------ fused kernel --------------------------------

def _bert_fused_kernel(
    x_ref, mask_ref,
    emb_g_ref, emb_b_ref,
    wqkv_ref, bqkv_ref, wo_ref, bo_ref, ln1_g_ref, ln1_b_ref,
    wi_ref, bi_ref, wo2_ref, bo2_ref, ln2_g_ref, ln2_b_ref,
    w1_ref, b1_ref, w2_ref, b2_ref,
    out_ref,
    ctx_ref,                       # VMEM scratch [B*S, H] for attention context
    *, B, S, nH, Dh, n_layers, eps):

  H = nH * Dh
  scale = 1.0 / float(Dh) ** 0.5

  def layernorm(h, g, b):
    # f32 statistics over the hidden (lane) axis.
    mu = jnp.mean(h, axis=-1, keepdims=True)
    var = jnp.mean(jnp.square(h - mu), axis=-1, keepdims=True)
    return (h - mu) * jax.lax.rsqrt(var + eps) * g + b

  def matmul(x, w_bf16):
    # bf16 MXU inputs, f32 accumulation.
    return jnp.dot(x.astype(jnp.bfloat16), w_bf16,
                   preferred_element_type=jnp.float32)

  # ---- embedding LayerNorm (pure LN, no zero residual) ----
  x = layernorm(x_ref[...], emb_g_ref[...], emb_b_ref[...])   # [B*S, H] f32

  mask_add = mask_ref[...]                                    # [B, S] additive (0 / -1e4)

  for l in range(n_layers):
    # ---- fused QKV projection: one (H, 3H) matmul ----
    qkv = matmul(x, wqkv_ref[l]) + bqkv_ref[l]                # [B*S, 3H] f32
    q = qkv[:, 0 * H:1 * H]
    k = qkv[:, 1 * H:2 * H]
    v = qkv[:, 2 * H:3 * H]

    # ---- attention per (batch, head); lane-dense context written to scratch ----
    for b in range(B):
      r0, r1 = b * S, (b + 1) * S
      m_b = mask_add[b:b + 1, :]                              # [1, S]
      for h in range(nH):
        c0, c1 = h * Dh, (h + 1) * Dh
        qh = q[r0:r1, c0:c1]                                  # [S, Dh]
        kh = k[r0:r1, c0:c1]
        vh = v[r0:r1, c0:c1]
        s = jnp.dot(qh, kh.T, preferred_element_type=jnp.float32) * scale
        s = s + m_b                                           # broadcast over query rows
        s = s - jnp.max(s, axis=-1, keepdims=True)
        p = jnp.exp(s)
        denom = jnp.sum(p, axis=-1, keepdims=True)
        p = p * pl.reciprocal(denom, approx=True)             # EUP reciprocal
        ctx_ref[r0:r1, c0:c1] = jnp.dot(p, vh,
                                        preferred_element_type=jnp.float32)

    ctx = ctx_ref[...]                                        # [B*S, H]

    # ---- output projection + residual + LN ----
    attn_out = matmul(ctx, wo_ref[l]) + bo_ref[l]
    x = layernorm(attn_out + x, ln1_g_ref[l], ln1_b_ref[l])

    # ---- feed-forward + residual + LN ----
    inter = matmul(x, wi_ref[l]) + bi_ref[l]
    # TODO(synk): HF BERT uses exact erf GELU; tanh approximation kept for robust TPU lowering.
    inter = jax.nn.gelu(inter, approximate=True)
    ffn_out = matmul(inter, wo2_ref[l]) + bo2_ref[l]
    x = layernorm(ffn_out + x, ln2_g_ref[l], ln2_b_ref[l])

  # ---- classifier head (Linear -> ReLU -> Linear), 128-lane padded ----
  # Computed on all B*S rows (cheap, keeps stores lane-dense); the CLS rows and
  # the first n_output columns are sliced in the wrapper.
  hdn = jnp.maximum(matmul(x, w1_ref[...]) + b1_ref[...], 0.0)
  out_ref[...] = matmul(hdn, w2_ref[...]) + b2_ref[...]


def _full_spec(shape):
  n = len(shape)
  return pl.BlockSpec(shape, lambda *_: (0,) * n)


# --------------------------- parameter construction ------------------------

def init_params(key, cfg):
  H, I, L = cfg["hidden"], cfg["intermediate"], cfg["layers"]
  V, P = cfg["vocab"], cfg["max_pos"]
  nh_cls, n_out = cfg["n_hidden"], cfg["n_output"]
  cnt = [0]

  def nxt():
    cnt[0] += 1
    return jax.random.fold_in(key, cnt[0])

  def w(shape, dtype=jnp.float32):
    return (0.02 * jax.random.normal(nxt(), shape, jnp.float32)).astype(dtype)

  params = {
      # embeddings stay f32 (gathered outside the kernel)
      "word_emb": w((V, H)),
      "pos_emb": w((P, H)),
      "type_emb": w((2, H)),
      "emb_ln_g": jnp.ones((1, H), jnp.float32),
      "emb_ln_b": jnp.zeros((1, H), jnp.float32),
      # per-layer encoder weights, stacked on a leading layer axis.
      # matmul operands stored in bf16; biases / LN params in f32.
      "wqkv": w((L, H, 3 * H), jnp.bfloat16),
      "bqkv": jnp.zeros((L, 1, 3 * H), jnp.float32),
      "wo": w((L, H, H), jnp.bfloat16),
      "bo": jnp.zeros((L, 1, H), jnp.float32),
      "ln1_g": jnp.ones((L, 1, H), jnp.float32),
      "ln1_b": jnp.zeros((L, 1, H), jnp.float32),
      "wi": w((L, H, I), jnp.bfloat16),
      "bi": jnp.zeros((L, 1, I), jnp.float32),
      "wo2": w((L, I, H), jnp.bfloat16),
      "bo2": jnp.zeros((L, 1, H), jnp.float32),
      "ln2_g": jnp.ones((L, 1, H), jnp.float32),
      "ln2_b": jnp.zeros((L, 1, H), jnp.float32),
  }

  # classifier: Linear(H,100) -> ReLU -> Linear(100,6), zero-padded to 128 lanes.
  w1 = w((H, nh_cls))
  w2 = w((nh_cls, n_out))
  params["cls_w1p"] = (jnp.zeros((H, CLS_PAD), jnp.bfloat16)
                       .at[:, :nh_cls].set(w1.astype(jnp.bfloat16)))
  params["cls_b1p"] = jnp.zeros((1, CLS_PAD), jnp.float32)
  params["cls_w2p"] = (jnp.zeros((CLS_PAD, CLS_PAD), jnp.bfloat16)
                       .at[:nh_cls, :n_out].set(w2.astype(jnp.bfloat16)))
  params["cls_b2p"] = jnp.zeros((1, CLS_PAD), jnp.float32)
  return params


# ------------------------------ forward pass -------------------------------

def bert_classifier_forward(params, input_ids, attention_mask, cfg):
  B, S = input_ids.shape
  H, nH, L = cfg["hidden"], cfg["heads"], cfg["layers"]
  Dh = H // nH

  input_ids = input_ids.astype(jnp.int32)   # mirrors .to(torch.int64)

  # ---- embedding gather is glue (XLA); everything after runs in one kernel ----
  x = (params["word_emb"][input_ids]
       + params["pos_emb"][jnp.arange(S)][None, :, :]
       + params["type_emb"][0][None, None, :]).reshape(B * S, H).astype(jnp.float32)

  # additive attention mask: 0 where attended, -1e4 where masked
  mask_add = (1.0 - attention_mask.astype(jnp.float32)) * -10000.0   # [B, S]

  inputs = [
      x, mask_add,
      params["emb_ln_g"], params["emb_ln_b"],
      params["wqkv"], params["bqkv"], params["wo"], params["bo"],
      params["ln1_g"], params["ln1_b"],
      params["wi"], params["bi"], params["wo2"], params["bo2"],
      params["ln2_g"], params["ln2_b"],
      params["cls_w1p"], params["cls_b1p"], params["cls_w2p"], params["cls_b2p"],
  ]

  kernel = functools.partial(_bert_fused_kernel, B=B, S=S, nH=nH, Dh=Dh,
                             n_layers=L, eps=1e-12)

  out = pl.pallas_call(
      kernel,
      out_shape=jax.ShapeDtypeStruct((B * S, CLS_PAD), jnp.float32),
      grid=(1,),
      in_specs=[_full_spec(a.shape) for a in inputs],
      out_specs=_full_spec((B * S, CLS_PAD)),
      scratch_shapes=[pltpu.VMEM((B * S, H), jnp.float32)],
      compiler_params=pltpu.CompilerParams(
          dimension_semantics=("arbitrary",)),
  )(*inputs)

  # outputs[0][:, 0, :] -> CLS rows (row b*S), then the real n_output logits.
  logits = out[::S, :cfg["n_output"]]
  return logits


# ----------------------------------- main -----------------------------------

if __name__ == "__main__":
  cfg = dict(vocab=100, max_pos=16, hidden=128, heads=2, intermediate=512,
             layers=2, n_hidden=100, n_output=6)
  B, S = 2, 8

  key = jax.random.PRNGKey(0)
  params = init_params(jax.random.fold_in(key, 1), cfg)

  input_ids = jax.random.randint(jax.random.fold_in(key, 2), (B, S), 0,
                                 cfg["vocab"], dtype=jnp.int32)
  # first sequence fully attended, second has 2 padding positions
  attention_mask = jnp.array([[1] * S, [1] * (S - 2) + [0] * 2], dtype=jnp.int32)

  logits = bert_classifier_forward(params, input_ids, attention_mask, cfg)
  logits = jax.block_until_ready(logits)
  assert logits.shape == (B, cfg["n_output"]) and logits.dtype == jnp.float32
  print("KERNEL_OK")
</pallas_src>

<mosaic_0001>
module attributes {stable_mosaic.version = 11 : i64} {
  func.func @_bert_fused_kernel(%arg0: i32, %arg1: memref<16x128xf32, #tpu.memory_space<vmem>>, %arg2: memref<2x8xf32, #tpu.memory_space<vmem>>, %arg3: memref<1x128xf32, #tpu.memory_space<vmem>>, %arg4: memref<1x128xf32, #tpu.memory_space<vmem>>, %arg5: memref<2x128x384xbf16, #tpu.memory_space<vmem>>, %arg6: memref<2x1x384xf32, #tpu.memory_space<vmem>>, %arg7: memref<2x128x128xbf16, #tpu.memory_space<vmem>>, %arg8: memref<2x1x128xf32, #tpu.memory_space<vmem>>, %arg9: memref<2x1x128xf32, #tpu.memory_space<vmem>>, %arg10: memref<2x1x128xf32, #tpu.memory_space<vmem>>, %arg11: memref<2x128x512xbf16, #tpu.memory_space<vmem>>, %arg12: memref<2x1x512xf32, #tpu.memory_space<vmem>>, %arg13: memref<2x512x128xbf16, #tpu.memory_space<vmem>>, %arg14: memref<2x1x128xf32, #tpu.memory_space<vmem>>, %arg15: memref<2x1x128xf32, #tpu.memory_space<vmem>>, %arg16: memref<2x1x128xf32, #tpu.memory_space<vmem>>, %arg17: memref<128x128xbf16, #tpu.memory_space<vmem>>, %arg18: memref<1x128xf32, #tpu.memory_space<vmem>>, %arg19: memref<128x128xbf16, #tpu.memory_space<vmem>>, %arg20: memref<1x128xf32, #tpu.memory_space<vmem>>, %arg21: memref<16x128xf32, #tpu.memory_space<vmem>>, %arg22: memref<16x128xf32, #tpu.memory_space<vmem>>) attributes {dimension_semantics = [#tpu.dimension_semantics<arbitrary>], iteration_bounds = array<i64: 1>, scalar_prefetch = 0 : i64, scratch_operands = 1 : i64, tpu.core_type = #tpu.core_type<tc>, window_params = [{pipeline_mode = #tpu.pipeline_mode<synchronous>, transform_indices = @transform_0, window_bounds = array<i64: 16, 128>}, {pipeline_mode = #tpu.pipeline_mode<synchronous>, transform_indices = @transform_1, window_bounds = array<i64: 2, 8>}, {pipeline_mode = #tpu.pipeline_mode<synchronous>, transform_indices = @transform_2, window_bounds = array<i64: 1, 128>}, {pipeline_mode = #tpu.pipeline_mode<synchronous>, transform_indices = @transform_3, window_bounds = array<i64: 1, 128>}, {pipeline_mode = #tpu.pipeline_mode<synchronous>, transform_indices = @transform_4, window_bounds = array<i64: 2, 128, 384>}, {pipeline_mode = #tpu.pipeline_mode<synchronous>, transform_indices = @transform_5, window_bounds = array<i64: 2, 1, 384>}, {pipeline_mode = #tpu.pipeline_mode<synchronous>, transform_indices = @transform_6, window_bounds = array<i64: 2, 128, 128>}, {pipeline_mode = #tpu.pipeline_mode<synchronous>, transform_indices = @transform_7, window_bounds = array<i64: 2, 1, 128>}, {pipeline_mode = #tpu.pipeline_mode<synchronous>, transform_indices = @transform_8, window_bounds = array<i64: 2, 1, 128>}, {pipeline_mode = #tpu.pipeline_mode<synchronous>, transform_indices = @transform_9, window_bounds = array<i64: 2, 1, 128>}, {pipeline_mode = #tpu.pipeline_mode<synchronous>, transform_indices = @transform_10, window_bounds = array<i64: 2, 128, 512>}, {pipeline_mode = #tpu.pipeline_mode<synchronous>, transform_indices = @transform_11, window_bounds = array<i64: 2, 1, 512>}, {pipeline_mode = #tpu.pipeline_mode<synchronous>, transform_indices = @transform_12, window_bounds = array<i64: 2, 512, 128>}, {pipeline_mode = #tpu.pipeline_mode<synchronous>, transform_indices = @transform_13, window_bounds = array<i64: 2, 1, 128>}, {pipeline_mode = #tpu.pipeline_mode<synchronous>, transform_indices = @transform_14, window_bounds = array<i64: 2, 1, 128>}, {pipeline_mode = #tpu.pipeline_mode<synchronous>, transform_indices = @transform_15, window_bounds = array<i64: 2, 1, 128>}, {pipeline_mode = #tpu.pipeline_mode<synchronous>, transform_indices = @transform_16, window_bounds = array<i64: 128, 128>}, {pipeline_mode = #tpu.pipeline_mode<synchronous>, transform_indices = @transform_17, window_bounds = array<i64: 1, 128>}, {pipeline_mode = #tpu.pipeline_mode<synchronous>, transform_indices = @transform_18, window_bounds = array<i64: 128, 128>}, {pipeline_mode = #tpu.pipeline_mode<synchronous>, transform_indices = @transform_19, window_bounds = array<i64: 1, 128>}, {pipeline_mode = #tpu.pipeline_mode<synchronous>, transform_indices = @transform_20, window_bounds = array<i64: 16, 128>}]} {
    %c0 = arith.constant 0 : index
    %c0_0 = arith.constant 0 : index
    %0 = vector.load %arg1[%c0, %c0_0] : memref<16x128xf32, #tpu.memory_space<vmem>>, vector<16x128xf32>
    %c0_1 = arith.constant 0 : index
    %c0_2 = arith.constant 0 : index
    %1 = vector.load %arg3[%c0_1, %c0_2] : memref<1x128xf32, #tpu.memory_space<vmem>>, vector<1x128xf32>
    %c0_3 = arith.constant 0 : index
    %c0_4 = arith.constant 0 : index
    %2 = vector.load %arg4[%c0_3, %c0_4] : memref<1x128xf32, #tpu.memory_space<vmem>>, vector<1x128xf32>
    %cst = arith.constant dense<0.000000e+00> : vector<16xf32>
    %3 = vector.multi_reduction <add>, %0, %cst [1] : vector<16x128xf32> to vector<16xf32>
    %4 = vector.shape_cast %3 : vector<16xf32> to vector<16x1xf32>
    %cst_5 = arith.constant 1.280000e+02 : f32
    %5 = vector.broadcast %cst_5 : f32 to vector<16x1xf32>
    %6 = arith.divf %4, %5 : vector<16x1xf32>
    %7 = vector.broadcast %6 : vector<16x1xf32> to vector<16x128xf32>
    %8 = arith.subf %0, %7 : vector<16x128xf32>
    %9 = arith.mulf %8, %8 : vector<16x128xf32>
    %cst_6 = arith.constant dense<0.000000e+00> : vector<16xf32>
    %10 = vector.multi_reduction <add>, %9, %cst_6 [1] : vector<16x128xf32> to vector<16xf32>
    %11 = vector.shape_cast %10 : vector<16xf32> to vector<16x1xf32>
    %cst_7 = arith.constant 1.280000e+02 : f32
    %12 = vector.broadcast %cst_7 : f32 to vector<16x1xf32>
    %13 = arith.divf %11, %12 : vector<16x1xf32>
    %14 = vector.broadcast %6 : vector<16x1xf32> to vector<16x128xf32>
    %15 = arith.subf %0, %14 : vector<16x128xf32>
    %cst_8 = arith.constant 9.99999996E-13 : f32
    %16 = vector.broadcast %cst_8 : f32 to vector<16x1xf32>
    %17 = arith.addf %13, %16 : vector<16x1xf32>
    %18 = math.rsqrt %17 : vector<16x1xf32>
    %19 = vector.broadcast %18 : vector<16x1xf32> to vector<16x128xf32>
    %20 = arith.mulf %15, %19 : vector<16x128xf32>
    %21 = vector.broadcast %1 : vector<1x128xf32> to vector<16x128xf32>
    %22 = arith.mulf %20, %21 : vector<16x128xf32>
    %23 = vector.broadcast %2 : vector<1x128xf32> to vector<16x128xf32>
    %24 = arith.addf %22, %23 : vector<16x128xf32>
    %c0_9 = arith.constant 0 : index
    %c0_10 = arith.constant 0 : index
    %25 = vector.load %arg2[%c0_9, %c0_10] : memref<2x8xf32, #tpu.memory_space<vmem>>, vector<2x8xf32>
    %c0_11 = arith.constant 0 : index
    %c0_12 = arith.constant 0 : index
    %c0_13 = arith.constant 0 : index
    %26 = vector.load %arg5[%c0_11, %c0_12, %c0_13] : memref<2x128x384xbf16, #tpu.memory_space<vmem>>, vector<1x128x384xbf16>
    %27 = vector.shape_cast %26 : vector<1x128x384xbf16> to vector<128x384xbf16>
    %28 = arith.truncf %24 : vector<16x128xf32> to vector<16x128xbf16>
    %cst_14 = arith.constant dense<0.000000e+00> : vector<16x384xf32>
    %29 = tpu.matmul %28, %27, %cst_14 {dimension_numbers = #tpu.dot_dimension_numbers<[1], [0], [0], [1], [0, 0, 1, 1], [], []>} : vector<16x128xbf16>, vector<128x384xbf16>, vector<16x384xf32> -> vector<16x384xf32>
    %c0_15 = arith.constant 0 : index
    %c0_16 = arith.constant 0 : index
    %c0_17 = arith.constant 0 : index
    %30 = vector.load %arg6[%c0_15, %c0_16, %c0_17] : memref<2x1x384xf32, #tpu.memory_space<vmem>>, vector<1x1x384xf32>
    %31 = vector.shape_cast %30 : vector<1x1x384xf32> to vector<1x384xf32>
    %32 = vector.broadcast %31 : vector<1x384xf32> to vector<16x384xf32>
    %33 = arith.addf %29, %32 : vector<16x384xf32>
    %34 = vector.extract_strided_slice %33 {offsets = [0, 0], sizes = [16, 128], strides = [1, 1]} : vector<16x384xf32> to vector<16x128xf32>
    %35 = vector.extract_strided_slice %33 {offsets = [0, 128], sizes = [16, 128], strides = [1, 1]} : vector<16x384xf32> to vector<16x128xf32>
    %36 = vector.extract_strided_slice %33 {offsets = [0, 256], sizes = [16, 128], strides = [1, 1]} : vector<16x384xf32> to vector<16x128xf32>
    %37 = vector.extract_strided_slice %25 {offsets = [0, 0], sizes = [1, 8], strides = [1, 1]} : vector<2x8xf32> to vector<1x8xf32>
    %38 = vector.extract_strided_slice %34 {offsets = [0, 0], sizes = [8, 64], strides = [1, 1]} : vector<16x128xf32> to vector<8x64xf32>
    %39 = vector.extract_strided_slice %35 {offsets = [0, 0], sizes = [8, 64], strides = [1, 1]} : vector<16x128xf32> to vector<8x64xf32>
    %40 = vector.extract_strided_slice %36 {offsets = [0, 0], sizes = [8, 64], strides = [1, 1]} : vector<16x128xf32> to vector<8x64xf32>
    %41 = tpu.transpose %39, [1, 0] : vector<8x64xf32> -> vector<64x8xf32>
    %cst_18 = arith.constant dense<0.000000e+00> : vector<8x8xf32>
    %42 = tpu.matmul %38, %41, %cst_18 {dimension_numbers = #tpu.dot_dimension_numbers<[1], [0], [0], [1], [0, 0, 1, 1], [], []>} : vector<8x64xf32>, vector<64x8xf32>, vector<8x8xf32> -> vector<8x8xf32>
    %cst_19 = arith.constant 1.250000e-01 : f32
    %43 = vector.broadcast %cst_19 : f32 to vector<8x8xf32>
    %44 = arith.mulf %42, %43 : vector<8x8xf32>
    %45 = vector.broadcast %37 : vector<1x8xf32> to vector<8x8xf32>
    %46 = arith.addf %44, %45 : vector<8x8xf32>
    %cst_20 = arith.constant dense<0xFF800000> : vector<8xf32>
    %47 = vector.multi_reduction <maximumf>, %46, %cst_20 [1] : vector<8x8xf32> to vector<8xf32>
    %48 = vector.shape_cast %47 : vector<8xf32> to vector<8x1xf32>
    %49 = vector.broadcast %48 : vector<8x1xf32> to vector<8x8xf32>
    %50 = arith.subf %46, %49 : vector<8x8xf32>
    %51 = math.exp %50 : vector<8x8xf32>
    %cst_21 = arith.constant dense<0.000000e+00> : vector<8xf32>
    %52 = vector.multi_reduction <add>, %51, %cst_21 [1] : vector<8x8xf32> to vector<8xf32>
    %53 = vector.shape_cast %52 : vector<8xf32> to vector<8x1xf32>
    %54 = tpu.reciprocal %53 {approx = true} : vector<8x1xf32> -> vector<8x1xf32>
    %55 = vector.broadcast %54 : vector<8x1xf32> to vector<8x8xf32>
    %56 = arith.mulf %51, %55 : vector<8x8xf32>
    %cst_22 = arith.constant dense<0.000000e+00> : vector<8x64xf32>
    %57 = tpu.matmul %56, %40, %cst_22 {dimension_numbers = #tpu.dot_dimension_numbers<[1], [0], [0], [1], [0, 0, 1, 1], [], []>} : vector<8x8xf32>, vector<8x64xf32>, vector<8x64xf32> -> vector<8x64xf32>
    %c0_23 = arith.constant 0 : index
    %c0_24 = arith.constant 0 : index
    %58 = vector.load %arg22[%c0_23, %c0_24] : memref<16x128xf32, #tpu.memory_space<vmem>>, vector<8x64xf32>
    tpu.vector_store %arg22[%c0_23, %c0_24], %57 {strides = array<i32>} : memref<16x128xf32, #tpu.memory_space<vmem>>, vector<8x64xf32>,
    %59 = vector.extract_strided_slice %34 {offsets = [0, 64], sizes = [8, 64], strides = [1, 1]} : vector<16x128xf32> to vector<8x64xf32>
    %60 = vector.extract_strided_slice %35 {offsets = [0, 64], sizes = [8, 64], strides = [1, 1]} : vector<16x128xf32> to vector<8x64xf32>
    %61 = vector.extract_strided_slice %36 {offsets = [0, 64], sizes = [8, 64], strides = [1, 1]} : vector<16x128xf32> to vector<8x64xf32>
    %62 = tpu.transpose %60, [1, 0] : vector<8x64xf32> -> vector<64x8xf32>
    %cst_25 = arith.constant dense<0.000000e+00> : vector<8x8xf32>
    %63 = tpu.matmul %59, %62, %cst_25 {dimension_numbers = #tpu.dot_dimension_numbers<[1], [0], [0], [1], [0, 0, 1, 1], [], []>} : vector<8x64xf32>, vector<64x8xf32>, vector<8x8xf32> -> vector<8x8xf32>
    %cst_26 = arith.constant 1.250000e-01 : f32
    %64 = vector.broadcast %cst_26 : f32 to vector<8x8xf32>
    %65 = arith.mulf %63, %64 : vector<8x8xf32>
    %66 = vector.broadcast %37 : vector<1x8xf32> to vector<8x8xf32>
    %67 = arith.addf %65, %66 : vector<8x8xf32>
    %cst_27 = arith.constant dense<0xFF800000> : vector<8xf32>
    %68 = vector.multi_reduction <maximumf>, %67, %cst_27 [1] : vector<8x8xf32> to vector<8xf32>
    %69 = vector.shape_cast %68 : vector<8xf32> to vector<8x1xf32>
    %70 = vector.broadcast %69 : vector<8x1xf32> to vector<8x8xf32>
    %71 = arith.subf %67, %70 : vector<8x8xf32>
    %72 = math.exp %71 : vector<8x8xf32>
    %cst_28 = arith.constant dense<0.000000e+00> : vector<8xf32>
    %73 = vector.multi_reduction <add>, %72, %cst_28 [1] : vector<8x8xf32> to vector<8xf32>
    %74 = vector.shape_cast %73 : vector<8xf32> to vector<8x1xf32>
    %75 = tpu.reciprocal %74 {approx = true} : vector<8x1xf32> -> vector<8x1xf32>
    %76 = vector.broadcast %75 : vector<8x1xf32> to vector<8x8xf32>
    %77 = arith.mulf %72, %76 : vector<8x8xf32>
    %cst_29 = arith.constant dense<0.000000e+00> : vector<8x64xf32>
    %78 = tpu.matmul %77, %61, %cst_29 {dimension_numbers = #tpu.dot_dimension_numbers<[1], [0], [0], [1], [0, 0, 1, 1], [], []>} : vector<8x8xf32>, vector<8x64xf32>, vector<8x64xf32> -> vector<8x64xf32>
    %c0_30 = arith.constant 0 : index
    %c64 = arith.constant 64 : index
    %79 = vector.load %arg22[%c0_30, %c64] : memref<16x128xf32, #tpu.memory_space<vmem>>, vector<8x64xf32>
    tpu.vector_store %arg22[%c0_30, %c64], %78 {strides = array<i32>} : memref<16x128xf32, #tpu.memory_space<vmem>>, vector<8x64xf32>,
    %80 = vector.extract_strided_slice %25 {offsets = [1, 0], sizes = [1, 8], strides = [1, 1]} : vector<2x8xf32> to vector<1x8xf32>
    %81 = vector.extract_strided_slice %34 {offsets = [8, 0], sizes = [8, 64], strides = [1, 1]} : vector<16x128xf32> to vector<8x64xf32>
    %82 = vector.extract_strided_slice %35 {offsets = [8, 0], sizes = [8, 64], strides = [1, 1]} : vector<16x128xf32> to vector<8x64xf32>
    %83 = vector.extract_strided_slice %36 {offsets = [8, 0], sizes = [8, 64], strides = [1, 1]} : vector<16x128xf32> to vector<8x64xf32>
    %84 = tpu.transpose %82, [1, 0] : vector<8x64xf32> -> vector<64x8xf32>
    %cst_31 = arith.constant dense<0.000000e+00> : vector<8x8xf32>
    %85 = tpu.matmul %81, %84, %cst_31 {dimension_numbers = #tpu.dot_dimension_numbers<[1], [0], [0], [1], [0, 0, 1, 1], [], []>} : vector<8x64xf32>, vector<64x8xf32>, vector<8x8xf32> -> vector<8x8xf32>
    %cst_32 = arith.constant 1.250000e-01 : f32
    %86 = vector.broadcast %cst_32 : f32 to vector<8x8xf32>
    %87 = arith.mulf %85, %86 : vector<8x8xf32>
    %88 = vector.broadcast %80 : vector<1x8xf32> to vector<8x8xf32>
    %89 = arith.addf %87, %88 : vector<8x8xf32>
    %cst_33 = arith.constant dense<0xFF800000> : vector<8xf32>
    %90 = vector.multi_reduction <maximumf>, %89, %cst_33 [1] : vector<8x8xf32> to vector<8xf32>
    %91 = vector.shape_cast %90 : vector<8xf32> to vector<8x1xf32>
    %92 = vector.broadcast %91 : vector<8x1xf32> to vector<8x8xf32>
    %93 = arith.subf %89, %92 : vector<8x8xf32>
    %94 = math.exp %93 : vector<8x8xf32>
    %cst_34 = arith.constant dense<0.000000e+00> : vector<8xf32>
    %95 = vector.multi_reduction <add>, %94, %cst_34 [1] : vector<8x8xf32> to vector<8xf32>
    %96 = vector.shape_cast %95 : vector<8xf32> to vector<8x1xf32>
    %97 = tpu.reciprocal %96 {approx = true} : vector<8x1xf32> -> vector<8x1xf32>
    %98 = vector.broadcast %97 : vector<8x1xf32> to vector<8x8xf32>
    %99 = arith.mulf %94, %98 : vector<8x8xf32>
    %cst_35 = arith.constant dense<0.000000e+00> : vector<8x64xf32>
    %100 = tpu.matmul %99, %83, %cst_35 {dimension_numbers = #tpu.dot_dimension_numbers<[1], [0], [0], [1], [0, 0, 1, 1], [], []>} : vector<8x8xf32>, vector<8x64xf32>, vector<8x64xf32> -> vector<8x64xf32>
    %c8 = arith.constant 8 : index
    %c0_36 = arith.constant 0 : index
    %101 = vector.load %arg22[%c8, %c0_36] : memref<16x128xf32, #tpu.memory_space<vmem>>, vector<8x64xf32>
    tpu.vector_store %arg22[%c8, %c0_36], %100 {strides = array<i32>} : memref<16x128xf32, #tpu.memory_space<vmem>>, vector<8x64xf32>,
    %102 = vector.extract_strided_slice %34 {offsets = [8, 64], sizes = [8, 64], strides = [1, 1]} : vector<16x128xf32> to vector<8x64xf32>
    %103 = vector.extract_strided_slice %35 {offsets = [8, 64], sizes = [8, 64], strides = [1, 1]} : vector<16x128xf32> to vector<8x64xf32>
    %104 = vector.extract_strided_slice %36 {offsets = [8, 64], sizes = [8, 64], strides = [1, 1]} : vector<16x128xf32> to vector<8x64xf32>
    %105 = tpu.transpose %103, [1, 0] : vector<8x64xf32> -> vector<64x8xf32>
    %cst_37 = arith.constant dense<0.000000e+00> : vector<8x8xf32>
    %106 = tpu.matmul %102, %105, %cst_37 {dimension_numbers = #tpu.dot_dimension_numbers<[1], [0], [0], [1], [0, 0, 1, 1], [], []>} : vector<8x64xf32>, vector<64x8xf32>, vector<8x8xf32> -> vector<8x8xf32>
    %cst_38 = arith.constant 1.250000e-01 : f32
    %107 = vector.broadcast %cst_38 : f32 to vector<8x8xf32>
    %108 = arith.mulf %106, %107 : vector<8x8xf32>
    %109 = vector.broadcast %80 : vector<1x8xf32> to vector<8x8xf32>
    %110 = arith.addf %108, %109 : vector<8x8xf32>
    %cst_39 = arith.constant dense<0xFF800000> : vector<8xf32>
    %111 = vector.multi_reduction <maximumf>, %110, %cst_39 [1] : vector<8x8xf32> to vector<8xf32>
    %112 = vector.shape_cast %111 : vector<8xf32> to vector<8x1xf32>
    %113 = vector.broadcast %112 : vector<8x1xf32> to vector<8x8xf32>
    %114 = arith.subf %110, %113 : vector<8x8xf32>
    %115 = math.exp %114 : vector<8x8xf32>
    %cst_40 = arith.constant dense<0.000000e+00> : vector<8xf32>
    %116 = vector.multi_reduction <add>, %115, %cst_40 [1] : vector<8x8xf32> to vector<8xf32>
    %117 = vector.shape_cast %116 : vector<8xf32> to vector<8x1xf32>
    %118 = tpu.reciprocal %117 {approx = true} : vector<8x1xf32> -> vector<8x1xf32>
    %119 = vector.broadcast %118 : vector<8x1xf32> to vector<8x8xf32>
    %120 = arith.mulf %115, %119 : vector<8x8xf32>
    %cst_41 = arith.constant dense<0.000000e+00> : vector<8x64xf32>
    %121 = tpu.matmul %120, %104, %cst_41 {dimension_numbers = #tpu.dot_dimension_numbers<[1], [0], [0], [1], [0, 0, 1, 1], [], []>} : vector<8x8xf32>, vector<8x64xf32>, vector<8x64xf32> -> vector<8x64xf32>
    %c8_42 = arith.constant 8 : index
    %c64_43 = arith.constant 64 : index
    %122 = vector.load %arg22[%c8_42, %c64_43] : memref<16x128xf32, #tpu.memory_space<vmem>>, vector<8x64xf32>
    tpu.vector_store %arg22[%c8_42, %c64_43], %121 {strides = array<i32>} : memref<16x128xf32, #tpu.memory_space<vmem>>, vector<8x64xf32>,
    %c0_44 = arith.constant 0 : index
    %c0_45 = arith.constant 0 : index
    %123 = vector.load %arg22[%c0_44, %c0_45] : memref<16x128xf32, #tpu.memory_space<vmem>>, vector<16x128xf32>
    %c0_46 = arith.constant 0 : index
    %c0_47 = arith.constant 0 : index
    %c0_48 = arith.constant 0 : index
    %124 = vector.load %arg7[%c0_46, %c0_47, %c0_48] : memref<2x128x128xbf16, #tpu.memory_space<vmem>>, vector<1x128x128xbf16>
    %125 = vector.shape_cast %124 : vector<1x128x128xbf16> to vector<128x128xbf16>
    %126 = arith.truncf %123 : vector<16x128xf32> to vector<16x128xbf16>
    %cst_49 = arith.constant dense<0.000000e+00> : vector<16x128xf32>
    %127 = tpu.matmul %126, %125, %cst_49 {dimension_numbers = #tpu.dot_dimension_numbers<[1], [0], [0], [1], [0, 0, 1, 1], [], []>} : vector<16x128xbf16>, vector<128x128xbf16>, vector<16x128xf32> -> vector<16x128xf32>
    %c0_50 = arith.constant 0 : index
    %c0_51 = arith.constant 0 : index
    %c0_52 = arith.constant 0 : index
    %128 = vector.load %arg8[%c0_50, %c0_51, %c0_52] : memref<2x1x128xf32, #tpu.memory_space<vmem>>, vector<1x1x128xf32>
    %129 = vector.shape_cast %128 : vector<1x1x128xf32> to vector<1x128xf32>
    %130 = vector.broadcast %129 : vector<1x128xf32> to vector<16x128xf32>
    %131 = arith.addf %127, %130 : vector<16x128xf32>
    %132 = arith.addf %131, %24 : vector<16x128xf32>
    %c0_53 = arith.constant 0 : index
    %c0_54 = arith.constant 0 : index
    %c0_55 = arith.constant 0 : index
    %133 = vector.load %arg9[%c0_53, %c0_54, %c0_55] : memref<2x1x128xf32, #tpu.memory_space<vmem>>, vector<1x1x128xf32>
    %134 = vector.shape_cast %133 : vector<1x1x128xf32> to vector<1x128xf32>
    %c0_56 = arith.constant 0 : index
    %c0_57 = arith.constant 0 : index
    %c0_58 = arith.constant 0 : index
    %135 = vector.load %arg10[%c0_56, %c0_57, %c0_58] : memref<2x1x128xf32, #tpu.memory_space<vmem>>, vector<1x1x128xf32>
    %136 = vector.shape_cast %135 : vector<1x1x128xf32> to vector<1x128xf32>
    %cst_59 = arith.constant dense<0.000000e+00> : vector<16xf32>
    %137 = vector.multi_reduction <add>, %132, %cst_59 [1] : vector<16x128xf32> to vector<16xf32>
    %138 = vector.shape_cast %137 : vector<16xf32> to vector<16x1xf32>
    %cst_60 = arith.constant 1.280000e+02 : f32
    %139 = vector.broadcast %cst_60 : f32 to vector<16x1xf32>
    %140 = arith.divf %138, %139 : vector<16x1xf32>
    %141 = vector.broadcast %140 : vector<16x1xf32> to vector<16x128xf32>
    %142 = arith.subf %132, %141 : vector<16x128xf32>
    %143 = arith.mulf %142, %142 : vector<16x128xf32>
    %cst_61 = arith.constant dense<0.000000e+00> : vector<16xf32>
    %144 = vector.multi_reduction <add>, %143, %cst_61 [1] : vector<16x128xf32> to vector<16xf32>
    %145 = vector.shape_cast %144 : vector<16xf32> to vector<16x1xf32>
    %cst_62 = arith.constant 1.280000e+02 : f32
    %146 = vector.broadcast %cst_62 : f32 to vector<16x1xf32>
    %147 = arith.divf %145, %146 : vector<16x1xf32>
    %148 = vector.broadcast %140 : vector<16x1xf32> to vector<16x128xf32>
    %149 = arith.subf %132, %148 : vector<16x128xf32>
    %cst_63 = arith.constant 9.99999996E-13 : f32
    %150 = vector.broadcast %cst_63 : f32 to vector<16x1xf32>
    %151 = arith.addf %147, %150 : vector<16x1xf32>
    %152 = math.rsqrt %151 : vector<16x1xf32>
    %153 = vector.broadcast %152 : vector<16x1xf32> to vector<16x128xf32>
    %154 = arith.mulf %149, %153 : vector<16x128xf32>
    %155 = vector.broadcast %134 : vector<1x128xf32> to vector<16x128xf32>
    %156 = arith.mulf %154, %155 : vector<16x128xf32>
    %157 = vector.broadcast %136 : vector<1x128xf32> to vector<16x128xf32>
    %158 = arith.addf %156, %157 : vector<16x128xf32>
    %c0_64 = arith.constant 0 : index
    %c0_65 = arith.constant 0 : index
    %c0_66 = arith.constant 0 : index
    %159 = vector.load %arg11[%c0_64, %c0_65, %c0_66] : memref<2x128x512xbf16, #tpu.memory_space<vmem>>, vector<1x128x512xbf16>
    %160 = vector.shape_cast %159 : vector<1x128x512xbf16> to vector<128x512xbf16>
    %161 = arith.truncf %158 : vector<16x128xf32> to vector<16x128xbf16>
    %cst_67 = arith.constant dense<0.000000e+00> : vector<16x512xf32>
    %162 = tpu.matmul %161, %160, %cst_67 {dimension_numbers = #tpu.dot_dimension_numbers<[1], [0], [0], [1], [0, 0, 1, 1], [], []>} : vector<16x128xbf16>, vector<128x512xbf16>, vector<16x512xf32> -> vector<16x512xf32>
    %c0_68 = arith.constant 0 : index
    %c0_69 = arith.constant 0 : index
    %c0_70 = arith.constant 0 : index
    %163 = vector.load %arg12[%c0_68, %c0_69, %c0_70] : memref<2x1x512xf32, #tpu.memory_space<vmem>>, vector<1x1x512xf32>
    %164 = vector.shape_cast %163 : vector<1x1x512xf32> to vector<1x512xf32>
    %165 = vector.broadcast %164 : vector<1x512xf32> to vector<16x512xf32>
    %166 = arith.addf %162, %165 : vector<16x512xf32>
    %167 = arith.mulf %166, %166 : vector<16x512xf32>
    %168 = arith.mulf %166, %167 : vector<16x512xf32>
    %cst_71 = arith.constant 4.471500e-02 : f32
    %169 = vector.broadcast %cst_71 : f32 to vector<16x512xf32>
    %170 = arith.mulf %169, %168 : vector<16x512xf32>
    %171 = arith.addf %166, %170 : vector<16x512xf32>
    %cst_72 = arith.constant 0.797884583 : f32
    %172 = vector.broadcast %cst_72 : f32 to vector<16x512xf32>
    %173 = arith.mulf %172, %171 : vector<16x512xf32>
    %174 = math.tanh %173 : vector<16x512xf32>
    %cst_73 = arith.constant 1.000000e+00 : f32
    %175 = vector.broadcast %cst_73 : f32 to vector<16x512xf32>
    %176 = arith.addf %175, %174 : vector<16x512xf32>
    %cst_74 = arith.constant 5.000000e-01 : f32
    %177 = vector.broadcast %cst_74 : f32 to vector<16x512xf32>
    %178 = arith.mulf %177, %176 : vector<16x512xf32>
    %179 = arith.mulf %166, %178 : vector<16x512xf32>
    %c0_75 = arith.constant 0 : index
    %c0_76 = arith.constant 0 : index
    %c0_77 = arith.constant 0 : index
    %180 = vector.load %arg13[%c0_75, %c0_76, %c0_77] : memref<2x512x128xbf16, #tpu.memory_space<vmem>>, vector<1x512x128xbf16>
    %181 = vector.shape_cast %180 : vector<1x512x128xbf16> to vector<512x128xbf16>
    %182 = arith.truncf %179 : vector<16x512xf32> to vector<16x512xbf16>
    %cst_78 = arith.constant dense<0.000000e+00> : vector<16x128xf32>
    %183 = tpu.matmul %182, %181, %cst_78 {dimension_numbers = #tpu.dot_dimension_numbers<[1], [0], [0], [1], [0, 0, 1, 1], [], []>} : vector<16x512xbf16>, vector<512x128xbf16>, vector<16x128xf32> -> vector<16x128xf32>
    %c0_79 = arith.constant 0 : index
    %c0_80 = arith.constant 0 : index
    %c0_81 = arith.constant 0 : index
    %184 = vector.load %arg14[%c0_79, %c0_80, %c0_81] : memref<2x1x128xf32, #tpu.memory_space<vmem>>, vector<1x1x128xf32>
    %185 = vector.shape_cast %184 : vector<1x1x128xf32> to vector<1x128xf32>
    %186 = vector.broadcast %185 : vector<1x128xf32> to vector<16x128xf32>
    %187 = arith.addf %183, %186 : vector<16x128xf32>
    %188 = arith.addf %187, %158 : vector<16x128xf32>
    %c0_82 = arith.constant 0 : index
    %c0_83 = arith.constant 0 : index
    %c0_84 = arith.constant 0 : index
    %189 = vector.load %arg15[%c0_82, %c0_83, %c0_84] : memref<2x1x128xf32, #tpu.memory_space<vmem>>, vector<1x1x128xf32>
    %190 = vector.shape_cast %189 : vector<1x1x128xf32> to vector<1x128xf32>
    %c0_85 = arith.constant 0 : index
    %c0_86 = arith.constant 0 : index
    %c0_87 = arith.constant 0 : index
    %191 = vector.load %arg16[%c0_85, %c0_86, %c0_87] : memref<2x1x128xf32, #tpu.memory_space<vmem>>, vector<1x1x128xf32>
    %192 = vector.shape_cast %191 : vector<1x1x128xf32> to vector<1x128xf32>
    %cst_88 = arith.constant dense<0.000000e+00> : vector<16xf32>
    %193 = vector.multi_reduction <add>, %188, %cst_88 [1] : vector<16x128xf32> to vector<16xf32>
    %194 = vector.shape_cast %193 : vector<16xf32> to vector<16x1xf32>
    %cst_89 = arith.constant 1.280000e+02 : f32
    %195 = vector.broadcast %cst_89 : f32 to vector<16x1xf32>
    %196 = arith.divf %194, %195 : vector<16x1xf32>
    %197 = vector.broadcast %196 : vector<16x1xf32> to vector<16x128xf32>
    %198 = arith.subf %188, %197 : vector<16x128xf32>
    %199 = arith.mulf %198, %198 : vector<16x128xf32>
    %cst_90 = arith.constant dense<0.000000e+00> : vector<16xf32>
    %200 = vector.multi_reduction <add>, %199, %cst_90 [1] : vector<16x128xf32> to vector<16xf32>
    %201 = vector.shape_cast %200 : vector<16xf32> to vector<16x1xf32>
    %cst_91 = arith.constant 1.280000e+02 : f32
    %202 = vector.broadcast %cst_91 : f32 to vector<16x1xf32>
    %203 = arith.divf %201, %202 : vector<16x1xf32>
    %204 = vector.broadcast %196 : vector<16x1xf32> to vector<16x128xf32>
    %205 = arith.subf %188, %204 : vector<16x128xf32>
    %cst_92 = arith.constant 9.99999996E-13 : f32
    %206 = vector.broadcast %cst_92 : f32 to vector<16x1xf32>
    %207 = arith.addf %203, %206 : vector<16x1xf32>
    %208 = math.rsqrt %207 : vector<16x1xf32>
    %209 = vector.broadcast %208 : vector<16x1xf32> to vector<16x128xf32>
    %210 = arith.mulf %205, %209 : vector<16x128xf32>
    %211 = vector.broadcast %190 : vector<1x128xf32> to vector<16x128xf32>
    %212 = arith.mulf %210, %211 : vector<16x128xf32>
    %213 = vector.broadcast %192 : vector<1x128xf32> to vector<16x128xf32>
    %214 = arith.addf %212, %213 : vector<16x128xf32>
    %c1 = arith.constant 1 : index
    %c0_93 = arith.constant 0 : index
    %c0_94 = arith.constant 0 : index
    %215 = vector.load %arg5[%c1, %c0_93, %c0_94] : memref<2x128x384xbf16, #tpu.memory_space<vmem>>, vector<1x128x384xbf16>
    %216 = vector.shape_cast %215 : vector<1x128x384xbf16> to vector<128x384xbf16>
    %217 = arith.truncf %214 : vector<16x128xf32> to vector<16x128xbf16>
    %cst_95 = arith.constant dense<0.000000e+00> : vector<16x384xf32>
    %218 = tpu.matmul %217, %216, %cst_95 {dimension_numbers = #tpu.dot_dimension_numbers<[1], [0], [0], [1], [0, 0, 1, 1], [], []>} : vector<16x128xbf16>, vector<128x384xbf16>, vector<16x384xf32> -> vector<16x384xf32>
    %c1_96 = arith.constant 1 : index
    %c0_97 = arith.constant 0 : index
    %c0_98 = arith.constant 0 : index
    %219 = vector.load %arg6[%c1_96, %c0_97, %c0_98] : memref<2x1x384xf32, #tpu.memory_space<vmem>>, vector<1x1x384xf32>
    %220 = vector.shape_cast %219 : vector<1x1x384xf32> to vector<1x384xf32>
    %221 = vector.broadcast %220 : vector<1x384xf32> to vector<16x384xf32>
    %222 = arith.addf %218, %221 : vector<16x384xf32>
    %223 = vector.extract_strided_slice %222 {offsets = [0, 0], sizes = [16, 128], strides = [1, 1]} : vector<16x384xf32> to vector<16x128xf32>
    %224 = vector.extract_strided_slice %222 {offsets = [0, 128], sizes = [16, 128], strides = [1, 1]} : vector<16x384xf32> to vector<16x128xf32>
    %225 = vector.extract_strided_slice %222 {offsets = [0, 256], sizes = [16, 128], strides = [1, 1]} : vector<16x384xf32> to vector<16x128xf32>
    %226 = vector.extract_strided_slice %25 {offsets = [0, 0], sizes = [1, 8], strides = [1, 1]} : vector<2x8xf32> to vector<1x8xf32>
    %227 = vector.extract_strided_slice %223 {offsets = [0, 0], sizes = [8, 64], strides = [1, 1]} : vector<16x128xf32> to vector<8x64xf32>
    %228 = vector.extract_strided_slice %224 {offsets = [0, 0], sizes = [8, 64], strides = [1, 1]} : vector<16x128xf32> to vector<8x64xf32>
    %229 = vector.extract_strided_slice %225 {offsets = [0, 0], sizes = [8, 64], strides = [1, 1]} : vector<16x128xf32> to vector<8x64xf32>
    %230 = tpu.transpose %228, [1, 0] : vector<8x64xf32> -> vector<64x8xf32>
    %cst_99 = arith.constant dense<0.000000e+00> : vector<8x8xf32>
    %231 = tpu.matmul %227, %230, %cst_99 {dimension_numbers = #tpu.dot_dimension_numbers<[1], [0], [0], [1], [0, 0, 1, 1], [], []>} : vector<8x64xf32>, vector<64x8xf32>, vector<8x8xf32> -> vector<8x8xf32>
    %cst_100 = arith.constant 1.250000e-01 : f32
    %232 = vector.broadcast %cst_100 : f32 to vector<8x8xf32>
    %233 = arith.mulf %231, %232 : vector<8x8xf32>
    %234 = vector.broadcast %226 : vector<1x8xf32> to vector<8x8xf32>
    %235 = arith.addf %233, %234 : vector<8x8xf32>
    %cst_101 = arith.constant dense<0xFF800000> : vector<8xf32>
    %236 = vector.multi_reduction <maximumf>, %235, %cst_101 [1] : vector<8x8xf32> to vector<8xf32>
    %237 = vector.shape_cast %236 : vector<8xf32> to vector<8x1xf32>
    %238 = vector.broadcast %237 : vector<8x1xf32> to vector<8x8xf32>
    %239 = arith.subf %235, %238 : vector<8x8xf32>
    %240 = math.exp %239 : vector<8x8xf32>
    %cst_102 = arith.constant dense<0.000000e+00> : vector<8xf32>
    %241 = vector.multi_reduction <add>, %240, %cst_102 [1] : vector<8x8xf32> to vector<8xf32>
    %242 = vector.shape_cast %241 : vector<8xf32> to vector<8x1xf32>
    %243 = tpu.reciprocal %242 {approx = true} : vector<8x1xf32> -> vector<8x1xf32>
    %244 = vector.broadcast %243 : vector<8x1xf32> to vector<8x8xf32>
    %245 = arith.mulf %240, %244 : vector<8x8xf32>
    %cst_103 = arith.constant dense<0.000000e+00> : vector<8x64xf32>
    %246 = tpu.matmul %245, %229, %cst_103 {dimension_numbers = #tpu.dot_dimension_numbers<[1], [0], [0], [1], [0, 0, 1, 1], [], []>} : vector<8x8xf32>, vector<8x64xf32>, vector<8x64xf32> -> vector<8x64xf32>
    %c0_104 = arith.constant 0 : index
    %c0_105 = arith.constant 0 : index
    %247 = vector.load %arg22[%c0_104, %c0_105] : memref<16x128xf32, #tpu.memory_space<vmem>>, vector<8x64xf32>
    tpu.vector_store %arg22[%c0_104, %c0_105], %246 {strides = array<i32>} : memref<16x128xf32, #tpu.memory_space<vmem>>, vector<8x64xf32>,
    %248 = vector.extract_strided_slice %223 {offsets = [0, 64], sizes = [8, 64], strides = [1, 1]} : vector<16x128xf32> to vector<8x64xf32>
    %249 = vector.extract_strided_slice %224 {offsets = [0, 64], sizes = [8, 64], strides = [1, 1]} : vector<16x128xf32> to vector<8x64xf32>
    %250 = vector.extract_strided_slice %225 {offsets = [0, 64], sizes = [8, 64], strides = [1, 1]} : vector<16x128xf32> to vector<8x64xf32>
    %251 = tpu.transpose %249, [1, 0] : vector<8x64xf32> -> vector<64x8xf32>
    %cst_106 = arith.constant dense<0.000000e+00> : vector<8x8xf32>
    %252 = tpu.matmul %248, %251, %cst_106 {dimension_numbers = #tpu.dot_dimension_numbers<[1], [0], [0], [1], [0, 0, 1, 1], [], []>} : vector<8x64xf32>, vector<64x8xf32>, vector<8x8xf32> -> vector<8x8xf32>
    %cst_107 = arith.constant 1.250000e-01 : f32
    %253 = vector.broadcast %cst_107 : f32 to vector<8x8xf32>
    %254 = arith.mulf %252, %253 : vector<8x8xf32>
    %255 = vector.broadcast %226 : vector<1x8xf32> to vector<8x8xf32>
    %256 = arith.addf %254, %255 : vector<8x8xf32>
    %cst_108 = arith.constant dense<0xFF800000> : vector<8xf32>
    %257 = vector.multi_reduction <maximumf>, %256, %cst_108 [1] : vector<8x8xf32> to vector<8xf32>
    %258 = vector.shape_cast %257 : vector<8xf32> to vector<8x1xf32>
    %259 = vector.broadcast %258 : vector<8x1xf32> to vector<8x8xf32>
    %260 = arith.subf %256, %259 : vector<8x8xf32>
    %261 = math.exp %260 : vector<8x8xf32>
    %cst_109 = arith.constant dense<0.000000e+00> : vector<8xf32>
    %262 = vector.multi_reduction <add>, %261, %cst_109 [1] : vector<8x8xf32> to vector<8xf32>
    %263 = vector.shape_cast %262 : vector<8xf32> to vector<8x1xf32>
    %264 = tpu.reciprocal %263 {approx = true} : vector<8x1xf32> -> vector<8x1xf32>
    %265 = vector.broadcast %264 : vector<8x1xf32> to vector<8x8xf32>
    %266 = arith.mulf %261, %265 : vector<8x8xf32>
    %cst_110 = arith.constant dense<0.000000e+00> : vector<8x64xf32>
    %267 = tpu.matmul %266, %250, %cst_110 {dimension_numbers = #tpu.dot_dimension_numbers<[1], [0], [0], [1], [0, 0, 1, 1], [], []>} : vector<8x8xf32>, vector<8x64xf32>, vector<8x64xf32> -> vector<8x64xf32>
    %c0_111 = arith.constant 0 : index
    %c64_112 = arith.constant 64 : index
    %268 = vector.load %arg22[%c0_111, %c64_112] : memref<16x128xf32, #tpu.memory_space<vmem>>, vector<8x64xf32>
    tpu.vector_store %arg22[%c0_111, %c64_112], %267 {strides = array<i32>} : memref<16x128xf32, #tpu.memory_space<vmem>>, vector<8x64xf32>,
    %269 = vector.extract_strided_slice %25 {offsets = [1, 0], sizes = [1, 8], strides = [1, 1]} : vector<2x8xf32> to vector<1x8xf32>
    %270 = vector.extract_strided_slice %223 {offsets = [8, 0], sizes = [8, 64], strides = [1, 1]} : vector<16x128xf32> to vector<8x64xf32>
    %271 = vector.extract_strided_slice %224 {offsets = [8, 0], sizes = [8, 64], strides = [1, 1]} : vector<16x128xf32> to vector<8x64xf32>
    %272 = vector.extract_strided_slice %225 {offsets = [8, 0], sizes = [8, 64], strides = [1, 1]} : vector<16x128xf32> to vector<8x64xf32>
    %273 = tpu.transpose %271, [1, 0] : vector<8x64xf32> -> vector<64x8xf32>
    %cst_113 = arith.constant dense<0.000000e+00> : vector<8x8xf32>
    %274 = tpu.matmul %270, %273, %cst_113 {dimension_numbers = #tpu.dot_dimension_numbers<[1], [0], [0], [1], [0, 0, 1, 1], [], []>} : vector<8x64xf32>, vector<64x8xf32>, vector<8x8xf32> -> vector<8x8xf32>
    %cst_114 = arith.constant 1.250000e-01 : f32
    %275 = vector.broadcast %cst_114 : f32 to vector<8x8xf32>
    %276 = arith.mulf %274, %275 : vector<8x8xf32>
    %277 = vector.broadcast %269 : vector<1x8xf32> to vector<8x8xf32>
    %278 = arith.addf %276, %277 : vector<8x8xf32>
    %cst_115 = arith.constant dense<0xFF800000> : vector<8xf32>
    %279 = vector.multi_reduction <maximumf>, %278, %cst_115 [1] : vector<8x8xf32> to vector<8xf32>
    %280 = vector.shape_cast %279 : vector<8xf32> to vector<8x1xf32>
    %281 = vector.broadcast %280 : vector<8x1xf32> to vector<8x8xf32>
    %282 = arith.subf %278, %281 : vector<8x8xf32>
    %283 = math.exp %282 : vector<8x8xf32>
    %cst_116 = arith.constant dense<0.000000e+00> : vector<8xf32>
    %284 = vector.multi_reduction <add>, %283, %cst_116 [1] : vector<8x8xf32> to vector<8xf32>
    %285 = vector.shape_cast %284 : vector<8xf32> to vector<8x1xf32>
    %286 = tpu.reciprocal %285 {approx = true} : vector<8x1xf32> -> vector<8x1xf32>
    %287 = vector.broadcast %286 : vector<8x1xf32> to vector<8x8xf32>
    %288 = arith.mulf %283, %287 : vector<8x8xf32>
    %cst_117 = arith.constant dense<0.000000e+00> : vector<8x64xf32>
    %289 = tpu.matmul %288, %272, %cst_117 {dimension_numbers = #tpu.dot_dimension_numbers<[1], [0], [0], [1], [0, 0, 1, 1], [], []>} : vector<8x8xf32>, vector<8x64xf32>, vector<8x64xf32> -> vector<8x64xf32>
    %c8_118 = arith.constant 8 : index
    %c0_119 = arith.constant 0 : index
    %290 = vector.load %arg22[%c8_118, %c0_119] : memref<16x128xf32, #tpu.memory_space<vmem>>, vector<8x64xf32>
    tpu.vector_store %arg22[%c8_118, %c0_119], %289 {strides = array<i32>} : memref<16x128xf32, #tpu.memory_space<vmem>>, vector<8x64xf32>,
    %291 = vector.extract_strided_slice %223 {offsets = [8, 64], sizes = [8, 64], strides = [1, 1]} : vector<16x128xf32> to vector<8x64xf32>
    %292 = vector.extract_strided_slice %224 {offsets = [8, 64], sizes = [8, 64], strides = [1, 1]} : vector<16x128xf32> to vector<8x64xf32>
    %293 = vector.extract_strided_slice %225 {offsets = [8, 64], sizes = [8, 64], strides = [1, 1]} : vector<16x128xf32> to vector<8x64xf32>
    %294 = tpu.transpose %292, [1, 0] : vector<8x64xf32> -> vector<64x8xf32>
    %cst_120 = arith.constant dense<0.000000e+00> : vector<8x8xf32>
    %295 = tpu.matmul %291, %294, %cst_120 {dimension_numbers = #tpu.dot_dimension_numbers<[1], [0], [0], [1], [0, 0, 1, 1], [], []>} : vector<8x64xf32>, vector<64x8xf32>, vector<8x8xf32> -> vector<8x8xf32>
    %cst_121 = arith.constant 1.250000e-01 : f32
    %296 = vector.broadcast %cst_121 : f32 to vector<8x8xf32>
    %297 = arith.mulf %295, %296 : vector<8x8xf32>
    %298 = vector.broadcast %269 : vector<1x8xf32> to vector<8x8xf32>
    %299 = arith.addf %297, %298 : vector<8x8xf32>
    %cst_122 = arith.constant dense<0xFF800000> : vector<8xf32>
    %300 = vector.multi_reduction <maximumf>, %299, %cst_122 [1] : vector<8x8xf32> to vector<8xf32>
    %301 = vector.shape_cast %300 : vector<8xf32> to vector<8x1xf32>
    %302 = vector.broadcast %301 : vector<8x1xf32> to vector<8x8xf32>
    %303 = arith.subf %299, %302 : vector<8x8xf32>
    %304 = math.exp %303 : vector<8x8xf32>
    %cst_123 = arith.constant dense<0.000000e+00> : vector<8xf32>
    %305 = vector.multi_reduction <add>, %304, %cst_123 [1] : vector<8x8xf32> to vector<8xf32>
    %306 = vector.shape_cast %305 : vector<8xf32> to vector<8x1xf32>
    %307 = tpu.reciprocal %306 {approx = true} : vector<8x1xf32> -> vector<8x1xf32>
    %308 = vector.broadcast %307 : vector<8x1xf32> to vector<8x8xf32>
    %309 = arith.mulf %304, %308 : vector<8x8xf32>
    %cst_124 = arith.constant dense<0.000000e+00> : vector<8x64xf32>
    %310 = tpu.matmul %309, %293, %cst_124 {dimension_numbers = #tpu.dot_dimension_numbers<[1], [0], [0], [1], [0, 0, 1, 1], [], []>} : vector<8x8xf32>, vector<8x64xf32>, vector<8x64xf32> -> vector<8x64xf32>
    %c8_125 = arith.constant 8 : index
    %c64_126 = arith.constant 64 : index
    %311 = vector.load %arg22[%c8_125, %c64_126] : memref<16x128xf32, #tpu.memory_space<vmem>>, vector<8x64xf32>
    tpu.vector_store %arg22[%c8_125, %c64_126], %310 {strides = array<i32>} : memref<16x128xf32, #tpu.memory_space<vmem>>, vector<8x64xf32>,
    %c0_127 = arith.constant 0 : index
    %c0_128 = arith.constant 0 : index
    %312 = vector.load %arg22[%c0_127, %c0_128] : memref<16x128xf32, #tpu.memory_space<vmem>>, vector<16x128xf32>
    %c1_129 = arith.constant 1 : index
    %c0_130 = arith.constant 0 : index
    %c0_131 = arith.constant 0 : index
    %313 = vector.load %arg7[%c1_129, %c0_130, %c0_131] : memref<2x128x128xbf16, #tpu.memory_space<vmem>>, vector<1x128x128xbf16>
    %314 = vector.shape_cast %313 : vector<1x128x128xbf16> to vector<128x128xbf16>
    %315 = arith.truncf %312 : vector<16x128xf32> to vector<16x128xbf16>
    %cst_132 = arith.constant dense<0.000000e+00> : vector<16x128xf32>
    %316 = tpu.matmul %315, %314, %cst_132 {dimension_numbers = #tpu.dot_dimension_numbers<[1], [0], [0], [1], [0, 0, 1, 1], [], []>} : vector<16x128xbf16>, vector<128x128xbf16>, vector<16x128xf32> -> vector<16x128xf32>
    %c1_133 = arith.constant 1 : index
    %c0_134 = arith.constant 0 : index
    %c0_135 = arith.constant 0 : index
    %317 = vector.load %arg8[%c1_133, %c0_134, %c0_135] : memref<2x1x128xf32, #tpu.memory_space<vmem>>, vector<1x1x128xf32>
    %318 = vector.shape_cast %317 : vector<1x1x128xf32> to vector<1x128xf32>
    %319 = vector.broadcast %318 : vector<1x128xf32> to vector<16x128xf32>
    %320 = arith.addf %316, %319 : vector<16x128xf32>
    %321 = arith.addf %320, %214 : vector<16x128xf32>
    %c1_136 = arith.constant 1 : index
    %c0_137 = arith.constant 0 : index
    %c0_138 = arith.constant 0 : index
    %322 = vector.load %arg9[%c1_136, %c0_137, %c0_138] : memref<2x1x128xf32, #tpu.memory_space<vmem>>, vector<1x1x128xf32>
    %323 = vector.shape_cast %322 : vector<1x1x128xf32> to vector<1x128xf32>
    %c1_139 = arith.constant 1 : index
    %c0_140 = arith.constant 0 : index
    %c0_141 = arith.constant 0 : index
    %324 = vector.load %arg10[%c1_139, %c0_140, %c0_141] : memref<2x1x128xf32, #tpu.memory_space<vmem>>, vector<1x1x128xf32>
    %325 = vector.shape_cast %324 : vector<1x1x128xf32> to vector<1x128xf32>
    %cst_142 = arith.constant dense<0.000000e+00> : vector<16xf32>
    %326 = vector.multi_reduction <add>, %321, %cst_142 [1] : vector<16x128xf32> to vector<16xf32>
    %327 = vector.shape_cast %326 : vector<16xf32> to vector<16x1xf32>
    %cst_143 = arith.constant 1.280000e+02 : f32
    %328 = vector.broadcast %cst_143 : f32 to vector<16x1xf32>
    %329 = arith.divf %327, %328 : vector<16x1xf32>
    %330 = vector.broadcast %329 : vector<16x1xf32> to vector<16x128xf32>
    %331 = arith.subf %321, %330 : vector<16x128xf32>
    %332 = arith.mulf %331, %331 : vector<16x128xf32>
    %cst_144 = arith.constant dense<0.000000e+00> : vector<16xf32>
    %333 = vector.multi_reduction <add>, %332, %cst_144 [1] : vector<16x128xf32> to vector<16xf32>
    %334 = vector.shape_cast %333 : vector<16xf32> to vector<16x1xf32>
    %cst_145 = arith.constant 1.280000e+02 : f32
    %335 = vector.broadcast %cst_145 : f32 to vector<16x1xf32>
    %336 = arith.divf %334, %335 : vector<16x1xf32>
    %337 = vector.broadcast %329 : vector<16x1xf32> to vector<16x128xf32>
    %338 = arith.subf %321, %337 : vector<16x128xf32>
    %cst_146 = arith.constant 9.99999996E-13 : f32
    %339 = vector.broadcast %cst_146 : f32 to vector<16x1xf32>
    %340 = arith.addf %336, %339 : vector<16x1xf32>
    %341 = math.rsqrt %340 : vector<16x1xf32>
    %342 = vector.broadcast %341 : vector<16x1xf32> to vector<16x128xf32>
    %343 = arith.mulf %338, %342 : vector<16x128xf32>
    %344 = vector.broadcast %323 : vector<1x128xf32> to vector<16x128xf32>
    %345 = arith.mulf %343, %344 : vector<16x128xf32>
    %346 = vector.broadcast %325 : vector<1x128xf32> to vector<16x128xf32>
    %347 = arith.addf %345, %346 : vector<16x128xf32>
    %c1_147 = arith.constant 1 : index
    %c0_148 = arith.constant 0 : index
    %c0_149 = arith.constant 0 : index
    %348 = vector.load %arg11[%c1_147, %c0_148, %c0_149] : memref<2x128x512xbf16, #tpu.memory_space<vmem>>, vector<1x128x512xbf16>
    %349 = vector.shape_cast %348 : vector<1x128x512xbf16> to vector<128x512xbf16>
    %350 = arith.truncf %347 : vector<16x128xf32> to vector<16x128xbf16>
    %cst_150 = arith.constant dense<0.000000e+00> : vector<16x512xf32>
    %351 = tpu.matmul %350, %349, %cst_150 {dimension_numbers = #tpu.dot_dimension_numbers<[1], [0], [0], [1], [0, 0, 1, 1], [], []>} : vector<16x128xbf16>, vector<128x512xbf16>, vector<16x512xf32> -> vector<16x512xf32>
    %c1_151 = arith.constant 1 : index
    %c0_152 = arith.constant 0 : index
    %c0_153 = arith.constant 0 : index
    %352 = vector.load %arg12[%c1_151, %c0_152, %c0_153] : memref<2x1x512xf32, #tpu.memory_space<vmem>>, vector<1x1x512xf32>
    %353 = vector.shape_cast %352 : vector<1x1x512xf32> to vector<1x512xf32>
    %354 = vector.broadcast %353 : vector<1x512xf32> to vector<16x512xf32>
    %355 = arith.addf %351, %354 : vector<16x512xf32>
    %356 = arith.mulf %355, %355 : vector<16x512xf32>
    %357 = arith.mulf %355, %356 : vector<16x512xf32>
    %cst_154 = arith.constant 4.471500e-02 : f32
    %358 = vector.broadcast %cst_154 : f32 to vector<16x512xf32>
    %359 = arith.mulf %358, %357 : vector<16x512xf32>
    %360 = arith.addf %355, %359 : vector<16x512xf32>
    %cst_155 = arith.constant 0.797884583 : f32
    %361 = vector.broadcast %cst_155 : f32 to vector<16x512xf32>
    %362 = arith.mulf %361, %360 : vector<16x512xf32>
    %363 = math.tanh %362 : vector<16x512xf32>
    %cst_156 = arith.constant 1.000000e+00 : f32
    %364 = vector.broadcast %cst_156 : f32 to vector<16x512xf32>
    %365 = arith.addf %364, %363 : vector<16x512xf32>
    %cst_157 = arith.constant 5.000000e-01 : f32
    %366 = vector.broadcast %cst_157 : f32 to vector<16x512xf32>
    %367 = arith.mulf %366, %365 : vector<16x512xf32>
    %368 = arith.mulf %355, %367 : vector<16x512xf32>
    %c1_158 = arith.constant 1 : index
    %c0_159 = arith.constant 0 : index
    %c0_160 = arith.constant 0 : index
    %369 = vector.load %arg13[%c1_158, %c0_159, %c0_160] : memref<2x512x128xbf16, #tpu.memory_space<vmem>>, vector<1x512x128xbf16>
    %370 = vector.shape_cast %369 : vector<1x512x128xbf16> to vector<512x128xbf16>
    %371 = arith.truncf %368 : vector<16x512xf32> to vector<16x512xbf16>
    %cst_161 = arith.constant dense<0.000000e+00> : vector<16x128xf32>
    %372 = tpu.matmul %371, %370, %cst_161 {dimension_numbers = #tpu.dot_dimension_numbers<[1], [0], [0], [1], [0, 0, 1, 1], [], []>} : vector<16x512xbf16>, vector<512x128xbf16>, vector<16x128xf32> -> vector<16x128xf32>
    %c1_162 = arith.constant 1 : index
    %c0_163 = arith.constant 0 : index
    %c0_164 = arith.constant 0 : index
    %373 = vector.load %arg14[%c1_162, %c0_163, %c0_164] : memref<2x1x128xf32, #tpu.memory_space<vmem>>, vector<1x1x128xf32>
    %374 = vector.shape_cast %373 : vector<1x1x128xf32> to vector<1x128xf32>
    %375 = vector.broadcast %374 : vector<1x128xf32> to vector<16x128xf32>
    %376 = arith.addf %372, %375 : vector<16x128xf32>
    %377 = arith.addf %376, %347 : vector<16x128xf32>
    %c1_165 = arith.constant 1 : index
    %c0_166 = arith.constant 0 : index
    %c0_167 = arith.constant 0 : index
    %378 = vector.load %arg15[%c1_165, %c0_166, %c0_167] : memref<2x1x128xf32, #tpu.memory_space<vmem>>, vector<1x1x128xf32>
    %379 = vector.shape_cast %378 : vector<1x1x128xf32> to vector<1x128xf32>
    %c1_168 = arith.constant 1 : index
    %c0_169 = arith.constant 0 : index
    %c0_170 = arith.constant 0 : index
    %380 = vector.load %arg16[%c1_168, %c0_169, %c0_170] : memref<2x1x128xf32, #tpu.memory_space<vmem>>, vector<1x1x128xf32>
    %381 = vector.shape_cast %380 : vector<1x1x128xf32> to vector<1x128xf32>
    %cst_171 = arith.constant dense<0.000000e+00> : vector<16xf32>
    %382 = vector.multi_reduction <add>, %377, %cst_171 [1] : vector<16x128xf32> to vector<16xf32>
    %383 = vector.shape_cast %382 : vector<16xf32> to vector<16x1xf32>
    %cst_172 = arith.constant 1.280000e+02 : f32
    %384 = vector.broadcast %cst_172 : f32 to vector<16x1xf32>
    %385 = arith.divf %383, %384 : vector<16x1xf32>
    %386 = vector.broadcast %385 : vector<16x1xf32> to vector<16x128xf32>
    %387 = arith.subf %377, %386 : vector<16x128xf32>
    %388 = arith.mulf %387, %387 : vector<16x128xf32>
    %cst_173 = arith.constant dense<0.000000e+00> : vector<16xf32>
    %389 = vector.multi_reduction <add>, %388, %cst_173 [1] : vector<16x128xf32> to vector<16xf32>
    %390 = vector.shape_cast %389 : vector<16xf32> to vector<16x1xf32>
    %cst_174 = arith.constant 1.280000e+02 : f32
    %391 = vector.broadcast %cst_174 : f32 to vector<16x1xf32>
    %392 = arith.divf %390, %391 : vector<16x1xf32>
    %393 = vector.broadcast %385 : vector<16x1xf32> to vector<16x128xf32>
    %394 = arith.subf %377, %393 : vector<16x128xf32>
    %cst_175 = arith.constant 9.99999996E-13 : f32
    %395 = vector.broadcast %cst_175 : f32 to vector<16x1xf32>
    %396 = arith.addf %392, %395 : vector<16x1xf32>
    %397 = math.rsqrt %396 : vector<16x1xf32>
    %398 = vector.broadcast %397 : vector<16x1xf32> to vector<16x128xf32>
    %399 = arith.mulf %394, %398 : vector<16x128xf32>
    %400 = vector.broadcast %379 : vector<1x128xf32> to vector<16x128xf32>
    %401 = arith.mulf %399, %400 : vector<16x128xf32>
    %402 = vector.broadcast %381 : vector<1x128xf32> to vector<16x128xf32>
    %403 = arith.addf %401, %402 : vector<16x128xf32>
    %c0_176 = arith.constant 0 : index
    %c0_177 = arith.constant 0 : index
    %404 = vector.load %arg17[%c0_176, %c0_177] : memref<128x128xbf16, #tpu.memory_space<vmem>>, vector<128x128xbf16>
    %405 = arith.truncf %403 : vector<16x128xf32> to vector<16x128xbf16>
    %cst_178 = arith.constant dense<0.000000e+00> : vector<16x128xf32>
    %406 = tpu.matmul %405, %404, %cst_178 {dimension_numbers = #tpu.dot_dimension_numbers<[1], [0], [0], [1], [0, 0, 1, 1], [], []>} : vector<16x128xbf16>, vector<128x128xbf16>, vector<16x128xf32> -> vector<16x128xf32>
    %c0_179 = arith.constant 0 : index
    %c0_180 = arith.constant 0 : index
    %407 = vector.load %arg18[%c0_179, %c0_180] : memref<1x128xf32, #tpu.memory_space<vmem>>, vector<1x128xf32>
    %408 = vector.broadcast %407 : vector<1x128xf32> to vector<16x128xf32>
    %409 = arith.addf %406, %408 : vector<16x128xf32>
    %cst_181 = arith.constant 0.000000e+00 : f32
    %410 = vector.broadcast %cst_181 : f32 to vector<16x128xf32>
    %411 = arith.maximumf %409, %410 : vector<16x128xf32>
    %c0_182 = arith.constant 0 : index
    %c0_183 = arith.constant 0 : index
    %412 = vector.load %arg19[%c0_182, %c0_183] : memref<128x128xbf16, #tpu.memory_space<vmem>>, vector<128x128xbf16>
    %413 = arith.truncf %411 : vector<16x128xf32> to vector<16x128xbf16>
    %cst_184 = arith.constant dense<0.000000e+00> : vector<16x128xf32>
    %414 = tpu.matmul %413, %412, %cst_184 {dimension_numbers = #tpu.dot_dimension_numbers<[1], [0], [0], [1], [0, 0, 1, 1], [], []>} : vector<16x128xbf16>, vector<128x128xbf16>, vector<16x128xf32> -> vector<16x128xf32>
    %c0_185 = arith.constant 0 : index
    %c0_186 = arith.constant 0 : index
    %415 = vector.load %arg20[%c0_185, %c0_186] : memref<1x128xf32, #tpu.memory_space<vmem>>, vector<1x128xf32>
    %416 = vector.broadcast %415 : vector<1x128xf32> to vector<16x128xf32>
    %417 = arith.addf %414, %416 : vector<16x128xf32>
    %c0_187 = arith.constant 0 : index
    %c0_188 = arith.constant 0 : index
    %418 = vector.load %arg21[%c0_187, %c0_188] : memref<16x128xf32, #tpu.memory_space<vmem>>, vector<16x128xf32>
    tpu.vector_store %arg21[%c0_187, %c0_188], %417 {strides = array<i32>} : memref<16x128xf32, #tpu.memory_space<vmem>>, vector<16x128xf32>,
    return
  }
  func.func @transform_0(%arg0: i32) -> (i32, i32) {
    %c0_i32 = arith.constant 0 : i32
    %c0_i32_0 = arith.constant 0 : i32
    %c0_i32_1 = arith.constant 0 : i32
    return %c0_i32, %c0_i32_0 : i32, i32
  }
  func.func @transform_1(%arg0: i32) -> (i32, i32) {
    %c0_i32 = arith.constant 0 : i32
    %c0_i32_0 = arith.constant 0 : i32
    %c0_i32_1 = arith.constant 0 : i32
    return %c0_i32, %c0_i32_0 : i32, i32
  }
  func.func @transform_2(%arg0: i32) -> (i32, i32) {
    %c0_i32 = arith.constant 0 : i32
    %c0_i32_0 = arith.constant 0 : i32
    %c0_i32_1 = arith.constant 0 : i32
    return %c0_i32, %c0_i32_0 : i32, i32
  }
  func.func @transform_3(%arg0: i32) -> (i32, i32) {
    %c0_i32 = arith.constant 0 : i32
    %c0_i32_0 = arith.constant 0 : i32
    %c0_i32_1 = arith.constant 0 : i32
    return %c0_i32, %c0_i32_0 : i32, i32
  }
  func.func @transform_4(%arg0: i32) -> (i32, i32, i32) {
    %c0_i32 = arith.constant 0 : i32
    %c0_i32_0 = arith.constant 0 : i32
    %c0_i32_1 = arith.constant 0 : i32
    %c0_i32_2 = arith.constant 0 : i32
    return %c0_i32, %c0_i32_0, %c0_i32_1 : i32, i32, i32
  }
  func.func @transform_5(%arg0: i32) -> (i32, i32, i32) {
    %c0_i32 = arith.constant 0 : i32
    %c0_i32_0 = arith.constant 0 : i32
    %c0_i32_1 = arith.constant 0 : i32
    %c0_i32_2 = arith.constant 0 : i32
    return %c0_i32, %c0_i32_0, %c0_i32_1 : i32, i32, i32
  }
  func.func @transform_6(%arg0: i32) -> (i32, i32, i32) {
    %c0_i32 = arith.constant 0 : i32
    %c0_i32_0 = arith.constant 0 : i32
    %c0_i32_1 = arith.constant 0 : i32
    %c0_i32_2 = arith.constant 0 : i32
    return %c0_i32, %c0_i32_0, %c0_i32_1 : i32, i32, i32
  }
  func.func @transform_7(%arg0: i32) -> (i32, i32, i32) {
    %c0_i32 = arith.constant 0 : i32
    %c0_i32_0 = arith.constant 0 : i32
    %c0_i32_1 = arith.constant 0 : i32
    %c0_i32_2 = arith.constant 0 : i32
    return %c0_i32, %c0_i32_0, %c0_i32_1 : i32, i32, i32
  }
  func.func @transform_8(%arg0: i32) -> (i32, i32, i32) {
    %c0_i32 = arith.constant 0 : i32
    %c0_i32_0 = arith.constant 0 : i32
    %c0_i32_1 = arith.constant 0 : i32
    %c0_i32_2 = arith.constant 0 : i32
    return %c0_i32, %c0_i32_0, %c0_i32_1 : i32, i32, i32
  }
  func.func @transform_9(%arg0: i32) -> (i32, i32, i32) {
    %c0_i32 = arith.constant 0 : i32
    %c0_i32_0 = arith.constant 0 : i32
    %c0_i32_1 = arith.constant 0 : i32
    %c0_i32_2 = arith.constant 0 : i32
    return %c0_i32, %c0_i32_0, %c0_i32_1 : i32, i32, i32
  }
  func.func @transform_10(%arg0: i32) -> (i32, i32, i32) {
    %c0_i32 = arith.constant 0 : i32
    %c0_i32_0 = arith.constant 0 : i32
    %c0_i32_1 = arith.constant 0 : i32
    %c0_i32_2 = arith.constant 0 : i32
    return %c0_i32, %c0_i32_0, %c0_i32_1 : i32, i32, i32
  }
  func.func @transform_11(%arg0: i32) -> (i32, i32, i32) {
    %c0_i32 = arith.constant 0 : i32
    %c0_i32_0 = arith.constant 0 : i32
    %c0_i32_1 = arith.constant 0 : i32
    %c0_i32_2 = arith.constant 0 : i32
    return %c0_i32, %c0_i32_0, %c0_i32_1 : i32, i32, i32
  }
  func.func @transform_12(%arg0: i32) -> (i32, i32, i32) {
    %c0_i32 = arith.constant 0 : i32
    %c0_i32_0 = arith.constant 0 : i32
    %c0_i32_1 = arith.constant 0 : i32
    %c0_i32_2 = arith.constant 0 : i32
    return %c0_i32, %c0_i32_0, %c0_i32_1 : i32, i32, i32
  }
  func.func @transform_13(%arg0: i32) -> (i32, i32, i32) {
    %c0_i32 = arith.constant 0 : i32
    %c0_i32_0 = arith.constant 0 : i32
    %c0_i32_1 = arith.constant 0 : i32
    %c0_i32_2 = arith.constant 0 : i32
    return %c0_i32, %c0_i32_0, %c0_i32_1 : i32, i32, i32
  }
  func.func @transform_14(%arg0: i32) -> (i32, i32, i32) {
    %c0_i32 = arith.constant 0 : i32
    %c0_i32_0 = arith.constant 0 : i32
    %c0_i32_1 = arith.constant 0 : i32
    %c0_i32_2 = arith.constant 0 : i32
    return %c0_i32, %c0_i32_0, %c0_i32_1 : i32, i32, i32
  }
  func.func @transform_15(%arg0: i32) -> (i32, i32, i32) {
    %c0_i32 = arith.constant 0 : i32
    %c0_i32_0 = arith.constant 0 : i32
    %c0_i32_1 = arith.constant 0 : i32
    %c0_i32_2 = arith.constant 0 : i32
    return %c0_i32, %c0_i32_0, %c0_i32_1 : i32, i32, i32
  }
  func.func @transform_16(%arg0: i32) -> (i32, i32) {
    %c0_i32 = arith.constant 0 : i32
    %c0_i32_0 = arith.constant 0 : i32
    %c0_i32_1 = arith.constant 0 : i32
    return %c0_i32, %c0_i32_0 : i32, i32
  }
  func.func @transform_17(%arg0: i32) -> (i32, i32) {
    %c0_i32 = arith.constant 0 : i32
    %c0_i32_0 = arith.constant 0 : i32
    %c0_i32_1 = arith.constant 0 : i32
    return %c0_i32, %c0_i32_0 : i32, i32
  }
  func.func @transform_18(%arg0: i32) -> (i32, i32) {
    %c0_i32 = arith.constant 0 : i32
    %c0_i32_0 = arith.constant 0 : i32
    %c0_i32_1 = arith.constant 0 : i32
    return %c0_i32, %c0_i32_0 : i32, i32
  }
  func.func @transform_19(%arg0: i32) -> (i32, i32) {
    %c0_i32 = arith.constant 0 : i32
    %c0_i32_0 = arith.constant 0 : i32
    %c0_i32_1 = arith.constant 0 : i32
    return %c0_i32, %c0_i32_0 : i32, i32
  }
  func.func @transform_20(%arg0: i32) -> (i32, i32) {
    %c0_i32 = arith.constant 0 : i32
    %c0_i32_0 = arith.constant 0 : i32
    %c0_i32_1 = arith.constant 0 : i32
    return %c0_i32, %c0_i32_0 : i32, i32
  }
}

</mosaic_0001>

<bundles_post_ra>
// kernel: tpu_custom_call.1
= control target key start
LH: loop header
LB: loop body
LE: loop exit
PB: predicated region body
PF: predicated region fallthrough
CT: control target
= control target key end

     0   :  { %s5289_s0 = inlined_call_operand.hbm [shape: f32[16,128], index: 0, kind: input, shape index: {}]   ;;  %s5290_s1 = inlined_call_operand.hbm [shape: f32[2,8], index: 1, kind: input, shape index: {}]   ;;  %s5291_s2 = inlined_call_operand.hbm [shape: f32[1,128], index: 2, kind: input, shape index: {}]   ;;  %s5292_s3 = inlined_call_operand.hbm [shape: f32[1,128], index: 3, kind: input, shape index: {}]   ;;  %s5293_s4 = inlined_call_operand.hbm [shape: bf16[2,128,384], index: 4, kind: input, shape index: {}]   ;;  %s5294_s5 = inlined_call_operand.hbm [shape: f32[2,1,384], index: 5, kind: input, shape index: {}]   ;;  %s5295_s6 = inlined_call_operand.hbm [shape: bf16[2,128,128], index: 6, kind: input, shape index: {}]   ;;  %s5296_s7 = inlined_call_operand.vmem [shape: f32[2,1,128], index: 7, kind: input, shape index: {}]   ;;  %s5297_s8 = inlined_call_operand.hbm [shape: f32[2,1,128], index: 8, kind: input, shape index: {}]   ;;  %s5298_s9 = inlined_call_operand.hbm [shape: f32[2,1,128], index: 9, kind: input, shape index: {}]   ;;  %s5299_s10 = inlined_call_operand.hbm [shape: bf16[2,128,512], index: 10, kind: input, shape index: {}]   ;;  %s5300_s11 = inlined_call_operand.vmem [shape: f32[2,1,512], index: 11, kind: input, shape index: {}]   ;;  %s5301_s12 = inlined_call_operand.hbm [shape: bf16[2,512,128], index: 12, kind: input, shape index: {}]   ;;  %s5302_s13 = inlined_call_operand.vmem [shape: f32[2,1,128], index: 13, kind: input, shape index: {}]   ;;  %s5303_s14 = inlined_call_operand.hbm [shape: f32[2,1,128], index: 14, kind: input, shape index: {}]   ;;  %s5304_s15 = inlined_call_operand.vmem [shape: f32[2,1,128], index: 15, kind: input, shape index: {}]   ;;  %s5305_s16 = inlined_call_operand.hbm [shape: bf16[128,128], index: 16, kind: input, shape index: {}]   ;;  %s5306_s17 = inlined_call_operand.vmem [shape: f32[1,128], index: 17, kind: input, shape index: {}]   ;;  %s5307_s18 = inlined_call_operand.hbm [shape: bf16[128,128], index: 18, kind: input, shape index: {}]   ;;  %s5308_s19 = inlined_call_operand.vmem [shape: f32[1,128], index: 19, kind: input, shape index: {}]   ;;  %s5309_s20 = inlined_call_operand.hbm [shape: f32[16,128], index: 20, kind: output, shape index: {}]  }
   0x1   :  { %5311 = sst [smem:[#allocation36_spill]] %s5289_s0 }
   0x2   :  { %5312 = sst [smem:[#allocation37_spill]] %s5290_s1 }
   0x3   :  { %5313 = sst [smem:[#allocation38_spill]] %s5291_s2 }
   0x4   :  { %5314 = sst [smem:[#allocation39_spill]] %s5292_s3 }
   0x5   :  { %5315 = sst [smem:[#allocation40_spill]] %s5293_s4 }
   0x6   :  { %5316 = sst [smem:[#allocation41_spill]] %s5309_s20 }
   0x7   :  { %25 = vsyncpa [#allocation4], 0 }
   0x8   :  { %26 = vsyncpa [#allocation7], 0 }
   0x9   :  { %27 = vsyncpa [#allocation10], 0 }
   0xa   :  { %28 = vsyncpa [#allocation13], 0 }
   0xb   :  { %29 = vsyncpa [#allocation16], 0 }
   0xc   :  { %30 = vsyncpa [#allocation19], 0 }
   0xd   :  { %31 = vsyncpa [#allocation22], 0 }
   0xe   :  { %32 = vsyncpa [#allocation25], 0  ;;  %s5317_s23 = sld [smem:[#allocation37_spill]] }
  0x14   :  { %s52_s24 = sshll.u32 %s5317_s23, 4  ;;  %s53_s24 = int_to_ptr.hbm [resolvable:$true] %s52_s24 }
  0x15   :  { %33 = vsyncpa [#allocation5], 0  ;;  %s4782_s2 = smov [#allocation6]   ;;  %s5318_s27 = sld [smem:[#allocation39_spill]] }
  0x16   :  { %s54_s25 = sshll.u32 %s4782_s2, 4  ;;  %s4783_s4 = smov [#allocation9]   ;;  %s55_s25 = int_to_ptr.vmem [resolvable:$true] %s54_s25 }
  0x17   :  { %57 = dma.hbm_to_vmem [thread:$0]  %s53_s24, 32, %s55_s25, [#allocation7]  }
  0x18   :  { %s76_s29 = sshll.u32 %s4783_s4, 4  ;;  %s97_s21 = sshll.u32 %s5294_s5, 4  ;;  %s77_s29 = int_to_ptr.vmem [resolvable:$true] %s76_s29  ;;  %s98_s21 = int_to_ptr.hbm [resolvable:$true] %s97_s21 }
  0x19   :  { %s4784_s1 = smov [#allocation12]   ;;  %s125_s20 = sshll.u32 %s5297_s8, 4  ;;  %s126_s20 = int_to_ptr.hbm [resolvable:$true] %s125_s20 }
  0x1a   :  { %s99_s22 = sshll.u32 %s4784_s1, 4  ;;  %s4785_s3 = smov 48   ;;  %s100_s22 = int_to_ptr.vmem [resolvable:$true] %s99_s22 }
  0x1b   :  { %s74_s28 = sshll.u32 %s5318_s27, 4  ;;  %s4786_s26 = smov 3   ;;  %s75_s28 = int_to_ptr.hbm [resolvable:$true] %s74_s28 }
  0x1c   :  { %79 = dma.hbm_to_vmem [thread:$0]  %s75_s28, 16, %s77_s29, [#allocation10]  }
  0x1d   :  { %105 = dma.hbm_to_vmem [thread:$0]  %s98_s21, 96, %s100_s22, [#allocation13], %s4785_s3, %s4785_s3, %s4786_s26  }
  0x1e   :  { %s4787_s24 = smov [#allocation15]   ;;  %s4788_s27 = smov 16  }
  0x1f   :  { %s127_s25 = sshll.u32 %s4787_s24, 4  ;;  %s4789_s4 = smov 1   ;;  %s128_s25 = int_to_ptr.vmem [resolvable:$true] %s127_s25 }
  0x20   :  { %133 = dma.hbm_to_vmem [thread:$0]  %s126_s20, 32, %s128_s25, [#allocation16], %s4788_s27, %s4788_s27, %s4789_s4  }
  0x21   :  { %s151_s29 = sshll.u32 %s5299_s10, 4  ;;  %s4790_s30 = smov [#allocation18]   ;;  %s152_s29 = int_to_ptr.hbm [resolvable:$true] %s151_s29 }
  0x22   :  { %s153_s8 = sshll.u32 %s4790_s30, 4  ;;  %s4791_s0 = smov 256   ;;  %s154_s8 = int_to_ptr.vmem [resolvable:$true] %s153_s8 }
  0x23   :  { %159 = dma.hbm_to_vmem [thread:$0]  %s152_s29, 8192, %s154_s8, [#allocation19], %s4791_s0, %s4791_s0, %s4788_s27  }
  0x24   :  { %s181_s22 = sshll.u32 %s5303_s14, 4  ;;  %s4792_s23 = smov [#allocation21]   ;;  %s182_s22 = int_to_ptr.hbm [resolvable:$true] %s181_s22 }
  0x25   :  { %s183_s2 = sshll.u32 %s4792_s23, 4  ;;  %s5319_s26 = sld [smem:[#allocation36_spill]]  ;;  %s184_s2 = int_to_ptr.vmem [resolvable:$true] %s183_s2 }
  0x26   :  { %189 = dma.hbm_to_vmem [thread:$0]  %s182_s22, 32, %s184_s2, [#allocation22], %s4788_s27, %s4788_s27, %s4789_s4  }
  0x27   :  { %s4793_s10 = smov [#allocation3]   ;;  %s5310_s5 = smov 128  }
  0x28   :  { %s40_s25 = sshll.u32 %s4793_s10, 4  ;;  %s4795_s28 = smov 8   ;;  %s41_s25 = int_to_ptr.vmem [resolvable:$true] %s40_s25 }
  0x29   :  { %s5320_s30 = sld [smem:[#allocation38_spill]]  ;;  %s4796_s0 = smov [#allocation8]  }
  0x2a   :  { %s65_s21 = sshll.u32 %s4796_s0, 4  ;;  %s5321_s23 = sld [smem:[#allocation40_spill]]  ;;  %s66_s21 = int_to_ptr.vmem [resolvable:$true] %s65_s21 }
  0x2b   :  { %s38_s24 = sshll.u32 %s5319_s26, 4  ;;  %s4797_s20 = smov [#allocation11]   ;;  %s39_s24 = int_to_ptr.hbm [resolvable:$true] %s38_s24 }
  0x2c   :  { %46 = dma.hbm_to_vmem [thread:$0]  %s39_s24, 256, %s41_s25, [#allocation4], %s5310_s5, %s5310_s5, %s4795_s28  }
  0x2d   :  { %s86_s3 = sshll.u32 %s4797_s20, 4  ;;  %s4798_s26 = smov 192   ;;  %s87_s3 = int_to_ptr.vmem [resolvable:$true] %s86_s3 }
  0x2e   :  { %s4799_s10 = smov 12   ;;  %s110_s14 = sshll.u32 %s5295_s6, 4  ;;  %s111_s14 = int_to_ptr.hbm [resolvable:$true] %s110_s14 }
  0x2f   :  { %s63_s8 = sshll.u32 %s5320_s30, 4  ;;  %s4800_s29 = smov [#allocation14]   ;;  %s64_s8 = int_to_ptr.hbm [resolvable:$true] %s63_s8 }
  0x30   :  { %s84_s2 = sshll.u32 %s5321_s23, 4  ;;  %s112_s30 = sshll.u32 %s4800_s29, 4  ;;  %s85_s2 = int_to_ptr.hbm [resolvable:$true] %s84_s2  ;;  %s113_s30 = int_to_ptr.vmem [resolvable:$true] %s112_s30 }
  0x31   :  { %68 = dma.hbm_to_vmem [thread:$0]  %s64_s8, 16, %s66_s21, [#allocation7]  }
  0x32   :  { %92 = dma.hbm_to_vmem [thread:$0]  %s85_s2, 6144, %s87_s3, [#allocation10], %s4798_s26, %s4798_s26, %s4799_s10  }
  0x33   :  { %s138_s1 = sshll.u32 %s5298_s9, 4  ;;  %s4801_s8 = smov 64   ;;  %s139_s1 = int_to_ptr.hbm [resolvable:$true] %s138_s1 }
  0x34   :  { %s4802_s21 = smov 4   ;;  %s4803_s22 = smov [#allocation17]  }
  0x35   :  { %118 = dma.hbm_to_vmem [thread:$0]  %s111_s14, 2048, %s113_s30, [#allocation13], %s4801_s8, %s4801_s8, %s4802_s21  }
  0x36   :  { %s140_s23 = sshll.u32 %s4803_s22, 4  ;;  %s166_s6 = sshll.u32 %s5301_s12, 4  ;;  %s141_s23 = int_to_ptr.vmem [resolvable:$true] %s140_s23  ;;  %s167_s6 = int_to_ptr.hbm [resolvable:$true] %s166_s6 }
  0x37   :  { %146 = dma.hbm_to_vmem [thread:$0]  %s139_s1, 32, %s141_s23, [#allocation16], %s4788_s27, %s4788_s27, %s4789_s4  }
  0x38   :  { %s196_s3 = sshll.u32 %s5305_s16, 4  ;;  %s4804_s26 = smov [#allocation20]   ;;  %s197_s3 = int_to_ptr.hbm [resolvable:$true] %s196_s3 }
  0x39   :  { %s168_s10 = sshll.u32 %s4804_s26, 4  ;;  %s4805_s24 = smov [#allocation23]   ;;  %s169_s10 = int_to_ptr.vmem [resolvable:$true] %s168_s10 }
  0x3a   :  { %174 = dma.hbm_to_vmem [thread:$0]  %s167_s6, 8192, %s169_s10, [#allocation19], %s4801_s8, %s4801_s8, %s4802_s21  }
  0x3b   :  { %s198_s25 = sshll.u32 %s4805_s24, 4  ;;  %s211_s29 = sshll.u32 %s5307_s18, 4  ;;  %s199_s25 = int_to_ptr.vmem [resolvable:$true] %s198_s25  ;;  %s212_s29 = int_to_ptr.hbm [resolvable:$true] %s211_s29 }
  0x3c   :  { %204 = dma.hbm_to_vmem [thread:$0]  %s197_s3, 1024, %s199_s25, [#allocation22], %s4801_s8, %s4801_s8, %s4802_s21  }
  0x3d   :  { %s4806_s27 = smov [#allocation24]  }
  0x3e   :  { %s213_s16 = sshll.u32 %s4806_s27, 4  ;;  %s214_s16 = int_to_ptr.vmem [resolvable:$true] %s213_s16 }
  0x3f   :  { %219 = dma.hbm_to_vmem [thread:$0]  %s212_s29, 1024, %s214_s16, [#allocation25], %s4801_s8, %s4801_s8, %s4802_s21  }
  0x40   :  { %4764 = dma.done.wait [#allocation4], 256  }
  0x41   :  { %4765 = vsyncadd [#allocation4], 4294967040 }
  0x42   :  { %4766 = dma.done.wait [#allocation7], 48  }
  0x43   :  { %4767 = vsyncadd [#allocation7], 4294967248 }
  0x44   :  { %4768 = dma.done.wait [#allocation10], 6160  }
  0x45   :  { %4769 = vsyncadd [#allocation10], 4294961136 }
  0x46   :  { %4770 = dma.done.wait [#allocation13], 2144  }
  0x47   :  { %4771 = vsyncadd [#allocation13], 4294965152 }
  0x48   :  { %4772 = dma.done.wait [#allocation16], 64  }
  0x49   :  { %4773 = vsyncadd [#allocation16], 4294967232 }
  0x4a   :  { %4774 = dma.done.wait [#allocation19], 16384  }
  0x4b   :  { %4775 = vsyncadd [#allocation19], 4294950912 }
  0x4c   :  { %4776 = dma.done.wait [#allocation22], 1056  }
  0x4d   :  { %4777 = vsyncadd [#allocation22], 4294966240 }
  0x4e   :  { %4778 = dma.done.wait [#allocation25], 1024  }
  0x4f   :  { %4779 = vsyncadd [#allocation25], 4294966272  ;;  %v278_v0 = vld [vmem:[#allocation3] sm:$0xff]  ;;  %v279_v1 = vld [vmem:[#allocation3 + $0x8] sm:$0xff]  ;;  %v4807_v2 = vmov 128.0   ;;  %vm551_vm7 = vcmask 523264  }
  0x50   :  { %282 = vadd.xlane.f32.xlu0 %v278_v0  ;;  %4318 = vrcp.f32 %v4807_v2  ;;  %v3293_v17 = vld [vmem:[#allocation11 + $0xa8] sm:$0xf]  ;;  %v4089_v18 = vld [vmem:[#allocation11 + $0xb0] sm:$0xf0]  ;;  %v4088_v19 = vld [vmem:[#allocation11 + $0xac] sm:$0xf] }
  0x51   :  { %v3294_v20 = vor.u32 %v4089_v18, %v3293_v17  ;;  %v3295_v21 = vld [vmem:[#allocation11 + $0xb4] sm:$0xf0]  ;;  %v3301_v22 = vld [vmem:[#allocation11 + $0xb0] sm:$0xf]  ;;  %v4090_v23 = vld [vmem:[#allocation11 + $0xb8] sm:$0xf0] }
  0x52   :  { %v3298_v24 = vor.u32 %v4088_v19, %v3295_v21  ;;  %v3302_v25 = vor.u32 %v4090_v23, %v3301_v22  ;;  %v3281_v26 = vld [vmem:[#allocation11 + $0x90] sm:$0xf]  ;;  %v4086_v27 = vld [vmem:[#allocation11 + $0x98] sm:$0xf0]  ;;  %v4085_v28 = vld [vmem:[#allocation11 + $0x94] sm:$0xf] }
  0x53   :  { %509 = vmatpush.bf16.msra.mxu0 %v3294_v20  ;;  %v3282_v29 = vor.u32 %v4086_v27, %v3281_v26  ;;  %v3283_v30 = vld [vmem:[#allocation11 + $0x9c] sm:$0xf0]  ;;  %v3289_v31 = vld [vmem:[#allocation11 + $0x98] sm:$0xf]  ;;  %v4087_v32 = vld [vmem:[#allocation11 + $0xa0] sm:$0xf0] }
  0x54   :  { %523 = vmatpush.bf16.msra.mxu1 %v3298_v24  ;;  %537 = vmatpush.bf16.msra.mxu2 %v3302_v25  ;;  %v3286_v33 = vor.u32 %v4085_v28, %v3283_v30  ;;  %v3290_v34 = vor.u32 %v4087_v32, %v3289_v31  ;;  %v3269_v35 = vld [vmem:[#allocation11 + $0x78] sm:$0xf]  ;;  %v4083_v36 = vld [vmem:[#allocation11 + $0x80] sm:$0xf0]  ;;  %v4082_v37 = vld [vmem:[#allocation11 + $0x7c] sm:$0xf] }
  0x55   :  { %v3270_v38 = vor.u32 %v4083_v36, %v3269_v35  ;;  %v3271_v39 = vld [vmem:[#allocation11 + $0x84] sm:$0xf0]  ;;  %v3277_v40 = vld [vmem:[#allocation11 + $0x80] sm:$0xf]  ;;  %v4084_v41 = vld [vmem:[#allocation11 + $0x88] sm:$0xf0] }
  0x56   :  { %v4319_v3 = vpop.eup %4318  ;;  %v3274_v42 = vor.u32 %v4082_v37, %v3271_v39  ;;  %v3278_v43 = vor.u32 %v4084_v41, %v3277_v40  ;;  %v3257_v44 = vld [vmem:[#allocation11 + $0x60] sm:$0xf]  ;;  %v4080_v45 = vld [vmem:[#allocation11 + $0x68] sm:$0xf0]  ;;  %v4079_v46 = vld [vmem:[#allocation11 + $0x64] sm:$0xf] }
  0x57   :  { %v287_v4 = vmul.f32 128.0, %v4319_v3  ;;  %vm291_vm0 = vweird.f32 %v4319_v3  ;;  %510 = vmatpush.bf16.msra.mxu0 %v3282_v29  ;;  %v3258_v47 = vor.u32 %v4080_v45, %v3257_v44  ;;  %v3259_v48 = vld [vmem:[#allocation11 + $0x6c] sm:$0xf0]  ;;  %v3265_v49 = vld [vmem:[#allocation11 + $0x68] sm:$0xf]  ;;  %vm581_vm8 = vcmask 64512  }
  0x58   :  { %284 = vadd.xlane.f32.xlu0 %v279_v1  ;;  %524 = vmatpush.bf16.msra.mxu1 %v3286_v33  ;;  %v4081_v50 = vld [vmem:[#allocation11 + $0x70] sm:$0xf0]  ;;  %v3262_v51 = vor.u32 %v4079_v46, %v3259_v48  ;;  %v3245_v53 = vld [vmem:[#allocation11 + $0x48] sm:$0xf]  ;;  %v4076_v55 = vld [vmem:[#allocation11 + $0x4c] sm:$0xf] }
  0x59   :  { %v288_v5 = vsub.f32 1.0, %v287_v4  ;;  %538 = vmatpush.bf16.msra.mxu2 %v3290_v34  ;;  %v3266_v52 = vor.u32 %v4081_v50, %v3265_v49  ;;  %v4077_v54 = vld [vmem:[#allocation11 + $0x50] sm:$0xf0]  ;;  %v3247_v57 = vld [vmem:[#allocation11 + $0x54] sm:$0xf0]  ;;  %vm689_vm9 = vcmask 1048064  }
  0x5a   :  { %v3246_v56 = vor.u32 %v4077_v54, %v3245_v53  ;;  %v3253_v58 = vld [vmem:[#allocation11 + $0x50] sm:$0xf]  ;;  %v4078_v59 = vld [vmem:[#allocation11 + $0x58] sm:$0xf0]  ;;  %v3250_v60 = vor.u32 %v4076_v55, %v3247_v57  ;;  %v3235_v2 = vld [vmem:[#allocation11 + $0x3c] sm:$0xf0] }
  0x5b   :  { %v289_v6 = vmul.f32 %v4319_v3, %v288_v5  ;;  %511 = vmatpush.bf16.msra.mxu0 %v3270_v38  ;;  %v3254_v61 = vor.u32 %v4078_v59, %v3253_v58  ;;  %v3233_v62 = vld [vmem:[#allocation11 + $0x30] sm:$0xf]  ;;  %v4074_v63 = vld [vmem:[#allocation11 + $0x38] sm:$0xf0]  ;;  %v4075_v4 = vld [vmem:[#allocation11 + $0x40] sm:$0xf0] }
  0x5c   :  { %525 = vmatpush.bf16.msra.mxu1 %v3274_v42  ;;  %v3209_v19 = vld [vmem:[#allocation11] sm:$0xf]  ;;  %v4068_v20 = vld [vmem:[#allocation11 + $0x8] sm:$0xf0]  ;;  %v4067_v21 = vld [vmem:[#allocation11 + $0x4] sm:$0xf] }
  0x5d   :  { %v290_v7 = vadd.f32 %v4319_v3, %v289_v6  ;;  %539 = vmatpush.bf16.msra.mxu2 %v3278_v43  ;;  %v3210_v23 = vor.u32 %v4068_v20, %v3209_v19  ;;  %v3211_v24 = vld [vmem:[#allocation11 + $0xc] sm:$0xf0]  ;;  %v3217_v25 = vld [vmem:[#allocation11 + $0x8] sm:$0xf]  ;;  %v4069_v26 = vld [vmem:[#allocation11 + $0x10] sm:$0xf0] }
  0x5e   :  { %v3214_v28 = vor.u32 %v4067_v21, %v3211_v24  ;;  %v3218_v29 = vor.u32 %v4069_v26, %v3217_v25  ;;  %s4808_s10 = smov [#allocation26]   ;;  %s5322_s14 = sld [smem:[#allocation41_spill]] }
  0x5f   :  { %v4977_v8 = vsel %vm291_vm0, %v4319_v3, %v290_v7  ;;  %512 = vmatpush.bf16.msra.mxu0 %v3258_v47  ;;  %v3241_v3 = vld [vmem:[#allocation11 + $0x38] sm:$0xf]  ;;  %v4302_v47 = vld [vmem:[#allocation8] ss:$0 sm:$0xff]  ;;  %s3185_s24 = sshll.u32 %s4808_s10, 4  ;;  %s5323_s29 = smov 128   ;;  %s3186_s24 = int_to_ptr.vmem [resolvable:$true] %s3185_s24 }
  0x60   :  { %526 = vmatpush.bf16.msra.mxu1 %v3262_v51  ;;  %v3242_v6 = vor.u32 %v4075_v4, %v3241_v3  ;;  %v3221_v7 = vld [vmem:[#allocation11 + $0x18] sm:$0xf] }
  0x61   :  { %540 = vmatpush.bf16.msra.mxu2 %v3266_v52  ;;  %v4303_v52 = vld [vmem:[#allocation9] ss:$0 sm:$0xff]  ;;  %v339_v4 = vld [vmem:[#allocation6] sm:$0x3] }
  0x63   :  { %513 = vmatpush.bf16.msra.mxu0 %v3246_v56 }
  0x64   :  { %527 = vmatpush.bf16.msra.mxu1 %v3250_v60 }
  0x65   :  { %541 = vmatpush.bf16.msra.mxu2 %v3254_v61 }
  0x69   :  { %542 = vmatpush.bf16.msra.mxu2 %v3242_v6 }
  0xc3   :  { %v283_v9 = vpop.xlane.xlu0 %282 }
  0xc4   :  { %v293_v10 = vmul.f32 %v4977_v8, %v283_v9  ;;  %v4071_v9 = vld [vmem:[#allocation11 + $0x20] sm:$0xf0] }
  0xc6   :  { %v4980_v11 = vsub.f32 %v278_v0, %v293_v10  ;;  %v4073_v0 = vld [vmem:[#allocation11 + $0x34] sm:$0xf]  ;;  %v4070_v10 = vld [vmem:[#allocation11 + $0x1c] sm:$0xf] }
  0xc7   :  { %v3238_v5 = vor.u32 %v4073_v0, %v3235_v2 }
  0xc8   :  { %v297_v12 = vmul.f32 %v4980_v11, %v4980_v11 }
  0xc9   :  { %528 = vmatpush.bf16.msra.mxu1 %v3238_v5  ;;  %v5016_v5 = vperm.slane %v339_v4, 0 }
  0xca   :  { %299 = vadd.xlane.f32.xlu1 %v297_v12  ;;  %v3222_v12 = vor.u32 %v4071_v9, %v3221_v7 }
  0xcb   :  { %v285_v13 = vpop.xlane.xlu0 %284 }
  0xcc   :  { %v294_v14 = vmul.f32 %v4977_v8, %v285_v13  ;;  %v3223_v13 = vld [vmem:[#allocation11 + $0x24] sm:$0xf0] }
  0xcd   :  { %v3226_v17 = vor.u32 %v4070_v10, %v3223_v13 }
  0xce   :  { %v4985_v15 = vsub.f32 %v279_v1, %v294_v14  ;;  %v3234_v1 = vor.u32 %v4074_v63, %v3233_v62  ;;  %v3229_v14 = vld [vmem:[#allocation11 + $0x20] sm:$0xf] }
  0xcf   :  { %529 = vmatpush.bf16.msra.mxu1 %v3226_v17 }
  0xd0   :  { %v298_v16 = vmul.f32 %v4985_v15, %v4985_v15  ;;  %514 = vmatpush.bf16.msra.mxu0 %v3234_v1 }
  0xd2   :  { %301 = vadd.xlane.f32.xlu1 %v298_v16  ;;  %v4072_v16 = vld [vmem:[#allocation11 + $0x28] sm:$0xf0] }
  0xd3   :  { %v3230_v18 = vor.u32 %v4072_v16, %v3229_v14  ;;  %530 = vmatpush.bf16.msra.mxu1 %v3214_v28 }
  0xd4   :  { %515 = vmatpush.bf16.msra.mxu0 %v3222_v12 }
  0xd5   :  { %543 = vmatpush.bf16.msra.mxu2 %v3230_v18 }
  0xd8   :  { %516 = vmatpush.bf16.msra.mxu0 %v3210_v23 }
  0xd9   :  { %544 = vmatpush.bf16.msra.mxu2 %v3218_v29 }
 0x13d   :  { %v300_v22 = vpop.xlane.xlu1 %299 }
 0x13e   :  { %v303_v27 = vmul.f32 %v300_v22, %v4977_v8 }
 0x140   :  { %v305_v30 = vadd.f32 1e-12, %v303_v27 }
 0x142   :  { %4320 = vrsqrt.f32 %v305_v30  ;;  %vm313_vm2 = vweird.f32 %v305_v30 }
 0x145   :  { %v302_v31 = vpop.xlane.xlu1 %301 }
 0x146   :  { %v304_v32 = vmul.f32 %v302_v31, %v4977_v8 }
 0x148   :  { %v4321_v33 = vpop.eup %4320  ;;  %v306_v34 = vadd.f32 1e-12, %v304_v32 }
 0x149   :  { %v308_v35 = vmul.f32 %v4321_v33, %v305_v30  ;;  %vm314_vm1 = vweird.f32 %v4321_v33 }
 0x14a   :  { %4322 = vrsqrt.f32 %v306_v34  ;;  %vm315_vm3 = vmor %vm313_vm2, %vm314_vm1  ;;  %vm323_vm5 = vweird.f32 %v306_v34 }
 0x14b   :  { %v309_v36 = vmul.f32 %v4321_v33, %v308_v35 }
 0x14d   :  { %v310_v37 = vmul.f32 0.5, %v309_v36 }
 0x14f   :  { %v311_v38 = vsub.f32 1.5, %v310_v37 }
 0x150   :  { %v4323_v39 = vpop.eup %4322 }
 0x151   :  { %v312_v40 = vmul.f32 %v4321_v33, %v311_v38  ;;  %v318_v41 = vmul.f32 %v4323_v39, %v306_v34  ;;  %vm324_vm4 = vweird.f32 %v4323_v39 }
 0x152   :  { %vm325_vm6 = vmor %vm323_vm5, %vm324_vm4 }
 0x153   :  { %v319_v42 = vmul.f32 %v4323_v39, %v318_v41  ;;  %v316_v43 = vsel %vm315_vm3, %v4321_v33, %v312_v40  ;;  %v5031_v41 = vperm.slane %v339_v4, 1 }
 0x154   :  { %v327_v46 = vmul.f32 %v316_v43, %v4980_v11  ;;  %v4999_v11 = vld [vmem:[#allocation12] sm:$0x7] }
 0x155   :  { %v320_v44 = vmul.f32 0.5, %v319_v42  ;;  %v375_v57 = vperm.slane %v4999_v11, 0  ;;  %v376_v58 = vperm.slane %v4999_v11, 1  ;;  %v377_v62 = vperm.slane %v4999_v11, 2 }
 0x156   :  { %v332_v51 = vmul.f32 %v4302_v47, %v327_v46 }
 0x157   :  { %v321_v45 = vsub.f32 1.5, %v320_v44 }
 0x158   :  { %v4993_v54 = vadd.f32 %v4303_v52, %v332_v51 }
 0x159   :  { %v322_v48 = vmul.f32 %v4323_v39, %v321_v45 }
 0x15b   :  { %v326_v49 = vsel %vm325_vm6, %v4323_v39, %v322_v48 }
 0x15c   :  { %v328_v50 = vmul.f32 %v326_v49, %v4985_v15 }
 0x15e   :  { %v333_v53 = vmul.f32 %v4302_v47, %v328_v50 }
 0x160   :  { %v4995_v55 = vadd.f32 %v4303_v52, %v333_v53 }
 0x162   :  { %v372_v56 = vpack.c.bf16 %v4995_v55, %v4993_v54 }
 0x164   :  { %517 = vmatmul.bf16.vlgmr.msra.gmra.mxu0 %v372_v56  ;;  %531 = vmatmul.bf16.vlgmr.msra.gmra.mxu1 %v372_v56 }
 0x165   :  { %545 = vmatmul.bf16.vlgmr.msra.gmra.mxu2 %v372_v56 }
 0x1e1   :  { %v518_v15 = vpop.f32.mrf.mxu0  ;;  %v532_v59 = vpop.f32.mrf.mxu1 }
 0x1e2   :  { %v519_v60 = vadd.f32 %v518_v15, %v375_v57  ;;  %v533_v61 = vadd.f32 %v532_v59, %v376_v58 }
 0x1e4   :  { %619 = vrot.lane.b32.xlu0 %v533_v61, %s4801_s8  ;;  %3303 = vmatpush.xpose.msk.msrb.mxu0 %vm551_vm7, %v533_v61 }
 0x1e5   :  { %617 = vrot.lane.b32.xlu1 %v519_v60, %s4801_s8 }
 0x1e7   :  { %3304 = vmatmul.msk.f32.vlgmr.msrb.gmra.mxu0 %vm551_vm7, %v519_v60 }
 0x1e8   :  { %v546_v63 = vpop.f32.mrf.mxu2 }
 0x1e9   :  { %v547_v0 = vadd.f32 %v546_v63, %v377_v62  ;;  %v520_v1 = vpop.f32.mrf.mxu0  ;;  %v534_v23 = vpop.f32.mrf.mxu1 }
 0x1ea   :  { %v5010_v2 = vadd.f32 %v520_v1, %v375_v57  ;;  %v535_v24 = vadd.f32 %v534_v23, %v376_v58 }
 0x1eb   :  { %611 = vmatpush.msra.mxu3 %v547_v0 }
 0x1ec   :  { %755 = vrot.lane.b32.xlu0 %v5010_v2, %s4801_s8 }
 0x1f0   :  { %v548_v38 = vpop.f32.mrf.mxu2 }
 0x1f1   :  { %v549_v42 = vadd.f32 %v548_v38, %v377_v62  ;;  %v4129_v38 = vld [vmem:[#allocation18 + $0xec] sm:$0xf0] }
 0x1f4   :  { %659 = vrot.lane.b32.xlu0 %v547_v0, %s4801_s8 }
 0x256   :  { %v620_v3 = vpop.permute.xlu0 %619 }
 0x257   :  { %3306 = vmatpush.xpose.msk.msrb.mxu3 %vm551_vm7, %v620_v3  ;;  %v618_v25 = vpop.permute.xlu1 %617 }
 0x25e   :  { %v756_v18 = vpop.permute.xlu0 %755 }
 0x264   :  { %v575_v6 = vpop.f32.mrf.mxu0 }
 0x265   :  { %v578_v7 = vmul.f32 0.125, %v575_v6 }
 0x266   :  { %v660_v22 = vpop.permute.xlu0 %659 }
 0x267   :  { %v580_v9 = vadd.f32 %v5016_v5, %v578_v7 }
 0x269   :  { %v582_v10 = vsel %vm581_vm8, %v580_v9, -inf }
 0x26a   :  { %583 = vmax.xlane.f32.xlu2 %v582_v10  ;;  %v4097_v10 = vld [vmem:[#allocation14 + $0x30] sm:$0xff] }
 0x2dd   :  { %v584_v12 = vpop.xlane.xlu2 %583 }
 0x2de   :  { %v585_v13 = vsub.f32 %v580_v9, %v584_v12  ;;  %v4098_v9 = vld [vmem:[#allocation14 + $0x38] sm:$0xff]  ;;  %v4096_v12 = vld [vmem:[#allocation14 + $0x28] sm:$0xff] }
 0x2df   :  { %899 = vmatpush.bf16.msrb.mxu2 %v4098_v9  ;;  %v4120_v9 = vld [vmem:[#allocation18 + $0xac] sm:$0xf] }
 0x2e0   :  { %v586_v14 = vmul.f32 1.442695, %v585_v13  ;;  %v4095_v13 = vld [vmem:[#allocation14 + $0x20] sm:$0xff] }
 0x2e2   :  { %4324 = vpow2.f32 %v586_v14  ;;  %v4094_v14 = vld [vmem:[#allocation14 + $0x18] sm:$0xff] }
 0x2e3   :  { %900 = vmatpush.bf16.msrb.mxu2 %v4097_v10  ;;  %v3439_v10 = vld [vmem:[#allocation18 + $0xb8] sm:$0xf0] }
 0x2e7   :  { %901 = vmatpush.bf16.msrb.mxu2 %v4096_v12  ;;  %v3442_v12 = vor.u32 %v4120_v9, %v3439_v10  ;;  %v3357_v9 = vld [vmem:[#allocation18 + $0x8] sm:$0xf]  ;;  %v4102_v10 = vld [vmem:[#allocation18 + $0x14] sm:$0xf0] }
 0x2e8   :  { %v4325_v16 = vpop.eup %4324 }
 0x2e9   :  { %v588_v17 = vsel %vm581_vm8, %v4325_v16, 0.0 }
 0x2ea   :  { %589 = vadd.xlane.f32.xlu2 %v588_v17  ;;  %v4092_v17 = vld [vmem:[#allocation14 + $0x8] sm:$0xff] }
 0x2eb   :  { %902 = vmatpush.bf16.msrb.mxu2 %v4095_v13  ;;  %v3413_v13 = vld [vmem:[#allocation18 + $0x80] sm:$0xf] }
 0x2ef   :  { %903 = vmatpush.bf16.msrb.mxu2 %v4094_v14  ;;  %v4117_v14 = vld [vmem:[#allocation18 + $0x8c] sm:$0xf0] }
 0x35d   :  { %v590_v19 = vpop.xlane.xlu2 %589 }
 0x35e   :  { %4326 = vrcp.f32 %v590_v19 }
 0x364   :  { %v4327_v20 = vpop.eup %4326 }
 0x365   :  { %v592_v21 = vmul.f32 %v4327_v20, %v4325_v16  ;;  %v4093_v16 = vld [vmem:[#allocation14 + $0x10] sm:$0xff] }
 0x366   :  { %904 = vmatpush.bf16.msrb.mxu2 %v4093_v16  ;;  %v4115_v16 = vld [vmem:[#allocation18 + $0x84] sm:$0xf] }
 0x367   :  { %3305 = vmatmul.msk.f32.vlgmr.msra.gmra.mxu3 %vm581_vm8, %v592_v21 }
 0x368   :  { %680 = vmatpush.msra.mxu3 %v660_v22 }
 0x36a   :  { %905 = vmatpush.bf16.msrb.mxu2 %v4092_v17  ;;  %v3414_v17 = vor.u32 %v4117_v14, %v3413_v13  ;;  %v3358_v14 = vor.u32 %v4102_v10, %v3357_v9  ;;  %v4157_v9 = vld [vmem:[#allocation20 + $0xd0] sm:$0xff] }
 0x36f   :  { %3307 = vmatmul.msk.f32.vlgmr.msrb.gmra.mxu3 %vm551_vm7, %v618_v25 }
 0x370   :  { %3309 = vmatpush.xpose.msk.msrb.mxu3 %vm551_vm7, %v535_v24 }
 0x3ea   :  { %v613_v26 = vpop.f32.mrf.mxu3 }
 0x3eb   :  { %616 = vst.msk [vmem:[#allocation2] sm:$0xff] %vm551_vm7, %v613_v26 }
 0x3f2   :  { %v642_v27 = vpop.f32.mrf.mxu3 }
 0x3f3   :  { %v645_v28 = vmul.f32 0.125, %v642_v27 }
 0x3f5   :  { %v646_v29 = vadd.f32 %v645_v28, %v5016_v5 }
 0x3f7   :  { %v647_v30 = vsel %vm581_vm8, %v646_v29, -inf }
 0x3f8   :  { %648 = vmax.xlane.f32.xlu2 %v647_v30 }
 0x410   :  { %757 = vrot.lane.b32.xlu2 %v535_v24, %s4801_s8  ;;  %v4304_v24 = vld [vmem:[%s5296_s7] ss:$0 sm:$0xff] }
 0x46b   :  { %v649_v31 = vpop.xlane.xlu2 %648 }
 0x46c   :  { %v650_v32 = vsub.f32 %v646_v29, %v649_v31 }
 0x46e   :  { %v651_v33 = vmul.f32 1.442695, %v650_v32 }
 0x470   :  { %4328 = vpow2.f32 %v651_v33 }
 0x473   :  { %v758_v34 = vpop.permute.xlu2 %757 }
 0x474   :  { %3312 = vmatpush.xpose.msk.msra.mxu0 %vm551_vm7, %v758_v34 }
 0x476   :  { %v4329_v35 = vpop.eup %4328 }
 0x477   :  { %3313 = vmatmul.msk.f32.vlgmr.msra.gmra.mxu0 %vm551_vm7, %v756_v18  ;;  %v653_v36 = vsel %vm581_vm8, %v4329_v35, 0.0  ;;  %v4091_v18 = vld [vmem:[#allocation14] sm:$0xff] }
 0x478   :  { %654 = vadd.xlane.f32.xlu1 %v653_v36  ;;  %906 = vmatpush.bf16.msrb.mxu2 %v4091_v18  ;;  %v3415_v18 = vld [vmem:[#allocation18 + $0x90] sm:$0xf0] }
 0x4eb   :  { %v655_v37 = vpop.xlane.xlu1 %654 }
 0x4ec   :  { %4330 = vrcp.f32 %v655_v37 }
 0x4f2   :  { %v4331_v39 = vpop.eup %4330 }
 0x4f3   :  { %v657_v40 = vmul.f32 %v4331_v39, %v4329_v35  ;;  %v4127_v39 = vld [vmem:[#allocation18 + $0xe4] sm:$0xf] }
 0x4f4   :  { %v780_v43 = vpop.f32.mrf.mxu0 }
 0x4f5   :  { %v783_v44 = vmul.f32 0.125, %v780_v43  ;;  %3308 = vmatmul.msk.f32.vlgmr.msra.gmra.mxu3 %vm581_vm8, %v657_v40  ;;  %v3469_v43 = vld [vmem:[#allocation18 + $0xe8] sm:$0xf] }
 0x4f6   :  { %749 = vmatpush.msra.mxu3 %v549_v42 }
 0x4f7   :  { %v784_v45 = vadd.f32 %v783_v44, %v5031_v41  ;;  %v4130_v44 = vld [vmem:[#allocation18 + $0xf4] sm:$0xf0] }
 0x4f9   :  { %v785_v46 = vsel %vm581_vm8, %v784_v45, -inf }
 0x4fa   :  { %786 = vmax.xlane.f32.xlu2 %v785_v46  ;;  %v3470_v46 = vor.u32 %v4130_v44, %v3469_v43  ;;  %v3383_v43 = vld [vmem:[#allocation18 + $0x50] sm:$0xf0]  ;;  %v3389_v44 = vld [vmem:[#allocation18 + $0x48] sm:$0xf] }
 0x4fc   :  { %1198 = vmatpush.bf16.msrb.mxu1 %v3470_v46 }
 0x4fd   :  { %3310 = vmatmul.msk.f32.vlgmr.msrb.gmra.mxu3 %vm551_vm7, %v5010_v2 }
 0x512   :  { %797 = vrot.lane.b32.xlu2 %v549_v42, %s4801_s8  ;;  %v3463_v42 = vld [vmem:[#allocation18 + $0xf0] sm:$0xf0] }
 0x56d   :  { %v787_v47 = vpop.xlane.xlu2 %786 }
 0x56e   :  { %v788_v48 = vsub.f32 %v784_v45, %v787_v47  ;;  %v3466_v45 = vor.u32 %v4127_v39, %v3463_v42  ;;  %v4128_v47 = vld [vmem:[#allocation18 + $0xec] sm:$0xf]  ;;  %v4109_v39 = vld [vmem:[#allocation18 + $0x4c] sm:$0xf0] }
 0x570   :  { %v789_v49 = vmul.f32 1.442695, %v788_v48  ;;  %v3471_v48 = vld [vmem:[#allocation18 + $0xf8] sm:$0xf0] }
 0x572   :  { %4332 = vpow2.f32 %v789_v49  ;;  %v3474_v49 = vor.u32 %v4128_v47, %v3471_v48  ;;  %v4108_v48 = vld [vmem:[#allocation18 + $0x4c] sm:$0xf] }
 0x574   :  { %1212 = vmatpush.bf16.msra.mxu2 %v3474_v49  ;;  %v3391_v49 = vld [vmem:[#allocation18 + $0x58] sm:$0xf0] }
 0x575   :  { %v798_v50 = vpop.permute.xlu2 %797 }
 0x576   :  { %818 = vmatpush.msrb.mxu0 %v798_v50  ;;  %v3445_v50 = vld [vmem:[#allocation18 + $0xc0] sm:$0xf] }
 0x578   :  { %v4333_v51 = vpop.eup %4332  ;;  %v682_v52 = vpop.f32.mrf.mxu3  ;;  %1184 = vmatpush.bf16.msra.mxu0 %v3466_v45  ;;  %v4110_v45 = vld [vmem:[#allocation18 + $0x54] sm:$0xf0] }
 0x579   :  { %v791_v53 = vsel %vm581_vm8, %v4333_v51, 0.0  ;;  %v3390_v47 = vor.u32 %v4110_v45, %v3389_v44  ;;  %v4154_v45 = vld [vmem:[#allocation20 + $0xb8] sm:$0xff] }
 0x57a   :  { %792 = vadd.xlane.f32.xlu1 %v791_v53 }
 0x580   :  { %v714_v56 = vpop.f32.mrf.mxu3 }
 0x581   :  { %v717_v11 = vmul.f32 0.125, %v714_v56  ;;  %v3447_v56 = vld [vmem:[#allocation18 + $0xd0] sm:$0xf0] }
 0x583   :  { %v719_v57 = vadd.f32 %v5031_v41, %v717_v11  ;;  %v3453_v11 = vld [vmem:[#allocation18 + $0xc8] sm:$0xf] }
 0x585   :  { %v720_v58 = vsel %vm581_vm8, %v719_v57, -inf }
 0x586   :  { %721 = vmax.xlane.f32.xlu0 %v720_v58 }
 0x59a   :  { %686 = vrot.lane.b32.xlu0 %v682_v52, %s4801_s8  ;;  %v4123_v52 = vld [vmem:[#allocation18 + $0xc4] sm:$0xf] }
 0x59b   :  { %v3450_v58 = vor.u32 %v4123_v52, %v3447_v56  ;;  %v4105_v52 = vld [vmem:[#allocation18 + $0x2c] sm:$0xf0] }
 0x59d   :  { %1185 = vmatpush.bf16.msra.mxu0 %v3450_v58  ;;  %v4106_v58 = vld [vmem:[#allocation18 + $0x34] sm:$0xf0] }
 0x5ed   :  { %v793_v15 = vpop.xlane.xlu1 %792 }
 0x5ee   :  { %4334 = vrcp.f32 %v793_v15 }
 0x5f4   :  { %v4335_v59 = vpop.eup %4334 }
 0x5f5   :  { %v795_v60 = vmul.f32 %v4335_v59, %v4333_v51  ;;  %v4125_v51 = vld [vmem:[#allocation18 + $0xcc] sm:$0xf0]  ;;  %v4124_v59 = vld [vmem:[#allocation18 + $0xcc] sm:$0xf] }
 0x5f6   :  { %v3446_v53 = vor.u32 %v4125_v51, %v3445_v50  ;;  %v3394_v50 = vor.u32 %v4108_v48, %v3391_v49  ;;  %v3365_v51 = vld [vmem:[#allocation18 + $0x20] sm:$0xf]  ;;  %v4162_v48 = vld [vmem:[#allocation20 + $0xf8] sm:$0xff]  ;;  %v4144_v49 = vld [vmem:[#allocation20 + $0x68] sm:$0xff] }
 0x5f7   :  { %3314 = vmatmul.msk.f32.vlgmr.msrb.gmra.mxu0 %vm581_vm8, %v795_v60  ;;  %v3455_v60 = vld [vmem:[#allocation18 + $0xd8] sm:$0xf0]  ;;  %v3366_v56 = vor.u32 %v4105_v52, %v3365_v51  ;;  %v4137_v51 = vld [vmem:[#allocation20 + $0x30] sm:$0xff] }
 0x5f8   :  { %v4161_v52 = vld [vmem:[#allocation20 + $0xf0] sm:$0xff] }
 0x5f9   :  { %v722_v61 = vpop.xlane.xlu0 %721 }
 0x5fa   :  { %v723_v62 = vsub.f32 %v719_v57, %v722_v61  ;;  %v4126_v57 = vld [vmem:[#allocation18 + $0xd4] sm:$0xf0]  ;;  %v3458_v61 = vor.u32 %v4124_v59, %v3455_v60 }
 0x5fb   :  { %v3454_v15 = vor.u32 %v4126_v57, %v3453_v11  ;;  %v3367_v11 = vld [vmem:[#allocation18 + $0x30] sm:$0xf0]  ;;  %v3373_v57 = vld [vmem:[#allocation18 + $0x28] sm:$0xf] }
 0x5fc   :  { %v724_v63 = vmul.f32 1.442695, %v723_v62  ;;  %v3429_v62 = vld [vmem:[#allocation18 + $0xa0] sm:$0xf]  ;;  %1213 = vmatpush.bf16.msra.mxu2 %v3458_v61  ;;  %v3374_v60 = vor.u32 %v4106_v58, %v3373_v57  ;;  %v4104_v61 = vld [vmem:[#allocation18 + $0x2c] sm:$0xf] }
 0x5fd   :  { %1199 = vmatpush.bf16.msrb.mxu1 %v3454_v15  ;;  %v4160_v57 = vld [vmem:[#allocation20 + $0xe8] sm:$0xff]  ;;  %v4142_v58 = vld [vmem:[#allocation20 + $0x58] sm:$0xff] }
 0x5fe   :  { %4336 = vpow2.f32 %v724_v63  ;;  %v4121_v63 = vld [vmem:[#allocation18 + $0xac] sm:$0xf0] }
 0x600   :  { %1214 = vmatpush.bf16.msra.mxu2 %v3442_v12  ;;  %v4100_v12 = vld [vmem:[#allocation18 + $0xc] sm:$0xf] }
 0x604   :  { %v4337_v0 = vpop.eup %4336 }
 0x605   :  { %v726_v1 = vsel %vm581_vm8, %v4337_v0, 0.0 }
 0x606   :  { %727 = vadd.xlane.f32.xlu1 %v726_v1  ;;  %v3430_v1 = vor.u32 %v4121_v63, %v3429_v62  ;;  %v3375_v62 = vld [vmem:[#allocation18 + $0x38] sm:$0xf0]  ;;  %v3349_v63 = vld [vmem:[#allocation18] sm:$0xf] }
 0x60c   :  { %v687_v2 = vpop.permute.xlu0 %686 }
 0x60d   :  { %690 = vst.msk [vmem:[#allocation2] sm:$0xff] %vm689_vm9, %v687_v2  ;;  %v3431_v2 = vld [vmem:[#allocation18 + $0xb0] sm:$0xf0] }
 0x614   :  { %v828_v21 = vld [vmem:[#allocation2] sm:$0xff] }
 0x674   :  { %v820_v3 = vpop.f32.mrf.mxu0 }
 0x675   :  { %824 = vrot.lane.b32.xlu1 %v820_v3, %s4801_s8  ;;  %v3437_v3 = vld [vmem:[#allocation18 + $0xa8] sm:$0xf] }
 0x679   :  { %v728_v4 = vpop.xlane.xlu1 %727 }
 0x67a   :  { %4338 = vrcp.f32 %v728_v4  ;;  %v4122_v4 = vld [vmem:[#allocation18 + $0xb4] sm:$0xf0] }
 0x680   :  { %v4339_v6 = vpop.eup %4338 }
 0x681   :  { %v730_v7 = vmul.f32 %v4339_v6, %v4337_v0  ;;  %v4119_v0 = vld [vmem:[#allocation18 + $0xa4] sm:$0xf] }
 0x682   :  { %v3434_v6 = vor.u32 %v4119_v0, %v3431_v2  ;;  %v4101_v2 = vld [vmem:[#allocation18 + $0xc] sm:$0xf0] }
 0x683   :  { %3311 = vmatmul.msk.f32.vlgmr.msra.gmra.mxu3 %vm581_vm8, %v730_v7  ;;  %v3438_v7 = vor.u32 %v4122_v4, %v3437_v3  ;;  %v4099_v3 = vld [vmem:[#allocation18 + $0x4] sm:$0xf]  ;;  %v3351_v4 = vld [vmem:[#allocation18 + $0x10] sm:$0xf0] }
 0x684   :  { %1186 = vmatpush.bf16.msra.mxu0 %v3434_v6  ;;  %v3350_v6 = vor.u32 %v4101_v2, %v3349_v63  ;;  %v5080_v63 = vld [vmem:[%s5300_s11] sm:$0xf]  ;;  %v4140_v2 = vld [vmem:[#allocation20 + $0x48] sm:$0xff] }
 0x685   :  { %1200 = vmatpush.bf16.msrb.mxu1 %v3438_v7  ;;  %v3354_v7 = vor.u32 %v4099_v3, %v3351_v4  ;;  %v4148_v3 = vld [vmem:[#allocation20 + $0x88] sm:$0xff]  ;;  %v1003_v4 = vperm.slane %v5080_v63, 1 }
 0x6e7   :  { %v825_v20 = vpop.permute.xlu1 %824 }
 0x706   :  { %v751_v19 = vpop.f32.mrf.mxu3 }
 0x707   :  { %754 = vst.msk [vmem:[#allocation2 + $0x8] sm:$0xff] %vm551_vm7, %v751_v19  ;;  %v3421_v19 = vld [vmem:[#allocation18 + $0x88] sm:$0xf] }
 0x708   :  { %827 = vst.msk [vmem:[#allocation2 + $0x8] sm:$0xff] %vm689_vm9, %v825_v20  ;;  %v4118_v20 = vld [vmem:[#allocation18 + $0x94] sm:$0xf0] }
 0x70f   :  { %v829_v22 = vld [vmem:[#allocation2 + $0x8] sm:$0xff] }
 0x710   :  { %v846_v23 = vpack.c.bf16 %v829_v22, %v828_v21  ;;  %v3418_v21 = vor.u32 %v4115_v16, %v3415_v18  ;;  %v3422_v22 = vor.u32 %v4118_v20, %v3421_v19  ;;  %v3359_v16 = vld [vmem:[#allocation18 + $0x18] sm:$0xf0] }
 0x712   :  { %907 = vmatmul.bf16.vlgmr.msrb.gmra.mxu2 %v846_v23  ;;  %v4116_v23 = vld [vmem:[#allocation18 + $0x8c] sm:$0xf]  ;;  %1187 = vmatpush.bf16.msra.mxu0 %v3418_v21 }
 0x713   :  { %1201 = vmatpush.bf16.msrb.mxu1 %v3422_v22 }
 0x795   :  { %v908_v25 = vpop.f32.mrf.mxu2 }
 0x796   :  { %v909_v26 = vadd.f32 %v4304_v24, %v908_v25 }
 0x798   :  { %v913_v27 = vadd.f32 %v909_v26, %v4993_v54  ;;  %v3397_v26 = vld [vmem:[#allocation18 + $0x60] sm:$0xf] }
 0x79a   :  { %917 = vadd.xlane.f32.xlu2 %v913_v27 }
 0x79d   :  { %v910_v28 = vpop.f32.mrf.mxu2 }
 0x79e   :  { %v911_v29 = vadd.f32 %v4304_v24, %v910_v28  ;;  %v3423_v24 = vld [vmem:[#allocation18 + $0x98] sm:$0xf0]  ;;  %v4111_v28 = vld [vmem:[#allocation18 + $0x64] sm:$0xf] }
 0x79f   :  { %v3426_v25 = vor.u32 %v4116_v23, %v3423_v24 }
 0x7a0   :  { %v914_v30 = vadd.f32 %v911_v29, %v4995_v55  ;;  %v3461_v55 = vld [vmem:[#allocation18 + $0xe0] sm:$0xf] }
 0x7a1   :  { %v3462_v40 = vor.u32 %v4129_v38, %v3461_v55  ;;  %1215 = vmatpush.bf16.msra.mxu2 %v3426_v25  ;;  %v3381_v38 = vld [vmem:[#allocation18 + $0x40] sm:$0xf] }
 0x7a2   :  { %919 = vadd.xlane.f32.xlu0 %v914_v30  ;;  %v3382_v42 = vor.u32 %v4109_v39, %v3381_v38  ;;  %v4306_v39 = vld [vmem:[#allocation17] ss:$0 sm:$0xff] }
 0x7a3   :  { %1170 = vmatpush.bf16.msrb.mxu3 %v3462_v40  ;;  %v4107_v40 = vld [vmem:[#allocation18 + $0x44] sm:$0xf] }
 0x7a4   :  { %v3386_v46 = vor.u32 %v4107_v40, %v3383_v43 }
 0x7a7   :  { %1171 = vmatpush.bf16.msrb.mxu3 %v3446_v53  ;;  %v4103_v53 = vld [vmem:[#allocation18 + $0x24] sm:$0xf] }
 0x7a8   :  { %v3370_v59 = vor.u32 %v4103_v53, %v3367_v11  ;;  %v4143_v53 = vld [vmem:[#allocation20 + $0x60] sm:$0xff]  ;;  %v4136_v11 = vld [vmem:[#allocation20 + $0x28] sm:$0xff] }
 0x7ab   :  { %1172 = vmatpush.bf16.msrb.mxu3 %v3430_v1  ;;  %v3378_v1 = vor.u32 %v4104_v61, %v3375_v62  ;;  %v4141_v61 = vld [vmem:[#allocation20 + $0x50] sm:$0xff] }
 0x7ac   :  { %v4149_v62 = vld [vmem:[#allocation20 + $0x90] sm:$0xff] }
 0x7af   :  { %1173 = vmatpush.bf16.msrb.mxu3 %v3414_v17  ;;  %v3362_v17 = vor.u32 %v4100_v12, %v3359_v16  ;;  %v4139_v12 = vld [vmem:[#allocation20 + $0x40] sm:$0xff] }
 0x80d   :  { %v918_v31 = vpop.xlane.xlu2 %917 }
 0x80e   :  { %v921_v32 = vmul.f32 %v918_v31, %v4977_v8  ;;  %v3405_v31 = vld [vmem:[#allocation18 + $0x68] sm:$0xf] }
 0x810   :  { %v5058_v33 = vsub.f32 %v913_v27, %v921_v32  ;;  %v4113_v27 = vld [vmem:[#allocation18 + $0x6c] sm:$0xf0]  ;;  %v4114_v32 = vld [vmem:[#allocation18 + $0x74] sm:$0xf0] }
 0x811   :  { %v3398_v29 = vor.u32 %v4113_v27, %v3397_v26 }
 0x812   :  { %v925_v34 = vmul.f32 %v5058_v33, %v5058_v33 }
 0x813   :  { %1174 = vmatpush.bf16.msrb.mxu3 %v3398_v29 }
 0x814   :  { %927 = vadd.xlane.f32.xlu1 %v925_v34 }
 0x815   :  { %v920_v35 = vpop.xlane.xlu0 %919 }
 0x816   :  { %v922_v36 = vmul.f32 %v920_v35, %v4977_v8  ;;  %v3406_v35 = vor.u32 %v4114_v32, %v3405_v31 }
 0x817   :  { %1175 = vmatpush.bf16.msrb.mxu3 %v3382_v42 }
 0x818   :  { %v5063_v37 = vsub.f32 %v914_v30, %v922_v36  ;;  %v3399_v30 = vld [vmem:[#allocation18 + $0x70] sm:$0xf0]  ;;  %v4112_v36 = vld [vmem:[#allocation18 + $0x6c] sm:$0xf]  ;;  %1202 = vmatpush.bf16.msrb.mxu1 %v3406_v35  ;;  %v4305_v35 = vld [vmem:[#allocation15] ss:$0 sm:$0xff] }
 0x819   :  { %v3402_v34 = vor.u32 %v4111_v28, %v3399_v30 }
 0x81a   :  { %v926_v54 = vmul.f32 %v5063_v37, %v5063_v37 }
 0x81b   :  { %1188 = vmatpush.bf16.msra.mxu0 %v3402_v34  ;;  %1176 = vmatpush.bf16.msrb.mxu3 %v3366_v56  ;;  %v4151_v56 = vld [vmem:[#allocation20 + $0xa0] sm:$0xff] }
 0x81c   :  { %929 = vadd.xlane.f32.xlu2 %v926_v54  ;;  %v3407_v54 = vld [vmem:[#allocation18 + $0x78] sm:$0xf0]  ;;  %1203 = vmatpush.bf16.msrb.mxu1 %v3390_v47 }
 0x81d   :  { %v3410_v55 = vor.u32 %v4112_v36, %v3407_v54  ;;  %v4138_v47 = vld [vmem:[#allocation20 + $0x38] sm:$0xff] }
 0x81f   :  { %1216 = vmatpush.bf16.msra.mxu2 %v3410_v55  ;;  %1189 = vmatpush.bf16.msra.mxu0 %v3386_v46  ;;  %v4145_v46 = vld [vmem:[#allocation20 + $0x70] sm:$0xff] }
 0x820   :  { %1204 = vmatpush.bf16.msrb.mxu1 %v3374_v60  ;;  %1177 = vmatpush.bf16.msrb.mxu3 %v3350_v6  ;;  %v4159_v60 = vld [vmem:[#allocation20 + $0xe0] sm:$0xff]  ;;  %v1004_v6 = vperm.slane %v5080_v63, 2 }
 0x823   :  { %1217 = vmatpush.bf16.msra.mxu2 %v3394_v50  ;;  %1190 = vmatpush.bf16.msra.mxu0 %v3370_v59  ;;  %v4152_v50 = vld [vmem:[#allocation20 + $0xa8] sm:$0xff]  ;;  %v4135_v59 = vld [vmem:[#allocation20 + $0x20] sm:$0xff] }
 0x824   :  { %1205 = vmatpush.bf16.msrb.mxu1 %v3358_v14  ;;  %1562 = vmatpush.bf16.msra.mxu3 %v4138_v47 }
 0x827   :  { %1218 = vmatpush.bf16.msra.mxu2 %v3378_v1  ;;  %1191 = vmatpush.bf16.msra.mxu0 %v3354_v7  ;;  %v4158_v1 = vld [vmem:[#allocation20 + $0xd8] sm:$0xff]  ;;  %v4133_v7 = vld [vmem:[#allocation20 + $0x10] sm:$0xff] }
 0x828   :  { %1590 = vmatpush.bf16.msra.mxu1 %v4154_v45  ;;  %1563 = vmatpush.bf16.msra.mxu3 %v4137_v51 }
 0x82b   :  { %1219 = vmatpush.bf16.msra.mxu2 %v3362_v17 }
 0x82c   :  { %1564 = vmatpush.bf16.msra.mxu3 %v4136_v11 }
 0x82f   :  { %1604 = vmatpush.bf16.msrb.mxu2 %v4162_v48 }
 0x830   :  { %1565 = vmatpush.bf16.msra.mxu3 %v4135_v59 }
 0x833   :  { %1605 = vmatpush.bf16.msrb.mxu2 %v4161_v52 }
 0x837   :  { %1606 = vmatpush.bf16.msrb.mxu2 %v4160_v57 }
 0x83b   :  { %1607 = vmatpush.bf16.msrb.mxu2 %v4159_v60 }
 0x83f   :  { %1608 = vmatpush.bf16.msrb.mxu2 %v4158_v1 }
 0x843   :  { %1609 = vmatpush.bf16.msrb.mxu2 %v4157_v9 }
 0x887   :  { %v928_v15 = vpop.xlane.xlu1 %927 }
 0x888   :  { %v931_v0 = vmul.f32 %v928_v15, %v4977_v8  ;;  %v4150_v15 = vld [vmem:[#allocation20 + $0x98] sm:$0xff] }
 0x88a   :  { %v933_v13 = vadd.f32 1e-12, %v931_v0  ;;  %v4134_v0 = vld [vmem:[#allocation20 + $0x18] sm:$0xff] }
 0x88b   :  { %1566 = vmatpush.bf16.msra.mxu3 %v4134_v0 }
 0x88c   :  { %4340 = vrsqrt.f32 %v933_v13  ;;  %vm941_vm11 = vweird.f32 %v933_v13 }
 0x88f   :  { %v930_v18 = vpop.xlane.xlu2 %929  ;;  %1567 = vmatpush.bf16.msra.mxu3 %v4133_v7 }
 0x890   :  { %v932_v19 = vmul.f32 %v930_v18, %v4977_v8  ;;  %v4132_v18 = vld [vmem:[#allocation20 + $0x8] sm:$0xff] }
 0x892   :  { %v4341_v20 = vpop.eup %4340  ;;  %v934_v21 = vadd.f32 1e-12, %v932_v19  ;;  %v4156_v19 = vld [vmem:[#allocation20 + $0xc8] sm:$0xff] }
 0x893   :  { %v936_v22 = vmul.f32 %v4341_v20, %v933_v13  ;;  %vm942_vm10 = vweird.f32 %v4341_v20  ;;  %v4147_v13 = vld [vmem:[#allocation20 + $0x80] sm:$0xff]  ;;  %1568 = vmatpush.bf16.msra.mxu3 %v4132_v18  ;;  %1610 = vmatpush.bf16.msrb.mxu2 %v4156_v19 }
 0x894   :  { %4342 = vrsqrt.f32 %v934_v21  ;;  %vm943_vm12 = vmor %vm941_vm11, %vm942_vm10  ;;  %vm951_vm14 = vweird.f32 %v934_v21 }
 0x895   :  { %v937_v23 = vmul.f32 %v4341_v20, %v936_v22 }
 0x897   :  { %v938_v24 = vmul.f32 0.5, %v937_v23  ;;  %v1005_v23 = vperm.slane %v5080_v63, 3 }
 0x899   :  { %v939_v25 = vsub.f32 1.5, %v938_v24 }
 0x89a   :  { %v4343_v26 = vpop.eup %4342 }
 0x89b   :  { %v940_v27 = vmul.f32 %v4341_v20, %v939_v25  ;;  %v946_v28 = vmul.f32 %v4343_v26, %v934_v21  ;;  %vm952_vm13 = vweird.f32 %v4343_v26  ;;  %v1002_v21 = vperm.slane %v5080_v63, 0 }
 0x89c   :  { %vm953_vm15 = vmor %vm951_vm14, %vm952_vm13 }
 0x89d   :  { %v947_v29 = vmul.f32 %v4343_v26, %v946_v28  ;;  %v944_v30 = vsel %vm943_vm12, %v4341_v20, %v940_v27  ;;  %v4131_v27 = vld [vmem:[#allocation20] sm:$0xff] }
 0x89e   :  { %v955_v34 = vmul.f32 %v944_v30, %v5058_v33  ;;  %v4146_v33 = vld [vmem:[#allocation20 + $0x78] sm:$0xff]  ;;  %v4155_v28 = vld [vmem:[#allocation20 + $0xc0] sm:$0xff]  ;;  %1569 = vmatpush.bf16.msra.mxu3 %v4131_v27 }
 0x89f   :  { %v948_v31 = vmul.f32 0.5, %v947_v29  ;;  %1576 = vmatpush.bf16.msrb.mxu0 %v4146_v33  ;;  %1611 = vmatpush.bf16.msrb.mxu2 %v4155_v28 }
 0x8a0   :  { %v960_v38 = vmul.f32 %v4305_v35, %v955_v34 }
 0x8a1   :  { %v949_v32 = vsub.f32 1.5, %v948_v31 }
 0x8a2   :  { %v5071_v42 = vadd.f32 %v4306_v39, %v960_v38 }
 0x8a3   :  { %v950_v36 = vmul.f32 %v4343_v26, %v949_v32  ;;  %1577 = vmatpush.bf16.msrb.mxu0 %v4145_v46 }
 0x8a5   :  { %v954_v54 = vsel %vm953_vm15, %v4343_v26, %v950_v36 }
 0x8a6   :  { %v956_v55 = vmul.f32 %v954_v54, %v5063_v37  ;;  %v4153_v37 = vld [vmem:[#allocation20 + $0xb0] sm:$0xff] }
 0x8a7   :  { %1591 = vmatpush.bf16.msra.mxu1 %v4153_v37  ;;  %1578 = vmatpush.bf16.msrb.mxu0 %v4144_v49 }
 0x8a8   :  { %v961_v40 = vmul.f32 %v4305_v35, %v956_v55 }
 0x8aa   :  { %v5073_v43 = vadd.f32 %v4306_v39, %v961_v40 }
 0x8ab   :  { %1592 = vmatpush.bf16.msra.mxu1 %v4152_v50  ;;  %1579 = vmatpush.bf16.msrb.mxu0 %v4143_v53 }
 0x8ac   :  { %v999_v44 = vpack.c.bf16 %v5073_v43, %v5071_v42 }
 0x8ae   :  { %1178 = vmatmul.bf16.vlgmr.msrb.gmra.mxu3 %v999_v44  ;;  %1192 = vmatmul.bf16.vlgmr.msra.gmra.mxu0 %v999_v44 }
 0x8af   :  { %1206 = vmatmul.bf16.vlgmr.msrb.gmra.mxu1 %v999_v44  ;;  %1220 = vmatmul.bf16.vlgmr.msra.gmra.mxu2 %v999_v44 }
 0x8b0   :  { %1593 = vmatpush.bf16.msra.mxu1 %v4151_v56  ;;  %1580 = vmatpush.bf16.msrb.mxu0 %v4142_v58 }
 0x8b4   :  { %1594 = vmatpush.bf16.msra.mxu1 %v4150_v15  ;;  %1581 = vmatpush.bf16.msrb.mxu0 %v4141_v61 }
 0x8b8   :  { %1595 = vmatpush.bf16.msra.mxu1 %v4149_v62  ;;  %1582 = vmatpush.bf16.msrb.mxu0 %v4140_v2 }
 0x8bc   :  { %1596 = vmatpush.bf16.msra.mxu1 %v4148_v3  ;;  %1583 = vmatpush.bf16.msrb.mxu0 %v4139_v12 }
 0x8c0   :  { %1597 = vmatpush.bf16.msra.mxu1 %v4147_v13 }
 0x92b   :  { %v1193_v10 = vpop.f32.mrf.mxu0 }
 0x92c   :  { %v5084_v14 = vadd.f32 %v1193_v10, %v1003_v4  ;;  %v1207_v16 = vpop.f32.mrf.mxu1 }
 0x92d   :  { %v5086_v17 = vadd.f32 %v1207_v16, %v1004_v6 }
 0x92e   :  { %v1227_v20 = vmul.f32 %v5084_v14, %v5084_v14 }
 0x92f   :  { %v1228_v22 = vmul.f32 %v5086_v17, %v5086_v17 }
 0x930   :  { %v1235_v24 = vmul.f32 %v1227_v20, %v5084_v14 }
 0x931   :  { %v1236_v25 = vmul.f32 %v1228_v22, %v5086_v17  ;;  %v1179_v26 = vpop.f32.mrf.mxu3 }
 0x932   :  { %v1243_v29 = vmul.f32 0.044715, %v1235_v24  ;;  %v5096_v30 = vadd.f32 %v1179_v26, %v1002_v21  ;;  %v1221_v31 = vpop.f32.mrf.mxu2 }
 0x933   :  { %v1244_v32 = vmul.f32 0.044715, %v1236_v25  ;;  %v5098_v34 = vadd.f32 %v1221_v31, %v1005_v23  ;;  %v1195_v35 = vpop.f32.mrf.mxu0 }
 0x934   :  { %v1251_v36 = vadd.f32 %v1243_v29, %v5084_v14  ;;  %v1226_v54 = vmul.f32 %v5096_v30, %v5096_v30  ;;  %v5103_v55 = vadd.f32 %v1195_v35, %v1003_v4  ;;  %v1209_v38 = vpop.f32.mrf.mxu1 }
 0x935   :  { %v1252_v39 = vadd.f32 %v1244_v32, %v5086_v17  ;;  %v1229_v40 = vmul.f32 %v5098_v34, %v5098_v34  ;;  %v5108_v44 = vadd.f32 %v1209_v38, %v1004_v6 }
 0x936   :  { %v1259_v33 = vmul.f32 0.7978846, %v1251_v36  ;;  %v1234_v45 = vmul.f32 %v1226_v54, %v5096_v30  ;;  %v1231_v46 = vmul.f32 %v5103_v55, %v5103_v55 }
 0x937   :  { %v1260_v37 = vmul.f32 0.7978846, %v1252_v39  ;;  %v1237_v47 = vmul.f32 %v1229_v40, %v5098_v34  ;;  %v1232_v48 = vmul.f32 %v5108_v44, %v5108_v44 }
 0x938   :  { %v1242_v49 = vmul.f32 0.044715, %v1234_v45  ;;  %v1239_v50 = vmul.f32 %v1231_v46, %v5103_v55  ;;  %4344 = vtanh.f32 %v1259_v33 }
 0x939   :  { %v1245_v51 = vmul.f32 0.044715, %v1237_v47  ;;  %v1240_v52 = vmul.f32 %v1232_v48, %v5108_v44  ;;  %v1181_v53 = vpop.f32.mrf.mxu3  ;;  %4346 = vtanh.f32 %v1260_v37 }
 0x93a   :  { %v1250_v56 = vadd.f32 %v1242_v49, %v5096_v30  ;;  %v1247_v11 = vmul.f32 0.044715, %v1239_v50  ;;  %v1182_v57 = vadd.f32 %v1181_v53, %v1002_v21  ;;  %v1223_v58 = vpop.f32.mrf.mxu2 }
 0x93b   :  { %v1253_v15 = vadd.f32 %v1245_v51, %v5098_v34  ;;  %v1248_v59 = vmul.f32 0.044715, %v1240_v52  ;;  %v1224_v60 = vadd.f32 %v1223_v58, %v1005_v23 }
 0x93c   :  { %v1258_v61 = vmul.f32 0.7978846, %v1250_v56  ;;  %v1255_v62 = vadd.f32 %v1247_v11, %v5103_v55  ;;  %v1230_v63 = vmul.f32 %v1182_v57, %v1182_v57 }
 0x93d   :  { %v1261_v0 = vmul.f32 0.7978846, %v1253_v15  ;;  %v1256_v1 = vadd.f32 %v1248_v59, %v5108_v44  ;;  %v1233_v2 = vmul.f32 %v1224_v60, %v1224_v60 }
 0x93e   :  { %4348 = vtanh.f32 %v1258_v61  ;;  %v1263_v3 = vmul.f32 0.7978846, %v1255_v62  ;;  %v1238_v4 = vmul.f32 %v1230_v63, %v1182_v57  ;;  %v4345_v9 = vpop.eup %4344 }
 0x93f   :  { %4350 = vtanh.f32 %v1261_v0  ;;  %v1264_v6 = vmul.f32 0.7978846, %v1256_v1  ;;  %v1241_v7 = vmul.f32 %v1233_v2, %v1224_v60  ;;  %v4347_v12 = vpop.eup %4346  ;;  %v1275_v18 = vadd.f32 1.0, %v4345_v9 }
 0x940   :  { %4352 = vtanh.f32 %v1263_v3  ;;  %v1246_v10 = vmul.f32 0.044715, %v1238_v4  ;;  %v1276_v21 = vadd.f32 1.0, %v4347_v12 }
 0x941   :  { %4354 = vtanh.f32 %v1264_v6  ;;  %v1249_v13 = vmul.f32 0.044715, %v1241_v7  ;;  %v1283_v27 = vmul.f32 0.5, %v1275_v18 }
 0x942   :  { %v1254_v16 = vadd.f32 %v1246_v10, %v1182_v57  ;;  %v1284_v29 = vmul.f32 0.5, %v1276_v21 }
 0x943   :  { %v1257_v19 = vadd.f32 %v1249_v13, %v1224_v60  ;;  %v1291_v38 = vmul.f32 %v1283_v27, %v5084_v14  ;;  %v4186_v27 = vld [vmem:[#allocation11 + $0x178] sm:$0xf0] }
 0x944   :  { %v4349_v20 = vpop.eup %4348  ;;  %v1262_v22 = vmul.f32 0.7978846, %v1254_v16  ;;  %v1292_v33 = vmul.f32 %v1284_v29, %v5086_v17 }
 0x945   :  { %v4351_v23 = vpop.eup %4350  ;;  %v1265_v24 = vmul.f32 0.7978846, %v1257_v19  ;;  %v1274_v32 = vadd.f32 1.0, %v4349_v20 }
 0x946   :  { %v4353_v25 = vpop.eup %4352  ;;  %4356 = vtanh.f32 %v1262_v22  ;;  %v1277_v36 = vadd.f32 1.0, %v4351_v23  ;;  %v4185_v22 = vld [vmem:[#allocation11 + $0x170] sm:$0xf0]  ;;  %v4184_v23 = vld [vmem:[#allocation11 + $0x16c] sm:$0xf] }
 0x947   :  { %v4355_v26 = vpop.eup %4354  ;;  %v1279_v28 = vadd.f32 1.0, %v4353_v25  ;;  %4358 = vtanh.f32 %v1265_v24  ;;  %v1282_v37 = vmul.f32 0.5, %v1274_v32  ;;  %v3691_v25 = vld [vmem:[#allocation11 + $0x174] sm:$0xf0]  ;;  %v4182_v32 = vld [vmem:[#allocation11 + $0x158] sm:$0xf0] }
 0x948   :  { %v1280_v31 = vadd.f32 1.0, %v4355_v26  ;;  %v1285_v49 = vmul.f32 0.5, %v1277_v36  ;;  %v3697_v26 = vld [vmem:[#allocation11 + $0x170] sm:$0xf] }
 0x949   :  { %v1287_v35 = vmul.f32 0.5, %v1279_v28  ;;  %v1290_v14 = vmul.f32 %v1282_v37, %v5096_v30  ;;  %v3694_v28 = vor.u32 %v4184_v23, %v3691_v25  ;;  %v3698_v29 = vor.u32 %v4186_v27, %v3697_v26  ;;  %v4178_v37 = vld [vmem:[#allocation11 + $0x13c] sm:$0xf]  ;;  %v3605_v26 = vld [vmem:[#allocation11 + $0xc0] sm:$0xf] }
 0x94a   :  { %v1288_v54 = vmul.f32 0.5, %v1280_v31  ;;  %v3677_v31 = vld [vmem:[#allocation11 + $0x150] sm:$0xf]  ;;  %v4164_v27 = vld [vmem:[#allocation11 + $0xc8] sm:$0xf0] }
 0x94b   :  { %v1295_v39 = vmul.f32 %v1287_v35, %v5103_v55  ;;  %v1293_v55 = vmul.f32 %v1285_v49, %v5098_v34  ;;  %1857 = vmatpush.bf16.msra.mxu0 %v3694_v28  ;;  %1871 = vmatpush.bf16.msrb.mxu1 %v3698_v29  ;;  %v4181_v35 = vld [vmem:[#allocation11 + $0x154] sm:$0xf]  ;;  %v3678_v36 = vor.u32 %v4182_v32, %v3677_v31  ;;  %v3673_v49 = vld [vmem:[#allocation11 + $0x140] sm:$0xf]  ;;  %v4163_v28 = vld [vmem:[#allocation11 + $0xc4] sm:$0xf] }
 0x94c   :  { %v4357_v40 = vpop.eup %4356  ;;  %v1296_v45 = vmul.f32 %v1288_v54, %v5108_v44  ;;  %v4307_v44 = vld [vmem:[%s5302_s13] ss:$0 sm:$0xff]  ;;  %v3679_v54 = vld [vmem:[#allocation11 + $0x15c] sm:$0xf0]  ;;  %v3606_v31 = vor.u32 %v4164_v27, %v3605_v26  ;;  %v3607_v32 = vld [vmem:[#allocation11 + $0xcc] sm:$0xf0] }
 0x94d   :  { %v4359_v46 = vpop.eup %4358  ;;  %v1278_v47 = vadd.f32 1.0, %v4357_v40  ;;  %v1363_v48 = vpack.c.bf16 %v1295_v39, %v1291_v38  ;;  %v3685_v38 = vld [vmem:[#allocation11 + $0x158] sm:$0xf]  ;;  %v4183_v39 = vld [vmem:[#allocation11 + $0x160] sm:$0xf0]  ;;  %v3682_v40 = vor.u32 %v4181_v35, %v3679_v54  ;;  %v3610_v54 = vor.u32 %v4163_v28, %v3607_v32 }
 0x94e   :  { %v1281_v50 = vadd.f32 1.0, %v4359_v46  ;;  %v1364_v51 = vpack.c.bf16 %v1296_v45, %v1292_v33  ;;  %v3686_v33 = vor.u32 %v4183_v39, %v3685_v38  ;;  %v3665_v45 = vld [vmem:[#allocation11 + $0x138] sm:$0xf]  ;;  %v4179_v46 = vld [vmem:[#allocation11 + $0x140] sm:$0xf0] }
 0x94f   :  { %v1286_v52 = vmul.f32 0.5, %v1278_v47  ;;  %1584 = vmatmul.bf16.vlgmr.msrb.gmra.mxu0 %v1363_v48  ;;  %v3666_v47 = vor.u32 %v4179_v46, %v3665_v45  ;;  %v3667_v48 = vld [vmem:[#allocation11 + $0x144] sm:$0xf0] }
 0x950   :  { %v1289_v53 = vmul.f32 0.5, %v1281_v50  ;;  %1598 = vmatmul.bf16.vlgmr.msra.gmra.mxu1 %v1364_v51  ;;  %1858 = vmatpush.bf16.msra.mxu0 %v3682_v40  ;;  %v4180_v50 = vld [vmem:[#allocation11 + $0x148] sm:$0xf0]  ;;  %v3670_v51 = vor.u32 %v4178_v37, %v3667_v48  ;;  %v3613_v35 = vld [vmem:[#allocation11 + $0xc8] sm:$0xf] }
 0x951   :  { %v1294_v56 = vmul.f32 %v1286_v52, %v1182_v57  ;;  %1872 = vmatpush.bf16.msrb.mxu1 %v3686_v33  ;;  %v3674_v52 = vor.u32 %v4180_v50, %v3673_v49 }
 0x952   :  { %v1297_v11 = vmul.f32 %v1289_v53, %v1224_v60  ;;  %v3653_v53 = vld [vmem:[#allocation11 + $0x120] sm:$0xf] }
 0x953   :  { %v1362_v17 = vpack.c.bf16 %v1294_v56, %v1290_v14  ;;  %v4176_v14 = vld [vmem:[#allocation11 + $0x128] sm:$0xf0]  ;;  %v4175_v56 = vld [vmem:[#allocation11 + $0x124] sm:$0xf] }
 0x954   :  { %v1365_v58 = vpack.c.bf16 %v1297_v11, %v1293_v55  ;;  %1859 = vmatpush.bf16.msra.mxu0 %v3670_v51  ;;  %v3654_v55 = vor.u32 %v4176_v14, %v3653_v53  ;;  %v3655_v11 = vld [vmem:[#allocation11 + $0x12c] sm:$0xf0] }
 0x955   :  { %1570 = vmatmul.bf16.vlgmr.msra.gmra.mxu3 %v1362_v17  ;;  %1873 = vmatpush.bf16.msrb.mxu1 %v3674_v52  ;;  %v3661_v17 = vld [vmem:[#allocation11 + $0x128] sm:$0xf] }
 0x956   :  { %1612 = vmatmul.bf16.vlgmr.msrb.gmra.mxu2 %v1365_v58  ;;  %v4177_v58 = vld [vmem:[#allocation11 + $0x130] sm:$0xf0] }
 0x9cc   :  { %v1585_v15 = vpop.f32.mrf.mxu0 }
 0x9cd   :  { %v1599_v62 = vpop.f32.mrf.mxu1 }
 0x9d4   :  { %v1587_v60 = vpop.f32.mrf.mxu0 }
 0x9d5   :  { %v1601_v4 = vpop.f32.mrf.mxu1 }
 0x9d8   :  { %v1571_v59 = vpop.f32.mrf.mxu3 }
 0x9d9   :  { %v1572_v61 = vadd.f32 %v4307_v44, %v1571_v59  ;;  %v1613_v0 = vpop.f32.mrf.mxu2  ;;  %v3641_v59 = vld [vmem:[#allocation11 + $0x108] sm:$0xf] }
 0x9db   :  { %v1586_v63 = vadd.f32 %v1585_v15, %v1572_v61  ;;  %v3662_v15 = vor.u32 %v4177_v58, %v3661_v17  ;;  %v4173_v61 = vld [vmem:[#allocation11 + $0x110] sm:$0xf0]  ;;  %v4308_v17 = vld [vmem:[#allocation21] ss:$0 sm:$0xff] }
 0x9dd   :  { %v1600_v1 = vadd.f32 %v1599_v62, %v1586_v63  ;;  %1874 = vmatpush.bf16.msrb.mxu1 %v3662_v15  ;;  %v4172_v62 = vld [vmem:[#allocation11 + $0x10c] sm:$0xf]  ;;  %v3642_v63 = vor.u32 %v4173_v61, %v3641_v59  ;;  %v4309_v61 = vld [vmem:[%s5304_s15] ss:$0 sm:$0xff] }
 0x9df   :  { %v1614_v30 = vadd.f32 %v1613_v0, %v1600_v1  ;;  %v3643_v0 = vld [vmem:[#allocation11 + $0x114] sm:$0xf0]  ;;  %v3649_v1 = vld [vmem:[#allocation11 + $0x110] sm:$0xf] }
 0x9e0   :  { %v1573_v57 = vpop.f32.mrf.mxu3 }
 0x9e1   :  { %v1574_v2 = vadd.f32 %v4307_v44, %v1573_v57  ;;  %v1618_v34 = vadd.f32 %v1614_v30, %v5071_v42  ;;  %v1615_v7 = vpop.f32.mrf.mxu2  ;;  %v3658_v44 = vor.u32 %v4175_v56, %v3655_v11  ;;  %v4174_v30 = vld [vmem:[#allocation11 + $0x118] sm:$0xf0]  ;;  %v3646_v57 = vor.u32 %v4172_v62, %v3643_v0 }
 0x9e3   :  { %v1588_v3 = vadd.f32 %v1587_v60, %v1574_v2  ;;  %1622 = vadd.xlane.f32.xlu0 %v1618_v34  ;;  %1860 = vmatpush.bf16.msra.mxu0 %v3658_v44  ;;  %v3650_v2 = vor.u32 %v4174_v30, %v3649_v1  ;;  %v4170_v60 = vld [vmem:[#allocation11 + $0xf8] sm:$0xf0]  ;;  %v1707_v1 = vld [vmem:[#allocation12 + $0x3] sm:$0x7] }
 0x9e4   :  { %v1710_v30 = vperm.slane %v1707_v1, 1 }
 0x9e5   :  { %v1602_v6 = vadd.f32 %v1601_v4, %v1588_v3  ;;  %1875 = vmatpush.bf16.msrb.mxu1 %v3650_v2  ;;  %v4169_v3 = vld [vmem:[#allocation11 + $0xf4] sm:$0xf] }
 0x9e7   :  { %v1616_v9 = vadd.f32 %v1615_v7, %v1602_v6  ;;  %1861 = vmatpush.bf16.msra.mxu0 %v3646_v57  ;;  %v3631_v6 = vld [vmem:[#allocation11 + $0xfc] sm:$0xf0]  ;;  %v3637_v7 = vld [vmem:[#allocation11 + $0xf8] sm:$0xf]  ;;  %v1711_v57 = vperm.slane %v1707_v1, 2 }
 0x9e9   :  { %v1619_v10 = vadd.f32 %v1616_v9, %v5073_v43  ;;  %v3689_v43 = vld [vmem:[#allocation11 + $0x168] sm:$0xf]  ;;  %v4171_v9 = vld [vmem:[#allocation11 + $0x100] sm:$0xf0] }
 0x9ea   :  { %v3690_v24 = vor.u32 %v4185_v22, %v3689_v43  ;;  %v3625_v43 = vld [vmem:[#allocation11 + $0xe0] sm:$0xf]  ;;  %v4168_v22 = vld [vmem:[#allocation11 + $0xe8] sm:$0xf0] }
 0x9eb   :  { %1624 = vadd.xlane.f32.xlu2 %v1619_v10  ;;  %v3626_v25 = vor.u32 %v4168_v22, %v3625_v43 }
 0x9ec   :  { %1843 = vmatpush.bf16.msrb.mxu3 %v3690_v24 }
 0x9f0   :  { %1844 = vmatpush.bf16.msrb.mxu3 %v3678_v36  ;;  %v4165_v36 = vld [vmem:[#allocation11 + $0xd0] sm:$0xf0] }
 0x9f1   :  { %v3614_v38 = vor.u32 %v4165_v36, %v3613_v35 }
 0x9f4   :  { %1845 = vmatpush.bf16.msrb.mxu3 %v3666_v47 }
 0x9f8   :  { %1846 = vmatpush.bf16.msrb.mxu3 %v3654_v55 }
 0x9fc   :  { %1847 = vmatpush.bf16.msrb.mxu3 %v3642_v63 }
 0xa56   :  { %v1623_v12 = vpop.xlane.xlu0 %1622 }
 0xa57   :  { %v1626_v13 = vmul.f32 %v1623_v12, %v4977_v8  ;;  %v3638_v12 = vor.u32 %v4171_v9, %v3637_v7 }
 0xa59   :  { %v5134_v16 = vsub.f32 %v1618_v34, %v1626_v13  ;;  %v3629_v34 = vld [vmem:[#allocation11 + $0xf0] sm:$0xf]  ;;  %1876 = vmatpush.bf16.msrb.mxu1 %v3638_v12  ;;  %v3617_v13 = vld [vmem:[#allocation11 + $0xd8] sm:$0xf] }
 0xa5a   :  { %v3630_v4 = vor.u32 %v4170_v60, %v3629_v34 }
 0xa5b   :  { %v1630_v18 = vmul.f32 %v5134_v16, %v5134_v16 }
 0xa5c   :  { %1848 = vmatpush.bf16.msrb.mxu3 %v3630_v4 }
 0xa5d   :  { %1632 = vadd.xlane.f32.xlu0 %v1630_v18  ;;  %v4167_v18 = vld [vmem:[#allocation11 + $0xe0] sm:$0xf0]  ;;  %1877 = vmatpush.bf16.msrb.mxu1 %v3626_v25 }
 0xa5e   :  { %v1625_v42 = vpop.xlane.xlu2 %1624 }
 0xa5f   :  { %v1627_v19 = vmul.f32 %v1625_v42, %v4977_v8  ;;  %v4166_v42 = vld [vmem:[#allocation11 + $0xdc] sm:$0xf] }
 0xa61   :  { %v5139_v20 = vsub.f32 %v1619_v10, %v1627_v19  ;;  %v3634_v10 = vor.u32 %v4169_v3, %v3631_v6  ;;  %v3618_v19 = vor.u32 %v4167_v18, %v3617_v13  ;;  %1878 = vmatpush.bf16.msrb.mxu1 %v3614_v38  ;;  %v1709_v3 = vperm.slane %v1707_v1, 0 }
 0xa63   :  { %v1631_v21 = vmul.f32 %v5139_v20, %v5139_v20  ;;  %1862 = vmatpush.bf16.msra.mxu0 %v3634_v10  ;;  %1849 = vmatpush.bf16.msrb.mxu3 %v3618_v19 }
 0xa65   :  { %1634 = vadd.xlane.f32.xlu1 %v1631_v21  ;;  %v3619_v21 = vld [vmem:[#allocation11 + $0xe4] sm:$0xf0] }
 0xa66   :  { %v3622_v24 = vor.u32 %v4166_v42, %v3619_v21 }
 0xa67   :  { %1850 = vmatpush.bf16.msrb.mxu3 %v3606_v31 }
 0xa68   :  { %1863 = vmatpush.bf16.msra.mxu0 %v3622_v24 }
 0xa6c   :  { %1864 = vmatpush.bf16.msra.mxu0 %v3610_v54 }
 0xad0   :  { %v1633_v23 = vpop.xlane.xlu0 %1632 }
 0xad1   :  { %v1636_v29 = vmul.f32 %v1633_v23, %v4977_v8 }
 0xad3   :  { %v1638_v39 = vadd.f32 1e-12, %v1636_v29 }
 0xad5   :  { %4360 = vrsqrt.f32 %v1638_v39  ;;  %vm1646_vm1 = vweird.f32 %v1638_v39 }
 0xad8   :  { %v1635_v40 = vpop.xlane.xlu1 %1634 }
 0xad9   :  { %v1637_v33 = vmul.f32 %v1635_v40, %v4977_v8 }
 0xadb   :  { %v4361_v45 = vpop.eup %4360  ;;  %v1639_v46 = vadd.f32 1e-12, %v1637_v33 }
 0xadc   :  { %v1641_v37 = vmul.f32 %v4361_v45, %v1638_v39  ;;  %vm1647_vm0 = vweird.f32 %v4361_v45 }
 0xadd   :  { %4362 = vrsqrt.f32 %v1639_v46  ;;  %vm1648_vm2 = vmor %vm1646_vm1, %vm1647_vm0  ;;  %vm1656_vm4 = vweird.f32 %v1639_v46 }
 0xade   :  { %v1642_v47 = vmul.f32 %v4361_v45, %v1641_v37 }
 0xae0   :  { %v1643_v48 = vmul.f32 0.5, %v1642_v47 }
 0xae2   :  { %v1644_v49 = vsub.f32 1.5, %v1643_v48 }
 0xae3   :  { %v4363_v50 = vpop.eup %4362 }
 0xae4   :  { %v1645_v51 = vmul.f32 %v4361_v45, %v1644_v49  ;;  %v1651_v52 = vmul.f32 %v4363_v50, %v1639_v46  ;;  %vm1657_vm3 = vweird.f32 %v4363_v50 }
 0xae5   :  { %vm1658_vm5 = vmor %vm1656_vm4, %vm1657_vm3 }
 0xae6   :  { %v1652_v53 = vmul.f32 %v4363_v50, %v1651_v52  ;;  %v1649_v14 = vsel %vm1648_vm2, %v4361_v45, %v1645_v51 }
 0xae7   :  { %v1660_v11 = vmul.f32 %v1649_v14, %v5134_v16 }
 0xae8   :  { %v1653_v56 = vmul.f32 0.5, %v1652_v53 }
 0xae9   :  { %v1665_v59 = vmul.f32 %v4308_v17, %v1660_v11 }
 0xaea   :  { %v1654_v55 = vsub.f32 1.5, %v1653_v56 }
 0xaeb   :  { %v5150_v63 = vadd.f32 %v4309_v61, %v1665_v59 }
 0xaec   :  { %v1655_v58 = vmul.f32 %v4363_v50, %v1654_v55 }
 0xaee   :  { %v1659_v44 = vsel %vm1658_vm5, %v4363_v50, %v1655_v58 }
 0xaef   :  { %v1661_v15 = vmul.f32 %v1659_v44, %v5139_v20 }
 0xaf1   :  { %v1666_v62 = vmul.f32 %v4308_v17, %v1661_v15 }
 0xaf3   :  { %v5152_v0 = vadd.f32 %v4309_v61, %v1666_v62 }
 0xaf5   :  { %v1705_v16 = vpack.c.bf16 %v5152_v0, %v5150_v63 }
 0xaf7   :  { %1851 = vmatmul.bf16.vlgmr.msrb.gmra.mxu3 %v1705_v16  ;;  %1865 = vmatmul.bf16.vlgmr.msra.gmra.mxu0 %v1705_v16 }
 0xaf8   :  { %1879 = vmatmul.bf16.vlgmr.msrb.gmra.mxu1 %v1705_v16 }
 0xb74   :  { %v1866_v20 = vpop.f32.mrf.mxu0 }
 0xb75   :  { %v1867_v2 = vadd.f32 %v1866_v20, %v1710_v30  ;;  %v1880_v34 = vpop.f32.mrf.mxu1 }
 0xb76   :  { %v1881_v60 = vadd.f32 %v1880_v34, %v1711_v57 }
 0xb77   :  { %1950 = vrot.lane.b32.xlu2 %v1867_v2, %s4801_s8  ;;  %3699 = vmatpush.xpose.msk.msra.mxu1 %vm551_vm7, %v1867_v2 }
 0xb78   :  { %1942 = vmatpush.msra.mxu2 %v1881_v60 }
 0xb7a   :  { %v1852_v4 = vpop.f32.mrf.mxu3 }
 0xb7b   :  { %v1853_v6 = vadd.f32 %v1852_v4, %v1709_v3 }
 0xb7c   :  { %v1868_v7 = vpop.f32.mrf.mxu0 }
 0xb7d   :  { %v1869_v9 = vadd.f32 %v1868_v7, %v1710_v30  ;;  %v1882_v10 = vpop.f32.mrf.mxu1  ;;  %1948 = vrot.lane.b32.xlu0 %v1853_v6, %s4801_s8  ;;  %3700 = vmatmul.msk.f32.vlgmr.msra.gmra.mxu1 %vm551_vm7, %v1853_v6  ;;  %v4194_v6 = vld [vmem:[#allocation14 + $0x78] sm:$0xff] }
 0xb7e   :  { %v5160_v12 = vadd.f32 %v1882_v10, %v1711_v57  ;;  %v4192_v10 = vld [vmem:[#allocation14 + $0x68] sm:$0xff] }
 0xb7f   :  { %2086 = vrot.lane.b32.xlu1 %v1869_v9, %s4801_s8  ;;  %3705 = vmatpush.xpose.msk.msrb.mxu1 %vm551_vm7, %v1869_v9  ;;  %v4193_v9 = vld [vmem:[#allocation14 + $0x70] sm:$0xff] }
 0xb80   :  { %2078 = vmatpush.msrb.mxu2 %v5160_v12 }
 0xb82   :  { %v1854_v13 = vpop.f32.mrf.mxu3 }
 0xb83   :  { %v1855_v18 = vadd.f32 %v1854_v13, %v1709_v3  ;;  %2230 = vmatpush.bf16.msra.mxu1 %v4194_v6 }
 0xb85   :  { %2084 = vrot.lane.b32.xlu0 %v1855_v18, %s4801_s8  ;;  %3706 = vmatmul.msk.f32.vlgmr.msrb.gmra.mxu1 %vm551_vm7, %v1855_v18 }
 0xb87   :  { %2231 = vmatpush.bf16.msra.mxu1 %v4193_v9  ;;  %v4216_v9 = vld [vmem:[#allocation18 + $0x1ac] sm:$0xf] }
 0xb8b   :  { %2232 = vmatpush.bf16.msra.mxu1 %v4192_v10  ;;  %v3837_v10 = vld [vmem:[#allocation18 + $0x1b8] sm:$0xf0] }
 0xbd1   :  { %v1951_v42 = vpop.permute.xlu2 %1950 }
 0xbd2   :  { %3702 = vmatpush.xpose.msk.msra.mxu3 %vm551_vm7, %v1951_v42 }
 0xbef   :  { %v1949_v19 = vpop.permute.xlu0 %1948 }
 0xbf0   :  { %3703 = vmatmul.msk.f32.vlgmr.msra.gmra.mxu3 %vm551_vm7, %v1949_v19  ;;  %v4190_v19 = vld [vmem:[#allocation14 + $0x58] sm:$0xff] }
 0xbf1   :  { %v2087_v21 = vpop.permute.xlu1 %2086 }
 0xbf2   :  { %3708 = vmatpush.xpose.msk.msrb.mxu3 %vm551_vm7, %v2087_v21  ;;  %v4189_v21 = vld [vmem:[#allocation14 + $0x50] sm:$0xff] }
 0xbf7   :  { %v2085_v43 = vpop.permute.xlu0 %2084 }
 0xbf8   :  { %3709 = vmatmul.msk.f32.vlgmr.msrb.gmra.mxu3 %vm551_vm7, %v2085_v43  ;;  %v4188_v43 = vld [vmem:[#allocation14 + $0x48] sm:$0xff] }
 0xbfa   :  { %v1908_v22 = vpop.f32.mrf.mxu1 }
 0xbfb   :  { %v1911_v23 = vmul.f32 0.125, %v1908_v22  ;;  %v4187_v22 = vld [vmem:[#allocation14 + $0x40] sm:$0xff] }
 0xbfd   :  { %v1912_v24 = vadd.f32 %v1911_v23, %v5016_v5 }
 0xbff   :  { %v1913_v25 = vsel %vm581_vm8, %v1912_v24, -inf }
 0xc00   :  { %1914 = vmax.xlane.f32.xlu0 %v1913_v25 }
 0xc02   :  { %v2044_v28 = vpop.f32.mrf.mxu1 }
 0xc03   :  { %v2047_v31 = vmul.f32 0.125, %v2044_v28  ;;  %v4310_v28 = vld [vmem:[%s5296_s7 + $0x1] ss:$0 sm:$0xff] }
 0xc05   :  { %v2048_v54 = vadd.f32 %v2047_v31, %v5031_v41 }
 0xc07   :  { %v2049_v40 = vsel %vm581_vm8, %v2048_v54, -inf }
 0xc73   :  { %v1973_v26 = vpop.f32.mrf.mxu3  ;;  %v1915_v46 = vpop.xlane.xlu0 %1914 }
 0xc74   :  { %v1976_v27 = vmul.f32 0.125, %v1973_v26  ;;  %v1916_v50 = vsub.f32 %v1912_v24, %v1915_v46 }
 0xc76   :  { %v1977_v29 = vadd.f32 %v1976_v27, %v5016_v5  ;;  %v1917_v52 = vmul.f32 1.442695, %v1916_v50  ;;  %v3867_v50 = vld [vmem:[#allocation18 + $0x1e8] sm:$0xf] }
 0xc78   :  { %v1978_v32 = vsel %vm581_vm8, %v1977_v29, -inf }
 0xc79   :  { %1979 = vmax.xlane.f32.xlu2 %v1978_v32 }
 0xc7b   :  { %v2109_v35 = vpop.f32.mrf.mxu3 }
 0xc7c   :  { %v2112_v36 = vmul.f32 0.125, %v2109_v35 }
 0xc7e   :  { %v2113_v38 = vadd.f32 %v2112_v36, %v5031_v41 }
 0xc80   :  { %v2114_v39 = vsel %vm581_vm8, %v2113_v38, -inf }
 0xc81   :  { %2115 = vmax.xlane.f32.xlu1 %v2114_v39  ;;  %2050 = vmax.xlane.f32.xlu2 %v2049_v40 }
 0xc99   :  { %1990 = vrot.lane.b32.xlu2 %v1881_v60, %s4801_s8 }
 0xcec   :  { %v1980_v33 = vpop.xlane.xlu2 %1979 }
 0xced   :  { %v1981_v5 = vsub.f32 %v1977_v29, %v1980_v33 }
 0xcef   :  { %v1982_v45 = vmul.f32 1.442695, %v1981_v5 }
 0xcf1   :  { %4364 = vpow2.f32 %v1982_v45 }
 0xcf4   :  { %v2116_v37 = vpop.xlane.xlu1 %2115  ;;  %v2051_v47 = vpop.xlane.xlu2 %2050 }
 0xcf5   :  { %v2117_v48 = vsub.f32 %v2113_v38, %v2116_v37  ;;  %v2052_v56 = vsub.f32 %v2048_v54, %v2051_v47  ;;  %v4225_v37 = vld [vmem:[#allocation18 + $0x1ec] sm:$0xf0]  ;;  %v4223_v47 = vld [vmem:[#allocation18 + $0x1e4] sm:$0xf] }
 0xcf7   :  { %v4365_v49 = vpop.eup %4364  ;;  %v2118_v51 = vmul.f32 1.442695, %v2117_v48  ;;  %v2053_v11 = vmul.f32 1.442695, %v2052_v56 }
 0xcf8   :  { %v1984_v41 = vsel %vm581_vm8, %v4365_v49, 0.0 }
 0xcf9   :  { %4366 = vpow2.f32 %v2118_v51  ;;  %1985 = vadd.xlane.f32.xlu1 %v1984_v41  ;;  %v4226_v51 = vld [vmem:[#allocation18 + $0x1f4] sm:$0xf0] }
 0xcfa   :  { %4368 = vpow2.f32 %v1917_v52  ;;  %v3868_v52 = vor.u32 %v4226_v51, %v3867_v50  ;;  %v4206_v50 = vld [vmem:[#allocation18 + $0x154] sm:$0xf0] }
 0xcfb   :  { %4370 = vpow2.f32 %v2053_v11  ;;  %v4221_v11 = vld [vmem:[#allocation18 + $0x1cc] sm:$0xf0] }
 0xcfc   :  { %v1991_v53 = vpop.permute.xlu2 %1990 }
 0xcfd   :  { %2011 = vmatpush.msrb.mxu0 %v1991_v53  ;;  %v4224_v53 = vld [vmem:[#allocation18 + $0x1ec] sm:$0xf] }
 0xcff   :  { %v4367_v14 = vpop.eup %4366 }
 0xd00   :  { %v2120_v55 = vsel %vm581_vm8, %v4367_v14, 0.0  ;;  %v4369_v17 = vpop.eup %4368 }
 0xd01   :  { %2121 = vadd.xlane.f32.xlu0 %v2120_v55  ;;  %v1919_v58 = vsel %vm581_vm8, %v4369_v17, 0.0  ;;  %v4371_v44 = vpop.eup %4370  ;;  %v3843_v55 = vld [vmem:[#allocation18 + $0x1c0] sm:$0xf] }
 0xd02   :  { %v2055_v15 = vsel %vm581_vm8, %v4371_v44, 0.0 }
 0xd09   :  { %1920 = vadd.xlane.f32.xlu0 %v1919_v58  ;;  %v3844_v58 = vor.u32 %v4221_v11, %v3843_v55  ;;  %v4201_v55 = vld [vmem:[#allocation18 + $0x12c] sm:$0xf0]  ;;  %v4199_v11 = vld [vmem:[#allocation18 + $0x124] sm:$0xf] }
 0xd11   :  { %2056 = vadd.xlane.f32.xlu0 %v2055_v15  ;;  %v3851_v15 = vld [vmem:[#allocation18 + $0x1c8] sm:$0xf] }
 0xd12   :  { %2126 = vrot.lane.b32.xlu1 %v5160_v12, %s4801_s8  ;;  %v4191_v12 = vld [vmem:[#allocation14 + $0x60] sm:$0xff] }
 0xd13   :  { %2233 = vmatpush.bf16.msra.mxu1 %v4191_v12  ;;  %v3840_v12 = vor.u32 %v4216_v9, %v3837_v10  ;;  %v4196_v9 = vld [vmem:[#allocation18 + $0x10c] sm:$0xf] }
 0xd17   :  { %2234 = vmatpush.bf16.msra.mxu1 %v4190_v19 }
 0xd1b   :  { %2235 = vmatpush.bf16.msra.mxu1 %v4189_v21  ;;  %v3813_v21 = vld [vmem:[#allocation18 + $0x190] sm:$0xf0] }
 0xd1f   :  { %2236 = vmatpush.bf16.msra.mxu1 %v4188_v43  ;;  %v3819_v43 = vld [vmem:[#allocation18 + $0x188] sm:$0xf] }
 0xd23   :  { %2237 = vmatpush.bf16.msra.mxu1 %v4187_v22  ;;  %v4214_v22 = vld [vmem:[#allocation18 + $0x194] sm:$0xf0] }
 0xd6c   :  { %v1986_v59 = vpop.xlane.xlu1 %1985 }
 0xd6d   :  { %4372 = vrcp.f32 %v1986_v59  ;;  %v4222_v59 = vld [vmem:[#allocation18 + $0x1d4] sm:$0xf0] }
 0xd73   :  { %v4373_v61 = vpop.eup %4372 }
 0xd74   :  { %v1988_v62 = vmul.f32 %v4373_v61, %v4365_v49  ;;  %v2122_v16 = vpop.xlane.xlu0 %2121  ;;  %v3861_v49 = vld [vmem:[#allocation18 + $0x1f0] sm:$0xf0] }
 0xd75   :  { %4374 = vrcp.f32 %v2122_v16  ;;  %v3864_v41 = vor.u32 %v4223_v47, %v3861_v49  ;;  %v4220_v16 = vld [vmem:[#allocation18 + $0x1cc] sm:$0xf]  ;;  %v3787_v49 = vld [vmem:[#allocation18 + $0x148] sm:$0xf] }
 0xd76   :  { %3704 = vmatmul.msk.f32.vlgmr.msrb.gmra.mxu0 %vm581_vm8, %v1988_v62  ;;  %v3852_v62 = vor.u32 %v4222_v59, %v3851_v15  ;;  %v4202_v15 = vld [vmem:[#allocation18 + $0x134] sm:$0xf0] }
 0xd77   :  { %2519 = vmatpush.bf16.msra.mxu3 %v3864_v41  ;;  %v3788_v41 = vor.u32 %v4206_v50, %v3787_v49  ;;  %v4249_v49 = vld [vmem:[#allocation20 + $0x1b0] sm:$0xff]  ;;  %v4234_v50 = vld [vmem:[#allocation20 + $0x138] sm:$0xff] }
 0xd7b   :  { %v4375_v30 = vpop.eup %4374 }
 0xd7c   :  { %v1921_v1 = vpop.xlane.xlu0 %1920  ;;  %v2124_v20 = vmul.f32 %v4375_v30, %v4367_v14  ;;  %v3869_v14 = vld [vmem:[#allocation18 + $0x1f8] sm:$0xf0] }
 0xd7d   :  { %4376 = vrcp.f32 %v1921_v1  ;;  %v3872_v56 = vor.u32 %v4224_v53, %v3869_v14  ;;  %v3853_v1 = vld [vmem:[#allocation18 + $0x1d8] sm:$0xf0] }
 0xd7e   :  { %v3856_v30 = vor.u32 %v4220_v16, %v3853_v1  ;;  %v3789_v53 = vld [vmem:[#allocation18 + $0x158] sm:$0xf0]  ;;  %v4200_v16 = vld [vmem:[#allocation18 + $0x12c] sm:$0xf] }
 0xd7f   :  { %2547 = vmatpush.bf16.msrb.mxu1 %v3872_v56  ;;  %v3763_v56 = vld [vmem:[#allocation18 + $0x120] sm:$0xf]  ;;  %v3773_v1 = vld [vmem:[#allocation18 + $0x138] sm:$0xf0] }
 0xd83   :  { %v4377_v57 = vpop.eup %4376  ;;  %2548 = vmatpush.bf16.msrb.mxu1 %v3856_v30  ;;  %v3747_v30 = vld [vmem:[#allocation18 + $0x100] sm:$0xf] }
 0xd84   :  { %v1923_v2 = vmul.f32 %v4377_v57, %v4369_v17  ;;  %v2127_v34 = vpop.permute.xlu1 %2126  ;;  %v2057_v60 = vpop.xlane.xlu0 %2056  ;;  %v4219_v17 = vld [vmem:[#allocation18 + $0x1c4] sm:$0xf]  ;;  %v3827_v57 = vld [vmem:[#allocation18 + $0x1a0] sm:$0xf] }
 0xd85   :  { %4378 = vrcp.f32 %v2057_v60  ;;  %2147 = vmatpush.msra.mxu0 %v2127_v34  ;;  %v3829_v60 = vld [vmem:[#allocation18 + $0x1b0] sm:$0xf0] }
 0xd86   :  { %3701 = vmatmul.msk.f32.vlgmr.msra.gmra.mxu2 %vm581_vm8, %v1923_v2  ;;  %3710 = vmatmul.msk.f32.vlgmr.msra.gmra.mxu0 %vm581_vm8, %v2124_v20  ;;  %v4217_v20 = vld [vmem:[#allocation18 + $0x1ac] sm:$0xf0]  ;;  %v4215_v2 = vld [vmem:[#allocation18 + $0x1a4] sm:$0xf] }
 0xd87   :  { %2533 = vmatpush.bf16.msrb.mxu0 %v3868_v52  ;;  %v3828_v34 = vor.u32 %v4217_v20, %v3827_v57  ;;  %v3832_v6 = vor.u32 %v4215_v2, %v3829_v60  ;;  %2549 = vmatpush.bf16.msrb.mxu1 %v3840_v12  ;;  %v4204_v52 = vld [vmem:[#allocation18 + $0x14c] sm:$0xf]  ;;  %v3776_v20 = vor.u32 %v4200_v16, %v3773_v1  ;;  %v4197_v2 = vld [vmem:[#allocation18 + $0x10c] sm:$0xf0]  ;;  %v3749_v60 = vld [vmem:[#allocation18 + $0x110] sm:$0xf0] }
 0xd88   :  { %v3792_v14 = vor.u32 %v4204_v52, %v3789_v53  ;;  %v4256_v52 = vld [vmem:[#allocation20 + $0x1e8] sm:$0xff]  ;;  %v4233_v53 = vld [vmem:[#allocation20 + $0x130] sm:$0xff]  ;;  %v4230_v1 = vld [vmem:[#allocation20 + $0x118] sm:$0xff] }
 0xd89   :  { %v5224_v16 = vld [vmem:[%s5300_s11 + $0x4] sm:$0xf] }
 0xd8b   :  { %v4379_v3 = vpop.eup %4378  ;;  %2534 = vmatpush.bf16.msrb.mxu0 %v3852_v62 }
 0xd8c   :  { %v2059_v4 = vmul.f32 %v4379_v3, %v4371_v44  ;;  %v3845_v44 = vld [vmem:[#allocation18 + $0x1d0] sm:$0xf0]  ;;  %v3835_v3 = vld [vmem:[#allocation18 + $0x1a8] sm:$0xf] }
 0xd8d   :  { %v3848_v61 = vor.u32 %v4219_v17, %v3845_v44  ;;  %v3764_v17 = vor.u32 %v4201_v55, %v3763_v56  ;;  %v3771_v44 = vld [vmem:[#allocation18 + $0x128] sm:$0xf]  ;;  %v4247_v56 = vld [vmem:[#allocation20 + $0x1a0] sm:$0xff] }
 0xd8e   :  { %3707 = vmatmul.msk.f32.vlgmr.msrb.gmra.mxu2 %vm581_vm8, %v2059_v4  ;;  %v4218_v4 = vld [vmem:[#allocation18 + $0x1b4] sm:$0xf0]  ;;  %v3772_v62 = vor.u32 %v4202_v15, %v3771_v44  ;;  %v4255_v55 = vld [vmem:[#allocation20 + $0x1e0] sm:$0xff] }
 0xd8f   :  { %2520 = vmatpush.bf16.msra.mxu3 %v3848_v61  ;;  %v4254_v44 = vld [vmem:[#allocation20 + $0x1d8] sm:$0xff]  ;;  %v4231_v15 = vld [vmem:[#allocation20 + $0x120] sm:$0xff] }
 0xd93   :  { %2521 = vmatpush.bf16.msra.mxu3 %v3832_v6  ;;  %v3755_v6 = vld [vmem:[#allocation18 + $0x108] sm:$0xf] }
 0xdf3   :  { %v2013_v7 = vpop.f32.mrf.mxu0 }
 0xdf4   :  { %2017 = vrot.lane.b32.xlu0 %v2013_v7, %s4801_s8  ;;  %v3836_v7 = vor.u32 %v4218_v4, %v3835_v3  ;;  %v3748_v3 = vor.u32 %v4197_v2, %v3747_v30  ;;  %v4238_v30 = vld [vmem:[#allocation20 + $0x158] sm:$0xff]  ;;  %v2339_v2 = vperm.slane %v5224_v16, 2 }
 0xdf6   :  { %2535 = vmatpush.bf16.msrb.mxu0 %v3836_v7  ;;  %v4198_v7 = vld [vmem:[#allocation18 + $0x114] sm:$0xf0] }
 0xdf7   :  { %v3756_v12 = vor.u32 %v4198_v7, %v3755_v6  ;;  %v4243_v7 = vld [vmem:[#allocation20 + $0x180] sm:$0xff] }
 0xe03   :  { %v2149_v13 = vpop.f32.mrf.mxu0 }
 0xe04   :  { %2153 = vrot.lane.b32.xlu2 %v2149_v13, %s4801_s8  ;;  %v3811_v13 = vld [vmem:[#allocation18 + $0x180] sm:$0xf] }
 0xe09   :  { %v1944_v18 = vpop.f32.mrf.mxu2 }
 0xe0a   :  { %1947 = vst.msk [vmem:[#allocation2] sm:$0xff] %vm551_vm7, %v1944_v18  ;;  %v4213_v18 = vld [vmem:[#allocation18 + $0x18c] sm:$0xf0] }
 0xe0b   :  { %v3812_v19 = vor.u32 %v4213_v18, %v3811_v13  ;;  %v3757_v13 = vld [vmem:[#allocation18 + $0x118] sm:$0xf0] }
 0xe0c   :  { %v3760_v18 = vor.u32 %v4196_v9, %v3757_v13  ;;  %v4251_v9 = vld [vmem:[#allocation20 + $0x1c0] sm:$0xff]  ;;  %v2337_v13 = vperm.slane %v5224_v16, 0 }
 0xe11   :  { %v2080_v42 = vpop.f32.mrf.mxu2 }
 0xe12   :  { %2083 = vst.msk [vmem:[#allocation2 + $0x8] sm:$0xff] %vm551_vm7, %v2080_v42  ;;  %v4211_v42 = vld [vmem:[#allocation18 + $0x184] sm:$0xf] }
 0xe5e   :  { %v2154_v23 = vpop.permute.xlu2 %2153 }
 0xe5f   :  { %2156 = vst.msk [vmem:[#allocation2 + $0x8] sm:$0xff] %vm689_vm9, %v2154_v23  ;;  %v3816_v23 = vor.u32 %v4211_v42, %v3813_v21 }
 0xe61   :  { %2522 = vmatpush.bf16.msra.mxu3 %v3816_v23 }
 0xe66   :  { %v2018_v24 = vpop.permute.xlu0 %2017  ;;  %v2158_v26 = vld [vmem:[#allocation2 + $0x8] sm:$0xff] }
 0xe67   :  { %2020 = vst.msk [vmem:[#allocation2] sm:$0xff] %vm689_vm9, %v2018_v24  ;;  %v3820_v24 = vor.u32 %v4214_v22, %v3819_v43 }
 0xe69   :  { %2536 = vmatpush.bf16.msrb.mxu0 %v3820_v24 }
 0xe6e   :  { %v2157_v25 = vld [vmem:[#allocation2] sm:$0xff] }
 0xe6f   :  { %v2176_v27 = vpack.c.bf16 %v2158_v26, %v2157_v25  ;;  %v4212_v25 = vld [vmem:[#allocation18 + $0x18c] sm:$0xf]  ;;  %v3821_v26 = vld [vmem:[#allocation18 + $0x198] sm:$0xf0] }
 0xe71   :  { %2238 = vmatmul.bf16.vlgmr.msra.gmra.mxu1 %v2176_v27  ;;  %v3824_v27 = vor.u32 %v4212_v25, %v3821_v26 }
 0xe73   :  { %2550 = vmatpush.bf16.msrb.mxu1 %v3824_v27 }
 0xeee   :  { %v2239_v29 = vpop.f32.mrf.mxu1 }
 0xeef   :  { %v2240_v31 = vadd.f32 %v4310_v28, %v2239_v29  ;;  %v4209_v29 = vld [vmem:[#allocation18 + $0x16c] sm:$0xf0] }
 0xef1   :  { %v2244_v32 = vadd.f32 %v2240_v31, %v5150_v63  ;;  %v4207_v31 = vld [vmem:[#allocation18 + $0x164] sm:$0xf] }
 0xef3   :  { %2250 = vadd.xlane.f32.xlu1 %v2244_v32 }
 0xef6   :  { %v2241_v35 = vpop.f32.mrf.mxu1 }
 0xef7   :  { %v2242_v36 = vadd.f32 %v4310_v28, %v2241_v35  ;;  %v3795_v28 = vld [vmem:[#allocation18 + $0x160] sm:$0xf]  ;;  %v3797_v35 = vld [vmem:[#allocation18 + $0x170] sm:$0xf0] }
 0xef9   :  { %v2245_v54 = vadd.f32 %v2242_v36, %v5152_v0  ;;  %v3859_v0 = vld [vmem:[#allocation18 + $0x1e0] sm:$0xf]  ;;  %v3803_v36 = vld [vmem:[#allocation18 + $0x168] sm:$0xf] }
 0xefa   :  { %v3860_v48 = vor.u32 %v4225_v37, %v3859_v0  ;;  %v4205_v0 = vld [vmem:[#allocation18 + $0x14c] sm:$0xf0]  ;;  %v4203_v37 = vld [vmem:[#allocation18 + $0x144] sm:$0xf] }
 0xefb   :  { %2252 = vadd.xlane.f32.xlu2 %v2245_v54 }
 0xefc   :  { %2505 = vmatpush.bf16.msra.mxu2 %v3860_v48  ;;  %v3781_v48 = vld [vmem:[#allocation18 + $0x150] sm:$0xf0] }
 0xefd   :  { %v3784_v51 = vor.u32 %v4203_v37, %v3781_v48  ;;  %v4258_v48 = vld [vmem:[#allocation20 + $0x1f8] sm:$0xff] }
 0xf00   :  { %2506 = vmatpush.bf16.msra.mxu2 %v3844_v58  ;;  %v3765_v58 = vld [vmem:[#allocation18 + $0x130] sm:$0xf0] }
 0xf01   :  { %v3768_v61 = vor.u32 %v4199_v11, %v3765_v58  ;;  %v4232_v11 = vld [vmem:[#allocation20 + $0x128] sm:$0xff]  ;;  %v4246_v58 = vld [vmem:[#allocation20 + $0x198] sm:$0xff] }
 0xf04   :  { %2507 = vmatpush.bf16.msra.mxu2 %v3828_v34  ;;  %v4195_v34 = vld [vmem:[#allocation18 + $0x104] sm:$0xf] }
 0xf05   :  { %v3752_v4 = vor.u32 %v4195_v34, %v3749_v60  ;;  %v2340_v34 = vperm.slane %v5224_v16, 3  ;;  %v4229_v60 = vld [vmem:[#allocation20 + $0x110] sm:$0xff] }
 0xf08   :  { %2508 = vmatpush.bf16.msra.mxu2 %v3812_v19 }
 0xf66   :  { %v2251_v38 = vpop.xlane.xlu1 %2250 }
 0xf67   :  { %v2254_v39 = vmul.f32 %v2251_v38, %v4977_v8  ;;  %v3800_v38 = vor.u32 %v4207_v31, %v3797_v35 }
 0xf69   :  { %v5202_v40 = vsub.f32 %v2244_v32, %v2254_v39  ;;  %v3796_v32 = vor.u32 %v4209_v29, %v3795_v28  ;;  %2523 = vmatpush.bf16.msra.mxu3 %v3800_v38 }
 0xf6b   :  { %v2258_v33 = vmul.f32 %v5202_v40, %v5202_v40  ;;  %2509 = vmatpush.bf16.msra.mxu2 %v3796_v32 }
 0xf6d   :  { %2260 = vadd.xlane.f32.xlu0 %v2258_v33  ;;  %v4208_v33 = vld [vmem:[#allocation18 + $0x16c] sm:$0xf]  ;;  %2524 = vmatpush.bf16.msra.mxu3 %v3784_v51  ;;  %v4242_v51 = vld [vmem:[#allocation20 + $0x178] sm:$0xff] }
 0xf6e   :  { %v2253_v5 = vpop.xlane.xlu2 %2252 }
 0xf6f   :  { %v2255_v45 = vmul.f32 %v2253_v5, %v4977_v8  ;;  %v3805_v5 = vld [vmem:[#allocation18 + $0x178] sm:$0xf0] }
 0xf71   :  { %v5207_v46 = vsub.f32 %v2245_v54, %v2255_v45  ;;  %v4210_v54 = vld [vmem:[#allocation18 + $0x174] sm:$0xf0]  ;;  %v3808_v45 = vor.u32 %v4208_v33, %v3805_v5  ;;  %2525 = vmatpush.bf16.msra.mxu3 %v3768_v61  ;;  %v4245_v61 = vld [vmem:[#allocation20 + $0x190] sm:$0xff] }
 0xf72   :  { %v3804_v39 = vor.u32 %v4210_v54, %v3803_v36  ;;  %v4311_v54 = vld [vmem:[#allocation15 + $0x1] ss:$0 sm:$0xff] }
 0xf73   :  { %v2259_v63 = vmul.f32 %v5207_v46, %v5207_v46  ;;  %2551 = vmatpush.bf16.msrb.mxu1 %v3808_v45  ;;  %v4312_v45 = vld [vmem:[#allocation17 + $0x1] ss:$0 sm:$0xff] }
 0xf74   :  { %2537 = vmatpush.bf16.msrb.mxu0 %v3804_v39 }
 0xf75   :  { %2262 = vadd.xlane.f32.xlu1 %v2259_v63  ;;  %v3779_v63 = vld [vmem:[#allocation18 + $0x140] sm:$0xf]  ;;  %2526 = vmatpush.bf16.msra.mxu3 %v3752_v4 }
 0xf76   :  { %v3780_v47 = vor.u32 %v4205_v0, %v3779_v63 }
 0xf77   :  { %2552 = vmatpush.bf16.msrb.mxu1 %v3792_v14  ;;  %v4241_v14 = vld [vmem:[#allocation20 + $0x170] sm:$0xff] }
 0xf78   :  { %2510 = vmatpush.bf16.msra.mxu2 %v3780_v47  ;;  %2538 = vmatpush.bf16.msrb.mxu0 %v3788_v41  ;;  %v4248_v41 = vld [vmem:[#allocation20 + $0x1a8] sm:$0xff] }
 0xf79   :  { %2913 = vmatpush.bf16.msrb.mxu3 %v4242_v51 }
 0xf7b   :  { %2553 = vmatpush.bf16.msrb.mxu1 %v3776_v20  ;;  %v4252_v20 = vld [vmem:[#allocation20 + $0x1c8] sm:$0xff] }
 0xf7c   :  { %2511 = vmatpush.bf16.msra.mxu2 %v3764_v17  ;;  %2539 = vmatpush.bf16.msrb.mxu0 %v3772_v62  ;;  %v4240_v17 = vld [vmem:[#allocation20 + $0x168] sm:$0xff]  ;;  %v4253_v62 = vld [vmem:[#allocation20 + $0x1d0] sm:$0xff] }
 0xf7d   :  { %2914 = vmatpush.bf16.msrb.mxu3 %v4241_v14 }
 0xf7f   :  { %2554 = vmatpush.bf16.msrb.mxu1 %v3760_v18  ;;  %v2338_v18 = vperm.slane %v5224_v16, 1 }
 0xf80   :  { %2512 = vmatpush.bf16.msra.mxu2 %v3748_v3  ;;  %2540 = vmatpush.bf16.msrb.mxu0 %v3756_v12  ;;  %v4237_v3 = vld [vmem:[#allocation20 + $0x150] sm:$0xff] }
 0xf81   :  { %2915 = vmatpush.bf16.msrb.mxu3 %v4240_v17 }
 0xf83   :  { %2941 = vmatpush.bf16.msra.mxu1 %v4258_v48 }
 0xf84   :  { %2899 = vmatpush.bf16.msrb.mxu2 %v4234_v50 }
 0xf88   :  { %2900 = vmatpush.bf16.msrb.mxu2 %v4233_v53 }
 0xf8c   :  { %2901 = vmatpush.bf16.msrb.mxu2 %v4232_v11 }
 0xf90   :  { %2902 = vmatpush.bf16.msrb.mxu2 %v4231_v15 }
 0xf94   :  { %2903 = vmatpush.bf16.msrb.mxu2 %v4230_v1 }
 0xf98   :  { %2904 = vmatpush.bf16.msrb.mxu2 %v4229_v60 }
 0xfe0   :  { %v2261_v59 = vpop.xlane.xlu0 %2260 }
 0xfe1   :  { %v2264_v57 = vmul.f32 %v2261_v59, %v4977_v8  ;;  %v4239_v59 = vld [vmem:[#allocation20 + $0x160] sm:$0xff] }
 0xfe2   :  { %2916 = vmatpush.bf16.msrb.mxu3 %v4239_v59 }
 0xfe3   :  { %v2266_v10 = vadd.f32 1e-12, %v2264_v57  ;;  %v4244_v57 = vld [vmem:[#allocation20 + $0x188] sm:$0xff] }
 0xfe5   :  { %4380 = vrsqrt.f32 %v2266_v10  ;;  %vm2274_vm7 = vweird.f32 %v2266_v10 }
 0xfe6   :  { %2917 = vmatpush.bf16.msrb.mxu3 %v4238_v30 }
 0xfe8   :  { %v2263_v42 = vpop.xlane.xlu1 %2262 }
 0xfe9   :  { %v2265_v19 = vmul.f32 %v2263_v42, %v4977_v8  ;;  %v4228_v42 = vld [vmem:[#allocation20 + $0x108] sm:$0xff] }
 0xfea   :  { %2918 = vmatpush.bf16.msrb.mxu3 %v4237_v3  ;;  %2905 = vmatpush.bf16.msrb.mxu2 %v4228_v42 }
 0xfeb   :  { %v4381_v21 = vpop.eup %4380  ;;  %v2267_v43 = vadd.f32 1e-12, %v2265_v19  ;;  %v4236_v19 = vld [vmem:[#allocation20 + $0x148] sm:$0xff] }
 0xfec   :  { %v2269_v22 = vmul.f32 %v4381_v21, %v2266_v10  ;;  %vm2275_vm6 = vweird.f32 %v4381_v21 }
 0xfed   :  { %4382 = vrsqrt.f32 %v2267_v43  ;;  %vm2276_vm8 = vmor %vm2274_vm7, %vm2275_vm6  ;;  %vm2284_vm10 = vweird.f32 %v2267_v43 }
 0xfee   :  { %v2270_v23 = vmul.f32 %v4381_v21, %v2269_v22  ;;  %2919 = vmatpush.bf16.msrb.mxu3 %v4236_v19 }
 0xff0   :  { %v2271_v24 = vmul.f32 0.5, %v2270_v23 }
 0xff2   :  { %v2272_v25 = vsub.f32 1.5, %v2271_v24 }
 0xff3   :  { %v4383_v26 = vpop.eup %4382 }
 0xff4   :  { %v2273_v27 = vmul.f32 %v4381_v21, %v2272_v25  ;;  %v2279_v28 = vmul.f32 %v4383_v26, %v2267_v43  ;;  %vm2285_vm9 = vweird.f32 %v4383_v26 }
 0xff5   :  { %vm2286_vm11 = vmor %vm2284_vm10, %vm2285_vm9 }
 0xff6   :  { %v2280_v29 = vmul.f32 %v4383_v26, %v2279_v28  ;;  %v2277_v31 = vsel %vm2276_vm8, %v4381_v21, %v2273_v27  ;;  %v4227_v28 = vld [vmem:[#allocation20 + $0x100] sm:$0xff] }
 0xff7   :  { %v2288_v36 = vmul.f32 %v2277_v31, %v5202_v40  ;;  %v4250_v40 = vld [vmem:[#allocation20 + $0x1b8] sm:$0xff]  ;;  %2906 = vmatpush.bf16.msrb.mxu2 %v4227_v28 }
 0xff8   :  { %v2281_v32 = vmul.f32 0.5, %v2280_v29  ;;  %2927 = vmatpush.bf16.msra.mxu0 %v4250_v40  ;;  %v4235_v29 = vld [vmem:[#allocation20 + $0x140] sm:$0xff] }
 0xff9   :  { %v2293_v5 = vmul.f32 %v4311_v54, %v2288_v36  ;;  %2920 = vmatpush.bf16.msrb.mxu3 %v4235_v29 }
 0xffa   :  { %v2282_v35 = vsub.f32 1.5, %v2281_v32 }
 0xffb   :  { %v5215_v0 = vadd.f32 %v4312_v45, %v2293_v5 }
 0xffc   :  { %v2283_v38 = vmul.f32 %v4383_v26, %v2282_v35  ;;  %2928 = vmatpush.bf16.msra.mxu0 %v4249_v49 }
 0xffe   :  { %v2287_v39 = vsel %vm2286_vm11, %v4383_v26, %v2283_v38 }
 0xfff   :  { %v2289_v33 = vmul.f32 %v2287_v39, %v5207_v46  ;;  %v4257_v46 = vld [vmem:[#allocation20 + $0x1f0] sm:$0xff] }
0x1000   :  { %2942 = vmatpush.bf16.msra.mxu1 %v4257_v46  ;;  %2929 = vmatpush.bf16.msra.mxu0 %v4248_v41 }
0x1001   :  { %v2294_v63 = vmul.f32 %v4311_v54, %v2289_v33 }
0x1003   :  { %v5217_v37 = vadd.f32 %v4312_v45, %v2294_v63 }
0x1004   :  { %2943 = vmatpush.bf16.msra.mxu1 %v4256_v52  ;;  %2930 = vmatpush.bf16.msra.mxu0 %v4247_v56 }
0x1005   :  { %v2333_v47 = vpack.c.bf16 %v5217_v37, %v5215_v0 }
0x1007   :  { %2513 = vmatmul.bf16.vlgmr.msra.gmra.mxu2 %v2333_v47  ;;  %2527 = vmatmul.bf16.vlgmr.msra.gmra.mxu3 %v2333_v47 }
0x1008   :  { %2541 = vmatmul.bf16.vlgmr.msrb.gmra.mxu0 %v2333_v47  ;;  %2555 = vmatmul.bf16.vlgmr.msrb.gmra.mxu1 %v2333_v47 }
0x1009   :  { %2944 = vmatpush.bf16.msra.mxu1 %v4255_v55  ;;  %2931 = vmatpush.bf16.msra.mxu0 %v4246_v58 }
0x100d   :  { %2945 = vmatpush.bf16.msra.mxu1 %v4254_v44  ;;  %2932 = vmatpush.bf16.msra.mxu0 %v4245_v61 }
0x1011   :  { %2946 = vmatpush.bf16.msra.mxu1 %v4253_v62  ;;  %2933 = vmatpush.bf16.msra.mxu0 %v4244_v57 }
0x1015   :  { %2947 = vmatpush.bf16.msra.mxu1 %v4252_v20  ;;  %2934 = vmatpush.bf16.msra.mxu0 %v4243_v7 }
0x1019   :  { %2948 = vmatpush.bf16.msra.mxu1 %v4251_v9 }
0x1085   :  { %v2542_v4 = vpop.f32.mrf.mxu0  ;;  %v2556_v6 = vpop.f32.mrf.mxu1 }
0x1086   :  { %v5228_v10 = vadd.f32 %v2542_v4, %v2339_v2  ;;  %v5230_v12 = vadd.f32 %v2556_v6, %v2340_v34 }
0x1088   :  { %v2563_v21 = vmul.f32 %v5228_v10, %v5228_v10  ;;  %v2564_v43 = vmul.f32 %v5230_v12, %v5230_v12 }
0x108a   :  { %v2571_v22 = vmul.f32 %v2563_v21, %v5228_v10  ;;  %v2572_v23 = vmul.f32 %v2564_v43, %v5230_v12  ;;  %v2514_v24 = vpop.f32.mrf.mxu2  ;;  %v2528_v25 = vpop.f32.mrf.mxu3 }
0x108b   :  { %v5240_v26 = vadd.f32 %v2514_v24, %v2337_v13  ;;  %v5242_v27 = vadd.f32 %v2528_v25, %v2338_v18 }
0x108c   :  { %v2579_v31 = vmul.f32 0.044715, %v2571_v22  ;;  %v2580_v32 = vmul.f32 0.044715, %v2572_v23 }
0x108d   :  { %v2561_v35 = vmul.f32 %v5240_v26, %v5240_v26  ;;  %v2562_v36 = vmul.f32 %v5242_v27, %v5242_v27  ;;  %v2544_v54 = vpop.f32.mrf.mxu0  ;;  %v2558_v38 = vpop.f32.mrf.mxu1 }
0x108e   :  { %v2587_v39 = vadd.f32 %v2579_v31, %v5228_v10  ;;  %v2588_v33 = vadd.f32 %v2580_v32, %v5230_v12  ;;  %v2545_v5 = vadd.f32 %v2544_v54, %v2339_v2  ;;  %v5250_v45 = vadd.f32 %v2558_v38, %v2340_v34 }
0x108f   :  { %v2569_v63 = vmul.f32 %v2561_v35, %v5240_v26  ;;  %v2570_v47 = vmul.f32 %v2562_v36, %v5242_v27 }
0x1090   :  { %v2595_v40 = vmul.f32 0.7978846, %v2587_v39  ;;  %v2567_v48 = vmul.f32 %v2545_v5, %v2545_v5  ;;  %v2568_v49 = vmul.f32 %v5250_v45, %v5250_v45  ;;  %v2596_v46 = vmul.f32 0.7978846, %v2588_v33 }
0x1091   :  { %v2577_v50 = vmul.f32 0.044715, %v2569_v63  ;;  %v2578_v51 = vmul.f32 0.044715, %v2570_v47 }
0x1092   :  { %v2575_v41 = vmul.f32 %v2567_v48, %v2545_v5  ;;  %v2576_v52 = vmul.f32 %v2568_v49, %v5250_v45  ;;  %v2516_v53 = vpop.f32.mrf.mxu2  ;;  %v2530_v14 = vpop.f32.mrf.mxu3  ;;  %4384 = vtanh.f32 %v2595_v40 }
0x1093   :  { %v2585_v56 = vadd.f32 %v2577_v50, %v5240_v26  ;;  %v2586_v55 = vadd.f32 %v2578_v51, %v5242_v27  ;;  %v2517_v11 = vadd.f32 %v2516_v53, %v2337_v13  ;;  %v2531_v44 = vadd.f32 %v2530_v14, %v2338_v18 }
0x1094   :  { %v2583_v17 = vmul.f32 0.044715, %v2575_v41  ;;  %v2584_v58 = vmul.f32 0.044715, %v2576_v52  ;;  %4386 = vtanh.f32 %v2596_v46 }
0x1095   :  { %v2593_v15 = vmul.f32 0.7978846, %v2585_v56  ;;  %v2594_v59 = vmul.f32 0.7978846, %v2586_v55  ;;  %v2565_v61 = vmul.f32 %v2517_v11, %v2517_v11  ;;  %v2566_v1 = vmul.f32 %v2531_v44, %v2531_v44 }
0x1096   :  { %v2591_v62 = vadd.f32 %v2583_v17, %v2545_v5  ;;  %v2592_v16 = vadd.f32 %v2584_v58, %v5250_v45 }
0x1097   :  { %v2573_v30 = vmul.f32 %v2565_v61, %v2517_v11  ;;  %4388 = vtanh.f32 %v2593_v15  ;;  %v2574_v2 = vmul.f32 %v2566_v1, %v2531_v44 }
0x1098   :  { %v2599_v57 = vmul.f32 0.7978846, %v2591_v62  ;;  %v2600_v20 = vmul.f32 0.7978846, %v2592_v16  ;;  %4390 = vtanh.f32 %v2594_v59  ;;  %v4385_v60 = vpop.eup %4384 }
0x1099   :  { %v2581_v34 = vmul.f32 0.044715, %v2573_v30  ;;  %v2582_v3 = vmul.f32 0.044715, %v2574_v2  ;;  %v2611_v9 = vadd.f32 1.0, %v4385_v60 }
0x109a   :  { %4392 = vtanh.f32 %v2599_v57  ;;  %v4387_v4 = vpop.eup %4386 }
0x109b   :  { %4394 = vtanh.f32 %v2600_v20  ;;  %v2589_v6 = vadd.f32 %v2581_v34, %v2517_v11  ;;  %v2590_v7 = vadd.f32 %v2582_v3, %v2531_v44  ;;  %v2612_v42 = vadd.f32 1.0, %v4387_v4 }
0x109c   :  { %v2619_v23 = vmul.f32 0.5, %v2611_v9 }
0x109d   :  { %v2597_v13 = vmul.f32 0.7978846, %v2589_v6  ;;  %v4389_v18 = vpop.eup %4388  ;;  %v2598_v19 = vmul.f32 0.7978846, %v2590_v7  ;;  %v2620_v25 = vmul.f32 0.5, %v2612_v42  ;;  %v4264_v42 = vld [vmem:[#allocation23 + $0x28] sm:$0xff] }
0x109e   :  { %v4391_v21 = vpop.eup %4390  ;;  %v2609_v28 = vadd.f32 1.0, %v4389_v18  ;;  %v2627_v54 = vmul.f32 %v2619_v23, %v5228_v10  ;;  %v4265_v18 = vld [vmem:[#allocation23 + $0x30] sm:$0xff] }
0x109f   :  { %4396 = vtanh.f32 %v2597_v13  ;;  %v2610_v31 = vadd.f32 1.0, %v4391_v21  ;;  %v2628_v33 = vmul.f32 %v2620_v25, %v5230_v12  ;;  %v4266_v13 = vld [vmem:[#allocation23 + $0x38] sm:$0xff]  ;;  %v4261_v21 = vld [vmem:[#allocation23 + $0x10] sm:$0xff] }
0x10a0   :  { %v4393_v43 = vpop.eup %4392  ;;  %4398 = vtanh.f32 %v2598_v19  ;;  %v2617_v63 = vmul.f32 0.5, %v2609_v28  ;;  %3080 = vmatpush.bf16.msra.mxu2 %v4266_v13  ;;  %v4262_v19 = vld [vmem:[#allocation23 + $0x18] sm:$0xff] }
0x10a1   :  { %v4395_v22 = vpop.eup %4394  ;;  %v2615_v24 = vadd.f32 1.0, %v4393_v43  ;;  %v2618_v48 = vmul.f32 0.5, %v2610_v31  ;;  %v4260_v43 = vld [vmem:[#allocation23 + $0x8] sm:$0xff]  ;;  %v4274_v28 = vld [vmem:[#allocation24 + $0x38] sm:$0xff] }
0x10a2   :  { %v2616_v29 = vadd.f32 1.0, %v4395_v22  ;;  %v2625_v52 = vmul.f32 %v2617_v63, %v5240_v26  ;;  %3165 = vmatpush.bf16.msra.mxu3 %v4274_v28  ;;  %v4271_v63 = vld [vmem:[#allocation24 + $0x20] sm:$0xff] }
0x10a3   :  { %v2623_v32 = vmul.f32 0.5, %v2615_v24  ;;  %v2626_v10 = vmul.f32 %v2618_v48, %v5242_v27  ;;  %v4259_v24 = vld [vmem:[#allocation23] sm:$0xff] }
0x10a4   :  { %v2624_v35 = vmul.f32 0.5, %v2616_v29  ;;  %3081 = vmatpush.bf16.msra.mxu2 %v4265_v18 }
0x10a5   :  { %v4397_v36 = vpop.eup %4396  ;;  %v2631_v38 = vmul.f32 %v2623_v32, %v2545_v5  ;;  %v4273_v32 = vld [vmem:[#allocation24 + $0x30] sm:$0xff] }
0x10a6   :  { %v4399_v39 = vpop.eup %4398  ;;  %v2632_v47 = vmul.f32 %v2624_v35, %v5250_v45  ;;  %v2613_v40 = vadd.f32 1.0, %v4397_v36  ;;  %v4313_v45 = vld [vmem:[%s5302_s13 + $0x1] ss:$0 sm:$0xff]  ;;  %3166 = vmatpush.bf16.msra.mxu3 %v4273_v32 }
0x10a7   :  { %v2614_v49 = vadd.f32 1.0, %v4399_v39  ;;  %v2700_v46 = vpack.c.bf16 %v2631_v38, %v2627_v54  ;;  %v4272_v38 = vld [vmem:[#allocation24 + $0x28] sm:$0xff] }
0x10a8   :  { %v2621_v50 = vmul.f32 0.5, %v2613_v40  ;;  %v2701_v51 = vpack.c.bf16 %v2632_v47, %v2628_v33  ;;  %3082 = vmatpush.bf16.msra.mxu2 %v4264_v42 }
0x10a9   :  { %v2622_v41 = vmul.f32 0.5, %v2614_v49  ;;  %2935 = vmatmul.bf16.vlgmr.msra.gmra.mxu0 %v2700_v46 }
0x10aa   :  { %v2629_v53 = vmul.f32 %v2621_v50, %v2517_v11  ;;  %2949 = vmatmul.bf16.vlgmr.msra.gmra.mxu1 %v2701_v51  ;;  %3167 = vmatpush.bf16.msra.mxu3 %v4272_v38 }
0x10ab   :  { %v2630_v5 = vmul.f32 %v2622_v41, %v2531_v44 }
0x10ac   :  { %v2698_v14 = vpack.c.bf16 %v2629_v53, %v2625_v52  ;;  %v4314_v52 = vld [vmem:[#allocation21 + $0x1] ss:$0 sm:$0xff] }
0x10ad   :  { %v2699_v12 = vpack.c.bf16 %v2630_v5, %v2626_v10 }
0x10ae   :  { %2907 = vmatmul.bf16.vlgmr.msrb.gmra.mxu2 %v2698_v14  ;;  %3168 = vmatpush.bf16.msra.mxu3 %v4271_v63 }
0x10af   :  { %2921 = vmatmul.bf16.vlgmr.msrb.gmra.mxu3 %v2699_v12  ;;  %v4315_v12 = vld [vmem:[%s5304_s15 + $0x1] ss:$0 sm:$0xff] }
0x1126   :  { %v2936_v58 = vpop.f32.mrf.mxu0 }
0x1127   :  { %v2950_v59 = vpop.f32.mrf.mxu1 }
0x112e   :  { %v2938_v1 = vpop.f32.mrf.mxu0 }
0x112f   :  { %v2952_v57 = vpop.f32.mrf.mxu1 }
0x1131   :  { %v2908_v56 = vpop.f32.mrf.mxu2 }
0x1132   :  { %v2909_v55 = vadd.f32 %v4313_v45, %v2908_v56  ;;  %v2922_v17 = vpop.f32.mrf.mxu3 }
0x1134   :  { %v2923_v15 = vadd.f32 %v2922_v17, %v2909_v55 }
0x1136   :  { %v2937_v26 = vadd.f32 %v2936_v58, %v2923_v15  ;;  %v4270_v58 = vld [vmem:[#allocation24 + $0x18] sm:$0xff]  ;;  %v4269_v15 = vld [vmem:[#allocation24 + $0x10] sm:$0xff] }
0x1137   :  { %3169 = vmatpush.bf16.msra.mxu3 %v4270_v58 }
0x1138   :  { %v2951_v11 = vadd.f32 %v2950_v59, %v2937_v26  ;;  %v4268_v59 = vld [vmem:[#allocation24 + $0x8] sm:$0xff]  ;;  %v4267_v26 = vld [vmem:[#allocation24] sm:$0xff] }
0x1139   :  { %v2910_v61 = vpop.f32.mrf.mxu2 }
0x113a   :  { %v2911_v62 = vadd.f32 %v4313_v45, %v2910_v61  ;;  %v2955_v27 = vadd.f32 %v2951_v11, %v5215_v0  ;;  %v2924_v44 = vpop.f32.mrf.mxu3  ;;  %v4316_v61 = vld [vmem:[%s5306_s17] ss:$0 sm:$0xff]  ;;  %s3187_s17 = sshll.u32 %s5322_s14, 4  ;;  %s3188_s17 = int_to_ptr.hbm [resolvable:$true] %s3187_s17 }
0x113b   :  { %3170 = vmatpush.bf16.msra.mxu3 %v4269_v15 }
0x113c   :  { %v2925_v16 = vadd.f32 %v2924_v44, %v2911_v62  ;;  %2961 = vadd.xlane.f32.xlu2 %v2955_v27 }
0x113e   :  { %v2939_v30 = vadd.f32 %v2938_v1, %v2925_v16 }
0x113f   :  { %3171 = vmatpush.bf16.msra.mxu3 %v4268_v59 }
0x1140   :  { %v2953_v20 = vadd.f32 %v2952_v57, %v2939_v30  ;;  %v4317_v57 = vld [vmem:[%s5308_s19] ss:$0 sm:$0xff] }
0x1142   :  { %v2956_v2 = vadd.f32 %v2953_v20, %v5217_v37  ;;  %v4263_v37 = vld [vmem:[#allocation23 + $0x20] sm:$0xff] }
0x1143   :  { %3083 = vmatpush.bf16.msra.mxu2 %v4263_v37  ;;  %3172 = vmatpush.bf16.msra.mxu3 %v4267_v26 }
0x1144   :  { %2963 = vadd.xlane.f32.xlu1 %v2956_v2 }
0x1147   :  { %3084 = vmatpush.bf16.msra.mxu2 %v4262_v19 }
0x114b   :  { %3085 = vmatpush.bf16.msra.mxu2 %v4261_v21 }
0x114f   :  { %3086 = vmatpush.bf16.msra.mxu2 %v4260_v43 }
0x1153   :  { %3087 = vmatpush.bf16.msra.mxu2 %v4259_v24 }
0x11af   :  { %v2962_v34 = vpop.xlane.xlu2 %2961 }
0x11b0   :  { %v2965_v60 = vmul.f32 %v2962_v34, %v4977_v8 }
0x11b2   :  { %v2967_v3 = vsub.f32 %v2955_v27, %v2965_v60 }
0x11b4   :  { %v2969_v4 = vmul.f32 %v2967_v3, %v2967_v3 }
0x11b6   :  { %2971 = vadd.xlane.f32.xlu2 %v2969_v4 }
0x11b7   :  { %v2964_v6 = vpop.xlane.xlu1 %2963 }
0x11b8   :  { %v2966_v7 = vmul.f32 %v2964_v6, %v4977_v8 }
0x11ba   :  { %v2968_v0 = vsub.f32 %v2956_v2, %v2966_v7 }
0x11bc   :  { %v2970_v9 = vmul.f32 %v2968_v0, %v2968_v0 }
0x11be   :  { %2973 = vadd.xlane.f32.xlu0 %v2970_v9 }
0x1229   :  { %v2972_v22 = vpop.xlane.xlu2 %2971 }
0x122a   :  { %v2975_v23 = vmul.f32 %v2972_v22, %v4977_v8 }
0x122c   :  { %v2977_v25 = vadd.f32 1e-12, %v2975_v23 }
0x122e   :  { %4400 = vrsqrt.f32 %v2977_v25  ;;  %vm2985_vm13 = vweird.f32 %v2977_v25 }
0x1231   :  { %v2974_v29 = vpop.xlane.xlu0 %2973 }
0x1232   :  { %v2976_v31 = vmul.f32 %v2974_v29, %v4977_v8 }
0x1234   :  { %v4401_v35 = vpop.eup %4400  ;;  %v2978_v36 = vadd.f32 1e-12, %v2976_v31 }
0x1235   :  { %v2980_v54 = vmul.f32 %v4401_v35, %v2977_v25  ;;  %vm2986_vm12 = vweird.f32 %v4401_v35 }
0x1236   :  { %4402 = vrsqrt.f32 %v2978_v36  ;;  %vm2987_vm14 = vmor %vm2985_vm13, %vm2986_vm12  ;;  %vm2995_vm0 = vweird.f32 %v2978_v36 }
0x1237   :  { %v2981_v39 = vmul.f32 %v4401_v35, %v2980_v54 }
0x1239   :  { %v2982_v33 = vmul.f32 0.5, %v2981_v39 }
0x123b   :  { %v2983_v47 = vsub.f32 1.5, %v2982_v33 }
0x123c   :  { %v4403_v40 = vpop.eup %4402 }
0x123d   :  { %v2984_v48 = vmul.f32 %v4401_v35, %v2983_v47  ;;  %v2990_v49 = vmul.f32 %v4403_v40, %v2978_v36  ;;  %vm2996_vm15 = vweird.f32 %v4403_v40 }
0x123e   :  { %vm2997_vm1 = vmor %vm2995_vm0, %vm2996_vm15 }
0x123f   :  { %v2991_v8 = vmul.f32 %v4403_v40, %v2990_v49  ;;  %v2988_v46 = vsel %vm2987_vm14, %v4401_v35, %v2984_v48 }
0x1240   :  { %v2999_v41 = vmul.f32 %v2988_v46, %v2967_v3 }
0x1241   :  { %v2992_v50 = vmul.f32 0.5, %v2991_v8 }
0x1242   :  { %v3004_v14 = vmul.f32 %v4314_v52, %v2999_v41 }
0x1243   :  { %v2993_v51 = vsub.f32 1.5, %v2992_v50 }
0x1244   :  { %v3009_v56 = vadd.f32 %v4315_v12, %v3004_v14 }
0x1245   :  { %v2994_v53 = vmul.f32 %v4403_v40, %v2993_v51 }
0x1247   :  { %v2998_v10 = vsel %vm2997_vm1, %v4403_v40, %v2994_v53 }
0x1248   :  { %v3000_v5 = vmul.f32 %v2998_v10, %v2968_v0 }
0x124a   :  { %v3005_v45 = vmul.f32 %v4314_v52, %v3000_v5 }
0x124c   :  { %v3010_v55 = vadd.f32 %v4315_v12, %v3005_v45 }
0x124e   :  { %v3027_v17 = vpack.c.bf16 %v3010_v55, %v3009_v56 }
0x1250   :  { %3088 = vmatmul.bf16.vlgmr.msra.gmra.mxu2 %v3027_v17 }
0x12d3   :  { %v3089_v11 = vpop.f32.mrf.mxu2 }
0x12d4   :  { %v3090_v62 = vadd.f32 %v4316_v61, %v3089_v11 }
0x12d6   :  { %v3094_v16 = vmax.f32 %v3090_v62, 0.0 }
0x12db   :  { %v3091_v27 = vpop.f32.mrf.mxu2 }
0x12dc   :  { %v3092_v44 = vadd.f32 %v4316_v61, %v3091_v27 }
0x12de   :  { %v3095_v1 = vmax.f32 %v3092_v44, 0.0 }
0x12e0   :  { %v3112_v30 = vpack.c.bf16 %v3095_v1, %v3094_v16 }
0x12e2   :  { %3173 = vmatmul.bf16.vlgmr.msra.gmra.mxu3 %v3112_v30 }
0x1365   :  { %v3174_v20 = vpop.f32.mrf.mxu3 }
0x1366   :  { %v3175_v2 = vadd.f32 %v4317_v57, %v3174_v20 }
0x1368   :  { %3179 = vst [vmem:[#allocation26] sm:$0xff] %v3175_v2 }
0x136d   :  { %v3176_v34 = vpop.f32.mrf.mxu3 }
0x136e   :  { %v3177_v60 = vadd.f32 %v4317_v57, %v3176_v34 }
0x1370   :  { %3180 = vst [vmem:[#allocation26 + $0x8] sm:$0xff] %v3177_v60 }
0x1371   :  { %3193 = dma.vmem_to_hbm [thread:$0]  %s3186_s24, 256, %s3188_s17, [#allocation5], %s5323_s29, %s5323_s29, %s4795_s28  }
0x1372   :  { %4780 = dma.done.wait [#allocation5], 256  }
0x1373   :  { %4781 = vsyncadd [#allocation5], 4294967040 }
0x1374   :  { %3198 = vsyncpa [#allocation4], 1 }
0x1375   :  { %3199 = vsyncpa [#allocation7], 1 }
0x1376   :  { %3200 = vsyncpa [#allocation10], 1 }
0x1377   :  { %3201 = vsyncpa [#allocation13], 1 }
0x1378   :  { %3202 = vsyncpa [#allocation16], 1 }
0x1379   :  { %3203 = vsyncpa [#allocation19], 1 }
0x137a   :  { %3204 = vsyncpa [#allocation22], 1 }
0x137b   :  { %3205 = vsyncpa [#allocation25], 1 }
0x137c   :  { %3206 = vsyncpa [#allocation5], 1 }

</bundles_post_ra>
